<compile_context>
chip_gen: v5e
topology: v5e:2x2
jax: 0.10.0
libtpu: 0.0.40
codegen_flags: <defaults>
</compile_context>

<pallas_src>
import jax
import jax.numpy as jnp
from jax import lax
from jax.experimental import pallas as pl
from jax.experimental.pallas import tpu as pltpu

_EPS = 1e-5


# ------------------------------ fused Pallas kernel ------------------------------ #

def _make_elastic_block_kernel(*, stride, H, W, Ho, Wo, res_conv, has_xt):
    """Builds the fused bottleneck kernel. One grid step == one image (NHWC)."""

    def kernel(*refs):
        it = iter(refs)
        x_ref = next(it)                                        # (H, W, cin)    bf16
        w1_ref, s1_ref, b1_ref = next(it), next(it), next(it)   # w1: (cin, med)
        w2_ref, s2_ref, b2_ref = next(it), next(it), next(it)   # w2: (9*med, med)
        w3_ref, s3_ref, b3_ref = next(it), next(it), next(it)   # w3: (med, outp)
        if res_conv:
            w4_ref, s4_ref, b4_ref = next(it), next(it), next(it)
        if has_xt:
            xt_ref = next(it)                                   # (H, W, med)    bf16
        out_ref = next(it)                                      # (Ho, Wo, outp) f32
        x2_ref = next(it)                                       # (Ho, Wo, med)  f32
        xp_ref = next(it)                                       # VMEM (H+2, W+2, med) f32
        pat_ref = next(it)                                      # VMEM (Ho*Wo, 9*med)  f32

        cin = x_ref.shape[-1]
        med = w1_ref.shape[-1]
        outp = w3_ref.shape[-1]

        xv = x_ref[...]                              # bf16, read from HBM exactly once
        x_flat = xv.reshape(H * W, cin)

        # ---- conv1 (1x1) + BN1 + ReLU  ->  x1 (kept in VMEM / registers) ---------- #
        y1 = jnp.dot(x_flat, w1_ref[...], preferred_element_type=jnp.float32)
        x1 = jnp.maximum(y1 * s1_ref[...] + b1_ref[...], 0.0)          # (H*W, med) f32
        if has_xt:
            x1 = x1 + xt_ref[...].reshape(H * W, med).astype(jnp.float32)

        # ---- zero-padded halo for the 3x3 (padding=1), built in VMEM scratch ------ #
        xp_ref[...] = jnp.zeros_like(xp_ref)
        xp_ref[1:H + 1, 1:W + 1, :] = x1.reshape(H, W, med)

        # ---- im2col patch matrix + a single conv2 matmul (K = 9*med) -------------- #
        xp = xp_ref[...]
        for kh in range(3):
            for kw in range(3):
                patch = xp[kh:kh + (Ho - 1) * stride + 1:stride,
                           kw:kw + (Wo - 1) * stride + 1:stride, :]     # (Ho, Wo, med)
                k = kh * 3 + kw
                pat_ref[:, k * med:(k + 1) * med] = patch.reshape(Ho * Wo, med)

        y2 = jnp.dot(pat_ref[...], w2_ref[...].astype(jnp.float32),
                     preferred_element_type=jnp.float32)
        x2 = jnp.maximum(y2 * s2_ref[...] + b2_ref[...], 0.0)           # (Ho*Wo, med)
        x2_ref[...] = x2.reshape(Ho, Wo, med).astype(x2_ref.dtype)

        # ---- conv3 (1x1) + BN3 ----------------------------------------------------- #
        y3 = jnp.dot(x2, w3_ref[...].astype(jnp.float32),
                     preferred_element_type=jnp.float32)
        y3 = y3 * s3_ref[...] + b3_ref[...]                              # (Ho*Wo, outp)

        # ---- residual branch (subsampled in VMEM; no extra HBM gather) ------------- #
        if res_conv:
            if stride == 1:
                xr = x_flat
            else:
                xr = xv[::stride, ::stride, :].reshape(Ho * Wo, cin)
            r = jnp.dot(xr, w4_ref[...], preferred_element_type=jnp.float32)
            r = r * s4_ref[...] + b4_ref[...]
        else:
            r = x_flat.astype(jnp.float32)       # identity (requires stride==1, cin==outp)

        out = jnp.maximum(y3 + r, 0.0)
        out_ref[...] = out.reshape(Ho, Wo, outp).astype(out_ref.dtype)

    return kernel


# --------------------------- Elastic_conv_Block forward -------------------------- #

def elastic_conv_block_forward(params, x_nchw, x_t=None, return_x_2=True):
    """Forward pass (eval-mode BN folded; drop_block / drop_path are None => identity)."""
    stride = int(params["stride"])
    res_conv = bool(params["res_conv"])

    x = jnp.transpose(x_nchw, (0, 2, 3, 1)).astype(jnp.bfloat16)   # NCHW -> NHWC, bf16
    N, H, W, cin = x.shape
    med = params["w1"].shape[1]
    outp = params["w3"].shape[1]
    Ho = (H - 1) // stride + 1
    Wo = (W - 1) // stride + 1

    if not res_conv:
        assert stride == 1 and cin == outp, (
            "identity residual requires stride == 1 and inplanes == outplanes")

    w1 = params["w1"].astype(jnp.bfloat16)
    w2f = params["w2"].reshape(9 * med, med).astype(jnp.bfloat16)   # (kh,kw,ci) flattened
    w3 = params["w3"].astype(jnp.bfloat16)

    inputs = [x, w1, params["s1"], params["b1"],
              w2f, params["s2"], params["b2"],
              w3, params["s3"], params["b3"]]
    in_specs = [
        pl.BlockSpec((None, H, W, cin), lambda n: (n, 0, 0, 0)),
        pl.BlockSpec((cin, med), lambda n: (0, 0)),
        pl.BlockSpec((1, med), lambda n: (0, 0)),
        pl.BlockSpec((1, med), lambda n: (0, 0)),
        pl.BlockSpec((9 * med, med), lambda n: (0, 0)),
        pl.BlockSpec((1, med), lambda n: (0, 0)),
        pl.BlockSpec((1, med), lambda n: (0, 0)),
        pl.BlockSpec((med, outp), lambda n: (0, 0)),
        pl.BlockSpec((1, outp), lambda n: (0, 0)),
        pl.BlockSpec((1, outp), lambda n: (0, 0)),
    ]
    if res_conv:
        inputs += [params["w4"].astype(jnp.bfloat16), params["s4"], params["b4"]]
        in_specs += [pl.BlockSpec((cin, outp), lambda n: (0, 0)),
                     pl.BlockSpec((1, outp), lambda n: (0, 0)),
                     pl.BlockSpec((1, outp), lambda n: (0, 0))]
    has_xt = x_t is not None
    if has_xt:
        xt = jnp.transpose(x_t, (0, 2, 3, 1)).astype(jnp.bfloat16)   # NCHW -> NHWC
        inputs.append(xt)
        in_specs.append(pl.BlockSpec((None, H, W, med), lambda n: (n, 0, 0, 0)))

    kernel = _make_elastic_block_kernel(stride=stride, H=H, W=W, Ho=Ho, Wo=Wo,
                                        res_conv=res_conv, has_xt=has_xt)

    out, x2 = pl.pallas_call(
        kernel,
        out_shape=(jax.ShapeDtypeStruct((N, Ho, Wo, outp), jnp.float32),
                   jax.ShapeDtypeStruct((N, Ho, Wo, med), jnp.float32)),
        grid_spec=pltpu.PrefetchScalarGridSpec(
            num_scalar_prefetch=0,
            grid=(N,),
            in_specs=in_specs,
            out_specs=[pl.BlockSpec((None, Ho, Wo, outp), lambda n: (n, 0, 0, 0)),
                       pl.BlockSpec((None, Ho, Wo, med), lambda n: (n, 0, 0, 0))],
            scratch_shapes=[pltpu.VMEM((H + 2, W + 2, med), jnp.float32),
                            pltpu.VMEM((Ho * Wo, 9 * med), jnp.float32)]),
        compiler_params=pltpu.CompilerParams(
            dimension_semantics=("parallel",),          # batch axis -> both TCs on v7x
            vmem_limit_bytes=32 * 1024 * 1024),         # safe on v5e/v6e/v7x
    )(*inputs)

    # TODO(synk): for large H*W, add an output-row tile grid axis with a 1-row halo so
    #             the x1 / im2col VMEM scratch stays bounded; lane-dense (>=128) output
    #             packing is limited here by the tiny channel widths (med=4, outp=16).
    out_nchw = jnp.transpose(out, (0, 3, 1, 2))
    x2_nchw = jnp.transpose(x2, (0, 3, 1, 2))
    if return_x_2:
        return out_nchw, x2_nchw
    return out_nchw


# ----------------------------------- params -------------------------------------- #

def _fold_bn(key, c):
    kg, kb, km, kv = jax.random.split(key, 4)
    gamma = 1.0 + 0.1 * jax.random.normal(kg, (c,), jnp.float32)
    beta = 0.1 * jax.random.normal(kb, (c,), jnp.float32)
    rmean = 0.1 * jax.random.normal(km, (c,), jnp.float32)
    rvar = 0.5 + 0.5 * jnp.abs(jax.random.normal(kv, (c,), jnp.float32))
    scale = gamma / jnp.sqrt(rvar + _EPS)
    bias = beta - rmean * scale
    return scale.reshape(1, c), bias.reshape(1, c)


def make_params(key, inplanes, outplanes, stride=1, res_conv=True):
    med = outplanes // 4                       # expansion = 4
    ks = jax.random.split(key, 8)
    p = {"stride": stride, "res_conv": res_conv}
    p["w1"] = 0.2 * jax.random.normal(ks[0], (inplanes, med), jnp.float32)
    p["s1"], p["b1"] = _fold_bn(ks[1], med)
    p["w2"] = 0.2 * jax.random.normal(ks[2], (3, 3, med, med), jnp.float32)
    p["s2"], p["b2"] = _fold_bn(ks[3], med)
    p["w3"] = 0.2 * jax.random.normal(ks[4], (med, outplanes), jnp.float32)
    p["s3"], p["b3"] = _fold_bn(ks[5], outplanes)
    if res_conv:
        p["w4"] = 0.2 * jax.random.normal(ks[6], (inplanes, outplanes), jnp.float32)
        p["s4"], p["b4"] = _fold_bn(ks[7], outplanes)
    return p


# ------------------------------ pure-JAX reference -------------------------------- #

def _ref_conv(x_nhwc, w_hwio, stride):
    return lax.conv_general_dilated(
        x_nhwc, w_hwio, window_strides=(stride, stride),
        padding=[(w_hwio.shape[0] // 2,) * 2, (w_hwio.shape[1] // 2,) * 2],
        dimension_numbers=("NHWC", "HWIO", "NHWC"))


def _round_bf16(a):
    return a.astype(jnp.bfloat16).astype(jnp.float32)


def reference_forward(params, x_nchw, x_t=None):
    """f32 reference computed on the same bf16-rounded inputs the kernel consumes."""
    stride = params["stride"]
    x = _round_bf16(jnp.transpose(x_nchw, (0, 2, 3, 1)))
    cin = x.shape[-1]
    med = params["w1"].shape[1]
    outp = params["w3"].shape[1]
    w1 = _round_bf16(params["w1"])
    w2 = _round_bf16(params["w2"])
    w3 = _round_bf16(params["w3"])

    def bn(y, s, b):
        return y * s.reshape(1, 1, 1, -1) + b.reshape(1, 1, 1, -1)

    y = _ref_conv(x, w1.reshape(1, 1, cin, med), 1)
    y = jnp.maximum(bn(y, params["s1"], params["b1"]), 0.0)
    if x_t is not None:
        y = y + _round_bf16(jnp.transpose(x_t, (0, 2, 3, 1)))
    y = _ref_conv(y, w2, stride)
    x2 = jnp.maximum(bn(y, params["s2"], params["b2"]), 0.0)
    y = _ref_conv(x2, w3.reshape(1, 1, med, outp), 1)
    y = bn(y, params["s3"], params["b3"])
    if params["res_conv"]:
        w4 = _round_bf16(params["w4"])
        r = _ref_conv(x, w4.reshape(1, 1, cin, outp), stride)
        r = bn(r, params["s4"], params["b4"])
    else:
        r = x
    out = jnp.maximum(y + r, 0.0)
    return jnp.transpose(out, (0, 3, 1, 2)), jnp.transpose(x2, (0, 3, 1, 2))


# -------------------------------------- main --------------------------------------- #

if __name__ == "__main__":
    N, H, W = 2, 16, 16
    inplanes, outplanes = 16, 16            # med_planes = outplanes // 4 = 4

    key = jax.random.PRNGKey(0)
    kx, kpa, kpb, kt = jax.random.split(key, 4)
    x = jax.random.normal(kx, (N, inplanes, H, W), jnp.float32)   # NCHW like PyTorch

    # --- config A: stride=1, res_conv=True (1x1 residual conv) --------------------- #
    pA = make_params(kpa, inplanes, outplanes, stride=1, res_conv=True)
    outA, x2A = elastic_conv_block_forward(pA, x)
    outA, x2A = jax.block_until_ready((outA, x2A))
    refA, refx2A = reference_forward(pA, x)
    assert outA.shape == (N, outplanes, H, W)
    assert x2A.shape == (N, outplanes // 4, H, W)
    assert jnp.allclose(outA, refA, atol=2e-3, rtol=2e-3), "config A: out mismatch"
    assert jnp.allclose(x2A, refx2A, atol=2e-3, rtol=2e-3), "config A: x2 mismatch"

    # --- config B: identity residual (res_conv=False) with the x_t glue input ------ #
    pB = make_params(kpb, inplanes, outplanes, stride=1, res_conv=False)
    x_t = jax.random.normal(kt, (N, outplanes // 4, H, W), jnp.float32)
    outB = elastic_conv_block_forward(pB, x, x_t=x_t, return_x_2=False)
    outB = jax.block_until_ready(outB)
    refB, _ = reference_forward(pB, x, x_t=x_t)
    assert jnp.allclose(outB, refB, atol=2e-3, rtol=2e-3), "config B: out mismatch"

    # TODO(synk): drop_block / drop_path are None in this config (identity) and DynConv
    #             manipulate_width is a config-time width selection, not forward compute.
    print("KERNEL_OK")
</pallas_src>

<mosaic_0001>
module attributes {stable_mosaic.version = 11 : i64} {
  func.func @kernel(%arg0: i32, %arg1: memref<1x16x16x16xbf16, #tpu.memory_space<vmem>>, %arg2: memref<16x4xbf16, #tpu.memory_space<vmem>>, %arg3: memref<1x4xf32, #tpu.memory_space<vmem>>, %arg4: memref<1x4xf32, #tpu.memory_space<vmem>>, %arg5: memref<36x4xbf16, #tpu.memory_space<vmem>>, %arg6: memref<1x4xf32, #tpu.memory_space<vmem>>, %arg7: memref<1x4xf32, #tpu.memory_space<vmem>>, %arg8: memref<4x16xbf16, #tpu.memory_space<vmem>>, %arg9: memref<1x16xf32, #tpu.memory_space<vmem>>, %arg10: memref<1x16xf32, #tpu.memory_space<vmem>>, %arg11: memref<16x16xbf16, #tpu.memory_space<vmem>>, %arg12: memref<1x16xf32, #tpu.memory_space<vmem>>, %arg13: memref<1x16xf32, #tpu.memory_space<vmem>>, %arg14: memref<1x16x16x16xf32, #tpu.memory_space<vmem>>, %arg15: memref<1x16x16x4xf32, #tpu.memory_space<vmem>>, %arg16: memref<18x18x4xf32, #tpu.memory_space<vmem>>, %arg17: memref<256x36xf32, #tpu.memory_space<vmem>>) attributes {dimension_semantics = [#tpu.dimension_semantics<parallel>], iteration_bounds = array<i64: 2>, scalar_prefetch = 0 : i64, scratch_operands = 2 : i64, tpu.core_type = #tpu.core_type<tc>, window_params = [{transform_indices = @transform_0, window_bounds = array<i64: 1, 16, 16, 16>}, {pipeline_mode = #tpu.pipeline_mode<synchronous>, transform_indices = @transform_1, window_bounds = array<i64: 16, 4>}, {pipeline_mode = #tpu.pipeline_mode<synchronous>, transform_indices = @transform_2, window_bounds = array<i64: 1, 4>}, {pipeline_mode = #tpu.pipeline_mode<synchronous>, transform_indices = @transform_3, window_bounds = array<i64: 1, 4>}, {pipeline_mode = #tpu.pipeline_mode<synchronous>, transform_indices = @transform_4, window_bounds = array<i64: 36, 4>}, {pipeline_mode = #tpu.pipeline_mode<synchronous>, transform_indices = @transform_5, window_bounds = array<i64: 1, 4>}, {pipeline_mode = #tpu.pipeline_mode<synchronous>, transform_indices = @transform_6, window_bounds = array<i64: 1, 4>}, {pipeline_mode = #tpu.pipeline_mode<synchronous>, transform_indices = @transform_7, window_bounds = array<i64: 4, 16>}, {pipeline_mode = #tpu.pipeline_mode<synchronous>, transform_indices = @transform_8, window_bounds = array<i64: 1, 16>}, {pipeline_mode = #tpu.pipeline_mode<synchronous>, transform_indices = @transform_9, window_bounds = array<i64: 1, 16>}, {pipeline_mode = #tpu.pipeline_mode<synchronous>, transform_indices = @transform_10, window_bounds = array<i64: 16, 16>}, {pipeline_mode = #tpu.pipeline_mode<synchronous>, transform_indices = @transform_11, window_bounds = array<i64: 1, 16>}, {pipeline_mode = #tpu.pipeline_mode<synchronous>, transform_indices = @transform_12, window_bounds = array<i64: 1, 16>}, {transform_indices = @transform_13, window_bounds = array<i64: 1, 16, 16, 16>}, {transform_indices = @transform_14, window_bounds = array<i64: 1, 16, 16, 4>}]} {
    %c0 = arith.constant 0 : index
    %c0_0 = arith.constant 0 : index
    %c0_1 = arith.constant 0 : index
    %c0_2 = arith.constant 0 : index
    %0 = vector.load %arg1[%c0, %c0_0, %c0_1, %c0_2] : memref<1x16x16x16xbf16, #tpu.memory_space<vmem>>, vector<1x16x16x16xbf16>
    %1 = vector.shape_cast %0 : vector<1x16x16x16xbf16> to vector<16x16x16xbf16>
    %2 = vector.shape_cast %1 : vector<16x16x16xbf16> to vector<256x16xbf16>
    %c0_3 = arith.constant 0 : index
    %c0_4 = arith.constant 0 : index
    %3 = vector.load %arg2[%c0_3, %c0_4] : memref<16x4xbf16, #tpu.memory_space<vmem>>, vector<16x4xbf16>
    %cst = arith.constant dense<0.000000e+00> : vector<256x4xf32>
    %4 = tpu.matmul %2, %3, %cst {dimension_numbers = #tpu.dot_dimension_numbers<[1], [0], [0], [1], [0, 0, 1, 1], [], []>} : vector<256x16xbf16>, vector<16x4xbf16>, vector<256x4xf32> -> vector<256x4xf32>
    %c0_5 = arith.constant 0 : index
    %c0_6 = arith.constant 0 : index
    %5 = vector.load %arg3[%c0_5, %c0_6] : memref<1x4xf32, #tpu.memory_space<vmem>>, vector<1x4xf32>
    %6 = vector.broadcast %5 : vector<1x4xf32> to vector<256x4xf32>
    %7 = arith.mulf %4, %6 : vector<256x4xf32>
    %c0_7 = arith.constant 0 : index
    %c0_8 = arith.constant 0 : index
    %8 = vector.load %arg4[%c0_7, %c0_8] : memref<1x4xf32, #tpu.memory_space<vmem>>, vector<1x4xf32>
    %9 = vector.broadcast %8 : vector<1x4xf32> to vector<256x4xf32>
    %10 = arith.addf %7, %9 : vector<256x4xf32>
    %cst_9 = arith.constant 0.000000e+00 : f32
    %11 = vector.broadcast %cst_9 : f32 to vector<256x4xf32>
    %12 = arith.maximumf %10, %11 : vector<256x4xf32>
    %cst_10 = arith.constant 0.000000e+00 : f32
    %13 = vector.broadcast %cst_10 : f32 to vector<18x18x4xf32>
    %c0_11 = arith.constant 0 : index
    %c0_12 = arith.constant 0 : index
    %c0_13 = arith.constant 0 : index
    %14 = vector.load %arg16[%c0_11, %c0_12, %c0_13] : memref<18x18x4xf32, #tpu.memory_space<vmem>>, vector<18x18x4xf32>
    tpu.vector_store %arg16[%c0_11, %c0_12, %c0_13], %13 {strides = array<i32>} : memref<18x18x4xf32, #tpu.memory_space<vmem>>, vector<18x18x4xf32>,
    %15 = vector.shape_cast %12 : vector<256x4xf32> to vector<16x16x4xf32>
    %c1 = arith.constant 1 : index
    %c1_14 = arith.constant 1 : index
    %c0_15 = arith.constant 0 : index
    %16 = vector.load %arg16[%c1, %c1_14, %c0_15] : memref<18x18x4xf32, #tpu.memory_space<vmem>>, vector<16x16x4xf32>
    tpu.vector_store %arg16[%c1, %c1_14, %c0_15], %15 {strides = array<i32>} : memref<18x18x4xf32, #tpu.memory_space<vmem>>, vector<16x16x4xf32>,
    %c0_16 = arith.constant 0 : index
    %c0_17 = arith.constant 0 : index
    %c0_18 = arith.constant 0 : index
    %17 = vector.load %arg16[%c0_16, %c0_17, %c0_18] : memref<18x18x4xf32, #tpu.memory_space<vmem>>, vector<18x18x4xf32>
    %18 = vector.extract_strided_slice %17 {offsets = [0, 0, 0], sizes = [16, 16, 4], strides = [1, 1, 1]} : vector<18x18x4xf32> to vector<16x16x4xf32>
    %19 = vector.shape_cast %18 : vector<16x16x4xf32> to vector<256x4xf32>
    %c0_19 = arith.constant 0 : index
    %c0_20 = arith.constant 0 : index
    %20 = vector.load %arg17[%c0_19, %c0_20] : memref<256x36xf32, #tpu.memory_space<vmem>>, vector<256x4xf32>
    tpu.vector_store %arg17[%c0_19, %c0_20], %19 {strides = array<i32>} : memref<256x36xf32, #tpu.memory_space<vmem>>, vector<256x4xf32>,
    %21 = vector.extract_strided_slice %17 {offsets = [0, 1, 0], sizes = [16, 16, 4], strides = [1, 1, 1]} : vector<18x18x4xf32> to vector<16x16x4xf32>
    %22 = vector.shape_cast %21 : vector<16x16x4xf32> to vector<256x4xf32>
    %c0_21 = arith.constant 0 : index
    %c4 = arith.constant 4 : index
    %23 = vector.load %arg17[%c0_21, %c4] : memref<256x36xf32, #tpu.memory_space<vmem>>, vector<256x4xf32>
    tpu.vector_store %arg17[%c0_21, %c4], %22 {strides = array<i32>} : memref<256x36xf32, #tpu.memory_space<vmem>>, vector<256x4xf32>,
    %24 = vector.extract_strided_slice %17 {offsets = [0, 2, 0], sizes = [16, 16, 4], strides = [1, 1, 1]} : vector<18x18x4xf32> to vector<16x16x4xf32>
    %25 = vector.shape_cast %24 : vector<16x16x4xf32> to vector<256x4xf32>
    %c0_22 = arith.constant 0 : index
    %c8 = arith.constant 8 : index
    %26 = vector.load %arg17[%c0_22, %c8] : memref<256x36xf32, #tpu.memory_space<vmem>>, vector<256x4xf32>
    tpu.vector_store %arg17[%c0_22, %c8], %25 {strides = array<i32>} : memref<256x36xf32, #tpu.memory_space<vmem>>, vector<256x4xf32>,
    %27 = vector.extract_strided_slice %17 {offsets = [1, 0, 0], sizes = [16, 16, 4], strides = [1, 1, 1]} : vector<18x18x4xf32> to vector<16x16x4xf32>
    %28 = vector.shape_cast %27 : vector<16x16x4xf32> to vector<256x4xf32>
    %c0_23 = arith.constant 0 : index
    %c12 = arith.constant 12 : index
    %29 = vector.load %arg17[%c0_23, %c12] : memref<256x36xf32, #tpu.memory_space<vmem>>, vector<256x4xf32>
    tpu.vector_store %arg17[%c0_23, %c12], %28 {strides = array<i32>} : memref<256x36xf32, #tpu.memory_space<vmem>>, vector<256x4xf32>,
    %30 = vector.extract_strided_slice %17 {offsets = [1, 1, 0], sizes = [16, 16, 4], strides = [1, 1, 1]} : vector<18x18x4xf32> to vector<16x16x4xf32>
    %31 = vector.shape_cast %30 : vector<16x16x4xf32> to vector<256x4xf32>
    %c0_24 = arith.constant 0 : index
    %c16 = arith.constant 16 : index
    %32 = vector.load %arg17[%c0_24, %c16] : memref<256x36xf32, #tpu.memory_space<vmem>>, vector<256x4xf32>
    tpu.vector_store %arg17[%c0_24, %c16], %31 {strides = array<i32>} : memref<256x36xf32, #tpu.memory_space<vmem>>, vector<256x4xf32>,
    %33 = vector.extract_strided_slice %17 {offsets = [1, 2, 0], sizes = [16, 16, 4], strides = [1, 1, 1]} : vector<18x18x4xf32> to vector<16x16x4xf32>
    %34 = vector.shape_cast %33 : vector<16x16x4xf32> to vector<256x4xf32>
    %c0_25 = arith.constant 0 : index
    %c20 = arith.constant 20 : index
    %35 = vector.load %arg17[%c0_25, %c20] : memref<256x36xf32, #tpu.memory_space<vmem>>, vector<256x4xf32>
    tpu.vector_store %arg17[%c0_25, %c20], %34 {strides = array<i32>} : memref<256x36xf32, #tpu.memory_space<vmem>>, vector<256x4xf32>,
    %36 = vector.extract_strided_slice %17 {offsets = [2, 0, 0], sizes = [16, 16, 4], strides = [1, 1, 1]} : vector<18x18x4xf32> to vector<16x16x4xf32>
    %37 = vector.shape_cast %36 : vector<16x16x4xf32> to vector<256x4xf32>
    %c0_26 = arith.constant 0 : index
    %c24 = arith.constant 24 : index
    %38 = vector.load %arg17[%c0_26, %c24] : memref<256x36xf32, #tpu.memory_space<vmem>>, vector<256x4xf32>
    tpu.vector_store %arg17[%c0_26, %c24], %37 {strides = array<i32>} : memref<256x36xf32, #tpu.memory_space<vmem>>, vector<256x4xf32>,
    %39 = vector.extract_strided_slice %17 {offsets = [2, 1, 0], sizes = [16, 16, 4], strides = [1, 1, 1]} : vector<18x18x4xf32> to vector<16x16x4xf32>
    %40 = vector.shape_cast %39 : vector<16x16x4xf32> to vector<256x4xf32>
    %c0_27 = arith.constant 0 : index
    %c28 = arith.constant 28 : index
    %41 = vector.load %arg17[%c0_27, %c28] : memref<256x36xf32, #tpu.memory_space<vmem>>, vector<256x4xf32>
    tpu.vector_store %arg17[%c0_27, %c28], %40 {strides = array<i32>} : memref<256x36xf32, #tpu.memory_space<vmem>>, vector<256x4xf32>,
    %42 = vector.extract_strided_slice %17 {offsets = [2, 2, 0], sizes = [16, 16, 4], strides = [1, 1, 1]} : vector<18x18x4xf32> to vector<16x16x4xf32>
    %43 = vector.shape_cast %42 : vector<16x16x4xf32> to vector<256x4xf32>
    %c0_28 = arith.constant 0 : index
    %c32 = arith.constant 32 : index
    %44 = vector.load %arg17[%c0_28, %c32] : memref<256x36xf32, #tpu.memory_space<vmem>>, vector<256x4xf32>
    tpu.vector_store %arg17[%c0_28, %c32], %43 {strides = array<i32>} : memref<256x36xf32, #tpu.memory_space<vmem>>, vector<256x4xf32>,
    %c0_29 = arith.constant 0 : index
    %c0_30 = arith.constant 0 : index
    %45 = vector.load %arg17[%c0_29, %c0_30] : memref<256x36xf32, #tpu.memory_space<vmem>>, vector<256x36xf32>
    %c0_31 = arith.constant 0 : index
    %c0_32 = arith.constant 0 : index
    %46 = vector.load %arg5[%c0_31, %c0_32] : memref<36x4xbf16, #tpu.memory_space<vmem>>, vector<36x4xbf16>
    %47 = arith.extf %46 : vector<36x4xbf16> to vector<36x4xf32>
    %cst_33 = arith.constant dense<0.000000e+00> : vector<256x4xf32>
    %48 = tpu.matmul %45, %47, %cst_33 {dimension_numbers = #tpu.dot_dimension_numbers<[1], [0], [0], [1], [0, 0, 1, 1], [], []>} : vector<256x36xf32>, vector<36x4xf32>, vector<256x4xf32> -> vector<256x4xf32>
    %c0_34 = arith.constant 0 : index
    %c0_35 = arith.constant 0 : index
    %49 = vector.load %arg6[%c0_34, %c0_35] : memref<1x4xf32, #tpu.memory_space<vmem>>, vector<1x4xf32>
    %50 = vector.broadcast %49 : vector<1x4xf32> to vector<256x4xf32>
    %51 = arith.mulf %48, %50 : vector<256x4xf32>
    %c0_36 = arith.constant 0 : index
    %c0_37 = arith.constant 0 : index
    %52 = vector.load %arg7[%c0_36, %c0_37] : memref<1x4xf32, #tpu.memory_space<vmem>>, vector<1x4xf32>
    %53 = vector.broadcast %52 : vector<1x4xf32> to vector<256x4xf32>
    %54 = arith.addf %51, %53 : vector<256x4xf32>
    %cst_38 = arith.constant 0.000000e+00 : f32
    %55 = vector.broadcast %cst_38 : f32 to vector<256x4xf32>
    %56 = arith.maximumf %54, %55 : vector<256x4xf32>
    %57 = vector.shape_cast %56 : vector<256x4xf32> to vector<16x16x4xf32>
    %c0_39 = arith.constant 0 : index
    %c0_40 = arith.constant 0 : index
    %c0_41 = arith.constant 0 : index
    %c0_42 = arith.constant 0 : index
    %58 = vector.load %arg15[%c0_39, %c0_40, %c0_41, %c0_42] : memref<1x16x16x4xf32, #tpu.memory_space<vmem>>, vector<1x16x16x4xf32>
    %59 = vector.shape_cast %58 : vector<1x16x16x4xf32> to vector<16x16x4xf32>
    %60 = vector.shape_cast %57 : vector<16x16x4xf32> to vector<1x16x16x4xf32>
    tpu.vector_store %arg15[%c0_39, %c0_40, %c0_41, %c0_42], %60 {strides = array<i32>} : memref<1x16x16x4xf32, #tpu.memory_space<vmem>>, vector<1x16x16x4xf32>,
    %c0_43 = arith.constant 0 : index
    %c0_44 = arith.constant 0 : index
    %61 = vector.load %arg8[%c0_43, %c0_44] : memref<4x16xbf16, #tpu.memory_space<vmem>>, vector<4x16xbf16>
    %62 = arith.extf %61 : vector<4x16xbf16> to vector<4x16xf32>
    %cst_45 = arith.constant dense<0.000000e+00> : vector<256x16xf32>
    %63 = tpu.matmul %56, %62, %cst_45 {dimension_numbers = #tpu.dot_dimension_numbers<[1], [0], [0], [1], [0, 0, 1, 1], [], []>} : vector<256x4xf32>, vector<4x16xf32>, vector<256x16xf32> -> vector<256x16xf32>
    %c0_46 = arith.constant 0 : index
    %c0_47 = arith.constant 0 : index
    %64 = vector.load %arg9[%c0_46, %c0_47] : memref<1x16xf32, #tpu.memory_space<vmem>>, vector<1x16xf32>
    %65 = vector.broadcast %64 : vector<1x16xf32> to vector<256x16xf32>
    %66 = arith.mulf %63, %65 : vector<256x16xf32>
    %c0_48 = arith.constant 0 : index
    %c0_49 = arith.constant 0 : index
    %67 = vector.load %arg10[%c0_48, %c0_49] : memref<1x16xf32, #tpu.memory_space<vmem>>, vector<1x16xf32>
    %68 = vector.broadcast %67 : vector<1x16xf32> to vector<256x16xf32>
    %69 = arith.addf %66, %68 : vector<256x16xf32>
    %c0_50 = arith.constant 0 : index
    %c0_51 = arith.constant 0 : index
    %70 = vector.load %arg11[%c0_50, %c0_51] : memref<16x16xbf16, #tpu.memory_space<vmem>>, vector<16x16xbf16>
    %cst_52 = arith.constant dense<0.000000e+00> : vector<256x16xf32>
    %71 = tpu.matmul %2, %70, %cst_52 {dimension_numbers = #tpu.dot_dimension_numbers<[1], [0], [0], [1], [0, 0, 1, 1], [], []>} : vector<256x16xbf16>, vector<16x16xbf16>, vector<256x16xf32> -> vector<256x16xf32>
    %c0_53 = arith.constant 0 : index
    %c0_54 = arith.constant 0 : index
    %72 = vector.load %arg12[%c0_53, %c0_54] : memref<1x16xf32, #tpu.memory_space<vmem>>, vector<1x16xf32>
    %73 = vector.broadcast %72 : vector<1x16xf32> to vector<256x16xf32>
    %74 = arith.mulf %71, %73 : vector<256x16xf32>
    %c0_55 = arith.constant 0 : index
    %c0_56 = arith.constant 0 : index
    %75 = vector.load %arg13[%c0_55, %c0_56] : memref<1x16xf32, #tpu.memory_space<vmem>>, vector<1x16xf32>
    %76 = vector.broadcast %75 : vector<1x16xf32> to vector<256x16xf32>
    %77 = arith.addf %74, %76 : vector<256x16xf32>
    %78 = arith.addf %69, %77 : vector<256x16xf32>
    %cst_57 = arith.constant 0.000000e+00 : f32
    %79 = vector.broadcast %cst_57 : f32 to vector<256x16xf32>
    %80 = arith.maximumf %78, %79 : vector<256x16xf32>
    %81 = vector.shape_cast %80 : vector<256x16xf32> to vector<16x16x16xf32>
    %c0_58 = arith.constant 0 : index
    %c0_59 = arith.constant 0 : index
    %c0_60 = arith.constant 0 : index
    %c0_61 = arith.constant 0 : index
    %82 = vector.load %arg14[%c0_58, %c0_59, %c0_60, %c0_61] : memref<1x16x16x16xf32, #tpu.memory_space<vmem>>, vector<1x16x16x16xf32>
    %83 = vector.shape_cast %82 : vector<1x16x16x16xf32> to vector<16x16x16xf32>
    %84 = vector.shape_cast %81 : vector<16x16x16xf32> to vector<1x16x16x16xf32>
    tpu.vector_store %arg14[%c0_58, %c0_59, %c0_60, %c0_61], %84 {strides = array<i32>} : memref<1x16x16x16xf32, #tpu.memory_space<vmem>>, vector<1x16x16x16xf32>,
    return
  }
  func.func @transform_0(%arg0: i32) -> (i32, i32, i32, i32) {
    %c0_i32 = arith.constant 0 : i32
    %c0_i32_0 = arith.constant 0 : i32
    %c0_i32_1 = arith.constant 0 : i32
    %c0_i32_2 = arith.constant 0 : i32
    return %arg0, %c0_i32, %c0_i32_0, %c0_i32_1 : i32, i32, i32, i32
  }
  func.func @transform_1(%arg0: i32) -> (i32, i32) {
    %c0_i32 = arith.constant 0 : i32
    %c0_i32_0 = arith.constant 0 : i32
    %c0_i32_1 = arith.constant 0 : i32
    return %c0_i32, %c0_i32_0 : i32, i32
  }
  func.func @transform_2(%arg0: i32) -> (i32, i32) {
    %c0_i32 = arith.constant 0 : i32
    %c0_i32_0 = arith.constant 0 : i32
    %c0_i32_1 = arith.constant 0 : i32
    return %c0_i32, %c0_i32_0 : i32, i32
  }
  func.func @transform_3(%arg0: i32) -> (i32, i32) {
    %c0_i32 = arith.constant 0 : i32
    %c0_i32_0 = arith.constant 0 : i32
    %c0_i32_1 = arith.constant 0 : i32
    return %c0_i32, %c0_i32_0 : i32, i32
  }
  func.func @transform_4(%arg0: i32) -> (i32, i32) {
    %c0_i32 = arith.constant 0 : i32
    %c0_i32_0 = arith.constant 0 : i32
    %c0_i32_1 = arith.constant 0 : i32
    return %c0_i32, %c0_i32_0 : i32, i32
  }
  func.func @transform_5(%arg0: i32) -> (i32, i32) {
    %c0_i32 = arith.constant 0 : i32
    %c0_i32_0 = arith.constant 0 : i32
    %c0_i32_1 = arith.constant 0 : i32
    return %c0_i32, %c0_i32_0 : i32, i32
  }
  func.func @transform_6(%arg0: i32) -> (i32, i32) {
    %c0_i32 = arith.constant 0 : i32
    %c0_i32_0 = arith.constant 0 : i32
    %c0_i32_1 = arith.constant 0 : i32
    return %c0_i32, %c0_i32_0 : i32, i32
  }
  func.func @transform_7(%arg0: i32) -> (i32, i32) {
    %c0_i32 = arith.constant 0 : i32
    %c0_i32_0 = arith.constant 0 : i32
    %c0_i32_1 = arith.constant 0 : i32
    return %c0_i32, %c0_i32_0 : i32, i32
  }
  func.func @transform_8(%arg0: i32) -> (i32, i32) {
    %c0_i32 = arith.constant 0 : i32
    %c0_i32_0 = arith.constant 0 : i32
    %c0_i32_1 = arith.constant 0 : i32
    return %c0_i32, %c0_i32_0 : i32, i32
  }
  func.func @transform_9(%arg0: i32) -> (i32, i32) {
    %c0_i32 = arith.constant 0 : i32
    %c0_i32_0 = arith.constant 0 : i32
    %c0_i32_1 = arith.constant 0 : i32
    return %c0_i32, %c0_i32_0 : i32, i32
  }
  func.func @transform_10(%arg0: i32) -> (i32, i32) {
    %c0_i32 = arith.constant 0 : i32
    %c0_i32_0 = arith.constant 0 : i32
    %c0_i32_1 = arith.constant 0 : i32
    return %c0_i32, %c0_i32_0 : i32, i32
  }
  func.func @transform_11(%arg0: i32) -> (i32, i32) {
    %c0_i32 = arith.constant 0 : i32
    %c0_i32_0 = arith.constant 0 : i32
    %c0_i32_1 = arith.constant 0 : i32
    return %c0_i32, %c0_i32_0 : i32, i32
  }
  func.func @transform_12(%arg0: i32) -> (i32, i32) {
    %c0_i32 = arith.constant 0 : i32
    %c0_i32_0 = arith.constant 0 : i32
    %c0_i32_1 = arith.constant 0 : i32
    return %c0_i32, %c0_i32_0 : i32, i32
  }
  func.func @transform_13(%arg0: i32) -> (i32, i32, i32, i32) {
    %c0_i32 = arith.constant 0 : i32
    %c0_i32_0 = arith.constant 0 : i32
    %c0_i32_1 = arith.constant 0 : i32
    %c0_i32_2 = arith.constant 0 : i32
    return %arg0, %c0_i32, %c0_i32_0, %c0_i32_1 : i32, i32, i32, i32
  }
  func.func @transform_14(%arg0: i32) -> (i32, i32, i32, i32) {
    %c0_i32 = arith.constant 0 : i32
    %c0_i32_0 = arith.constant 0 : i32
    %c0_i32_1 = arith.constant 0 : i32
    %c0_i32_2 = arith.constant 0 : i32
    return %arg0, %c0_i32, %c0_i32_0, %c0_i32_1 : i32, i32, i32, i32
  }
}

</mosaic_0001>

<bundles_post_ra>
// kernel: tpu_custom_call.1
= control target key start
LH: loop header
LB: loop body
LE: loop exit
PB: predicated region body
PF: predicated region fallthrough
CT: control target
= control target key end

     0   :  { %s5884_s0 = inlined_call_operand.hbm [shape: bf16[2,16,16,16], index: 0, kind: input, shape index: {}]   ;;  %s5885_s1 = inlined_call_operand.vmem [shape: bf16[16,4], index: 1, kind: input, shape index: {}]   ;;  %s5886_s2 = inlined_call_operand.vmem [shape: f32[1,4], index: 2, kind: input, shape index: {}]   ;;  %s5887_s3 = inlined_call_operand.vmem [shape: f32[1,4], index: 3, kind: input, shape index: {}]   ;;  %s5888_s4 = inlined_call_operand.vmem [shape: bf16[36,4], index: 4, kind: input, shape index: {}]   ;;  %s5889_s5 = inlined_call_operand.vmem [shape: f32[1,4], index: 5, kind: input, shape index: {}]   ;;  %s5890_s6 = inlined_call_operand.vmem [shape: f32[1,4], index: 6, kind: input, shape index: {}]   ;;  %s5891_s7 = inlined_call_operand.vmem [shape: bf16[4,16], index: 7, kind: input, shape index: {}]   ;;  %s5892_s8 = inlined_call_operand.vmem [shape: f32[1,16], index: 8, kind: input, shape index: {}]   ;;  %s5893_s9 = inlined_call_operand.vmem [shape: f32[1,16], index: 9, kind: input, shape index: {}]   ;;  %s5894_s10 = inlined_call_operand.vmem [shape: bf16[16,16], index: 10, kind: input, shape index: {}]   ;;  %s5895_s11 = inlined_call_operand.vmem [shape: f32[1,16], index: 11, kind: input, shape index: {}]   ;;  %s5896_s12 = inlined_call_operand.vmem [shape: f32[1,16], index: 12, kind: input, shape index: {}]   ;;  %s5897_s13 = inlined_call_operand.hbm [shape: f32[2,16,16,16], index: 13, kind: output, shape index: {0}]   ;;  %s5898_s14 = inlined_call_operand.vmem [shape: f32[2,16,16,4], index: 14, kind: output, shape index: {1}]  }
   0x1   :  { %5908 = sst [smem:[#allocation16_spill]] %s5884_s0 }
   0x2   :  { %5909 = sst [smem:[#allocation17_spill]] %s5885_s1 }
   0x3   :  { %5910 = sst [smem:[#allocation18_spill]] %s5893_s9 }
   0x4   :  { %5911 = sst [smem:[#allocation19_spill]] %s5897_s13 }
   0x5   :  { %20 = vsyncpa [#allocation5], 0 }
   0x6   :  { %22 = vsyncpa [#allocation5 + $0x1], 0 }
   0x7   :  { %23 = vsyncpa [#allocation6], 0 }
   0x8   :  { %25 = vsyncpa [#allocation6 + $0x1], 0  ;;  %s3864_s29 = smov 0   ;;  %s3866_s30 = smov 0  }
   0x9   :  { %s3868_s15 = smov 0   ;;  %s3870_s16 = smov 0  }
   0xa LB: > { %5912 = sst [smem:[#allocation10_spill]] %s3763_s29  ;;  %s3885_s17 = sadd.s32 4294967295, %s3775_s16   ;;  %s3775_s16 = sphi %s3870_s16, %s5931_s16   ;;  %s3771_s15 = sphi %s3868_s15, %s5933_s15   ;;  %s3767_s30 = sphi %s3866_s30, %s5935_s30   ;;  %s3763_s29 = sphi %s3864_s29, %s5934_s29  }
   0xb   : > { %5913 = sst [smem:[#allocation11_spill]] %s3771_s15  ;;  %s3372_s18 = sadd.s32 4294967294, %s3775_s16  }
   0xc   : > { %s3889_s19 = sadd.s32 1, %s3775_s16   ;;  %s38_s20 = sadd.s32 1, %s3771_s15 }
   0xd   : > { %5914 = sst [smem:[#allocation12_spill]] %s3889_s19  ;;  %s35_s21 = ssub.s32 %s3775_s16, %s3889_s19 }
   0xe   : > { %p45_p0 = scmp.ne.s32.totalorder %s3771_s15, %s3767_s30  ;;  %p36_p1 = scmp.eq.s32.totalorder %s35_s21, 0 }
   0xf   : > { %p46_p2 = scmp.eq.s32.totalorder %s3775_s16, 0  ;;  %p51_p3 = scmp.ne.s32.totalorder %s3767_s30, %s3763_s29 }
  0x10   : > { %p52_p4 = scmp.eq.s32.totalorder %s3885_s17, 0  ;;  %p327_p7 = scmp.eq.s32.totalorder %s3885_s17, 1 }
  0x11   : > { %s3901_s22 = scalar_select %p36_p1, %s3771_s15, %s38_s20  }
  0x12   : > { %p3903_p5 = por %p46_p2, %p45_p0  ;;  %p3907_p6 = por %p52_p4, %p51_p3 }
  0x13   : > { %5915 = sst [smem:[#allocation13_spill]] %s3901_s22  ;;  %p333_p8 = scmp.eq.s32.totalorder %s3372_s18, 1 }
  0x14   : > { %p3600_p10 = scmp.lt.s32.totalorder %s3775_s16, 2  ;;  %p3914_p11 = por %p327_p7, %p45_p0 }
  0x15   : > { %p3918_p12 = por %p333_p8, %p51_p3  ;;  %s415_s27 = sand.u32 1, %s3771_s15  }
  0x16   : > { %s5918_s25 = scalar_select %p3914_p11, 1, 0 }
  0x17   : > { %s5920_s26 = scalar_select %p3918_p12, 1, 0 }
  0x18   : > { %5919 = sst [smem:[#allocation14_spill]] %s5918_s25  ;;  %s3558_s28 = sshll.u32 %s3775_s16, 7 }
  0x19   : > { %5921 = sst [smem:[#allocation15_spill]] %s5920_s26  ;;  %s3375_s20 = sshll.u32 %s415_s27, 7 }
  0x1a   : > { %s5922_s0 = sld [smem:[#allocation16_spill]]  ;;  %s419_s18 = scalar_lea.vmem [#allocation4], %s3375_s20 }
  0x1b   : > { %s427_s13 = sshll.u32 %s419_s18, 4  ;;  %p3929_p13 = pnand %p3600_p10, %p3903_p5  ;;  %s428_s13 = int_to_ptr.vmem [resolvable:$true] %s427_s13 }
  0x1c   : > { %p3378_p0 = scmp.ge.s32.totalorder %s3775_s16, 1  ;;  %p435_p1 = scmp.lt.s32.totalorder %s3775_s16, 3 }
  0x1d   : > { %s416_s15 = scalar_lea.sflag [#allocation5], %s415_s27  ;;  %p3683_p3 = pneg %p3929_p13 }
  0x20   : > { %s424_s19 = scalar_lea.hbm %s5922_s0, %s3558_s28  ;;  %s3686_s23 = scalar_lea.hbm %s5922_s0, 256 }
  0x21   : > { %s425_s29 = sshll.u32 %s424_s19, 4  ;;  %s426_s29 = int_to_ptr.hbm [resolvable:$true] %s425_s29 }
  0x22   : > { %s3679_s26 = sshra.s32 %s426_s29, 4  ;;  %s3680_s26 = int_to_ptr.hbm [resolvable:$true] %s3679_s26 }
  0x23   : > { %s3681_s25 = scalar_lea.hbm %s3680_s26, 128  ;;  %p3687_p5 = scmp.lt.s32.totalorder %s3680_s26, %s5922_s0 }
  0x24   : > { %p3682_p2 = scmp.ne.s32.totalorder %s3680_s26, %s3681_s25  ;;  %p3688_p8 = scmp.lt.s32.totalorder %s3686_s23, %s3681_s25 }
  0x26   : > { %p3684_p4 = pnand %p3683_p3, %p3682_p2  ;;  %p3689_p10 = por %p3688_p8, %p3687_p5 }
  0x28   : > { %p3685_p7 = pneg %p3684_p4 }
  0x2a   : > { %p3690_p9 = pnand %p3689_p10, %p3685_p7 }
  0x2c   : > { %3693 = shalt.err (!%p3690_p9)
}
  0x2d   : > { %s3777_s27 = smov 64   ;;  %s3778_s21 = smov 4  }
  0x2e   : > { %3595 = dma.hbm_to_vmem [thread:$0]  (!%p3929_p13), %s426_s29, 2048, %s428_s13, %s416_s15, %s3777_s27, %s3777_s27, %s3778_s21  }
  0x2f   : > { %p436_p2 = pnand %p3378_p0, %p435_p1 }
  0x30   : > { %s3950_s18 = sand.u32 (!%p436_p2), 1, %s3767_s30  }
  0x31   : > { %439 = sbr.rel (%p436_p2) target bundleno = 1282 (0x502), region = 72  ;;  %s3379_s25 = sshll.u32 (!%p436_p2), %s3950_s18, 7 }
  0x32   : > { %s442_s26 = scalar_lea.sflag (!%p436_p2), [#allocation5], %s3950_s18  ;;  %s3954_s19 = scalar_lea.vmem (!%p436_p2), [#allocation4], %s3379_s25 }
  0x36   : > { %3754 = dma.done.wait (%p3907_p6), %s442_s26, 2048  }
  0x37   : > { %3756 = vsyncadd (%p3907_p6), %s442_s26, 4294965248  ;;  %s5924_s1 = sld [smem:[#allocation17_spill]]  ;;  %v3560_v1 = vld [vmem:[%s3954_s19] sm:$0xff]  ;;  %vm622_vm0 = vcmask 130048   ;;  %v3561_v2 = vld [vmem:[%s3954_s19 + $0x8] sm:$0xff]  ;;  %vm864_vm1 = vcmask 31744  }
  0x38   : > { %v3779_v3 = vmov 0.0   ;;  %vm1087_vm2 = vcmask 1046528   ;;  %v3562_v8 = vld [vmem:[%s3954_s19 + $0x10] sm:$0xff]  ;;  %s3780_s29 = smov 4   ;;  %v3563_v10 = vld [vmem:[%s3954_s19 + $0x18] sm:$0xff]  ;;  %vm867_vm3 = vcmask 25600  }
  0x39   : > { %865 = vst.msk [vmem:[#allocation2] sm:$0xff] %vm864_vm1, %v3779_v3  ;;  %vm1297_vm4 = vcmask 1045504   ;;  %s3781_s15 = smov 8   ;;  %v3564_v19 = vld [vmem:[%s3954_s19 + $0x20] sm:$0xff]  ;;  %v4104_v20 = vld [vmem:[%s5886_s2] ss:$0 sm:$0xff] }
  0x3a   : > { %866 = vst.msk [vmem:[#allocation2 + $0x8] sm:$0xff] %vm864_vm1, %v3779_v3  ;;  %v4109_v21 = vld [vmem:[%s5887_s3] ss:$0 sm:$0xff]  ;;  %s3782_s20 = smov 12   ;;  %s3783_s27 = smov 16   ;;  %v3565_v44 = vld [vmem:[%s3954_s19 + $0x28] sm:$0xff] }
  0x3b   : > { %869 = vst.msk [vmem:[#allocation2 + $0x18] sm:$0xff] %vm864_vm1, %v3779_v3  ;;  %s3784_s21 = smov 20   ;;  %s3785_s25 = smov 24   ;;  %vm1264_vm5 = vcmask 64544   ;;  %vm1474_vm6 = vcmask 97344   ;;  %vm1605_vm7 = vcmask 130144  }
  0x3c   : > { %870 = vst.msk [vmem:[#allocation2 + $0x20] sm:$0xff] %vm864_vm1, %v3779_v3  ;;  %s3786_s26 = smov 28   ;;  %s3787_s9 = smov 32   ;;  %vm1740_vm8 = vcmask 162944   ;;  %vm1874_vm9 = vcmask 195744   ;;  %vm2005_vm10 = vcmask 228544  }
  0x3d   : > { %v3576_v0 = vld [vmem:[%s5924_s1] sm:$0xff]  ;;  %872 = vst.msk [vmem:[#allocation2 + $0x30] sm:$0xff] %vm864_vm1, %v3779_v3  ;;  %vm2140_vm11 = vcmask 261344   ;;  %vm2446_vm12 = vcmask 1043456   ;;  %vm2274_vm13 = vcmask 294144   ;;  %vm2349_vm14 = vcmask 293888  }
  0x3e   : > { %678 = vmatpush.bf16.msra.mxu0 %v3576_v0  ;;  %873 = vst.msk [vmem:[#allocation2 + $0x38] sm:$0xff] %vm864_vm1, %v3779_v3  ;;  %p496_p6 = scmp.lt.s32.totalorder %s3885_s17, 1  ;;  %s5925_s13 = sld [smem:[#allocation18_spill]] }
  0x3f   : > { %875 = vst.msk [vmem:[#allocation2 + $0x48] sm:$0xff] %vm864_vm1, %v3779_v3  ;;  %s3380_s22 = sshll.u32 %s3950_s18, 8 }
  0x40   : > { %v3981_v4 = vld [vmem:[#allocation2] sm:$0xff]  ;;  %876 = vst.msk [vmem:[#allocation2 + $0x50] sm:$0xff] %vm864_vm1, %v3779_v3  ;;  %s497_s24 = scalar_select %p496_p6, %s3885_s17, 1 }
  0x41   : > { %3451 = vmatmul.msk.bf16.vlgmr.msra.gmra.mxu0 %vm622_vm0, %v3560_v1  ;;  %v3985_v5 = vld [vmem:[#allocation2 + $0x8] sm:$0xff]  ;;  %v1088_v6 = vrot.slane %v3981_v4, 1  ;;  %878 = vst.msk [vmem:[#allocation2 + $0x60] sm:$0xff] %vm864_vm1, %v3779_v3  ;;  %v1298_v17 = vrot.slane %v3981_v4, 2 }
  0x42   : > { %v1089_v7 = vrot.slane %v3985_v5, 1  ;;  %879 = vst.msk [vmem:[#allocation2 + $0x68] sm:$0xff] %vm864_vm1, %v3779_v3  ;;  %v1299_v14 = vrot.slane %v3985_v5, 2  ;;  %s3559_s28 = sshll.u32 %s497_s24, 8 }
  0x43   : > { %881 = vst.msk [vmem:[#allocation2 + $0x78] sm:$0xff] %vm864_vm1, %v3779_v3  ;;  %s4834_s23 = scalar_lea.vmem %s5898_s14, %s3559_s28 }
  0x44   : > { %v1090_v9 = vsel %vm1087_vm2, %v1088_v6, %v1089_v7  ;;  %882 = vst.msk [vmem:[#allocation2 + $0x80] sm:$0xff] %vm864_vm1, %v3779_v3  ;;  %v1300_v18 = vsel %vm1297_vm4, %v1298_v17, %v1299_v14 }
  0x45   : > { %1168 = vrot.lane.b32.xlu0 %v1090_v9, %s3780_s29  ;;  %884 = vst.msk [vmem:[#allocation2 + $0x90] sm:$0xff] %vm864_vm1, %v3779_v3  ;;  %1378 = vrot.lane.b32.xlu2 %v1300_v18, %s3781_s15 }
  0x46   : > { %885 = vst.msk [vmem:[#allocation2 + $0x98] sm:$0xff] %vm864_vm1, %v3779_v3 }
  0x47   : > { %887 = vst.msk [vmem:[#allocation2 + $0xa8] sm:$0xff] %vm864_vm1, %v3779_v3 }
  0x48   : > { %888 = vst.msk [vmem:[#allocation2 + $0xb0] sm:$0xff] %vm864_vm1, %v3779_v3 }
  0x49   : > { %890 = vst.msk [vmem:[#allocation2 + $0xc0] sm:$0xff] %vm864_vm1, %v3779_v3 }
  0x4a   : > { %891 = vst.msk [vmem:[#allocation2 + $0xc8] sm:$0xff] %vm864_vm1, %v3779_v3 }
  0x4b   : > { %893 = vst.msk [vmem:[#allocation2 + $0xd8] sm:$0xff] %vm864_vm1, %v3779_v3 }
  0x4c   : > { %894 = vst.msk [vmem:[#allocation2 + $0xe0] sm:$0xff] %vm864_vm1, %v3779_v3 }
  0x4d   : > { %896 = vst.msk [vmem:[#allocation2 + $0xf0] sm:$0xff] %vm864_vm1, %v3779_v3 }
  0x4e   : > { %897 = vst.msk [vmem:[#allocation2 + $0xf8] sm:$0xff] %vm864_vm1, %v3779_v3 }
  0x4f   : > { %899 = vst.msk [vmem:[#allocation2 + $0x108] sm:$0xff] %vm864_vm1, %v3779_v3 }
  0x50   : > { %900 = vst.msk [vmem:[#allocation2 + $0x110] sm:$0xff] %vm864_vm1, %v3779_v3 }
  0x51   : > { %3452 = vmatmul.msk.bf16.gmra.mxu0 %vm622_vm0, %v3561_v2  ;;  %902 = vst.msk [vmem:[#allocation2 + $0x120] sm:$0xff] %vm864_vm1, %v3779_v3 }
  0x52   : > { %903 = vst.msk [vmem:[#allocation2 + $0x128] sm:$0xff] %vm864_vm1, %v3779_v3 }
  0x53   : > { %905 = vst.msk [vmem:[#allocation2 + $0x138] sm:$0xff] %vm864_vm1, %v3779_v3 }
  0x54   : > { %906 = vst.msk [vmem:[#allocation2 + $0x140] sm:$0xff] %vm864_vm1, %v3779_v3 }
  0x55   : > { %908 = vst.msk [vmem:[#allocation2 + $0x150] sm:$0xff] %vm864_vm1, %v3779_v3 }
  0x56   : > { %909 = vst.msk [vmem:[#allocation2 + $0x158] sm:$0xff] %vm864_vm1, %v3779_v3 }
  0x57   : > { %911 = vst.msk [vmem:[#allocation2 + $0x168] sm:$0xff] %vm864_vm1, %v3779_v3 }
  0x58   : > { %912 = vst.msk [vmem:[#allocation2 + $0x170] sm:$0xff] %vm864_vm1, %v3779_v3 }
  0x59   : > { %914 = vst.msk [vmem:[#allocation2 + $0x180] sm:$0xff] %vm864_vm1, %v3779_v3 }
  0x5a   : > { %915 = vst.msk [vmem:[#allocation2 + $0x188] sm:$0xff] %vm864_vm1, %v3779_v3 }
  0x5b   : > { %917 = vst.msk [vmem:[#allocation2 + $0x198] sm:$0xff] %vm864_vm1, %v3779_v3 }
  0x5c   : > { %918 = vst.msk [vmem:[#allocation2 + $0x1a0] sm:$0xff] %vm864_vm1, %v3779_v3 }
  0x5d   : > { %1007 = vst.msk [vmem:[#allocation3] sm:$0xff] %vm864_vm1, %v3981_v4 }
  0x5e   : > { %1008 = vst.msk [vmem:[#allocation3 + $0x8] sm:$0xff] %vm864_vm1, %v3985_v5 }
  0x5f   : > { %868 = vst.msk [vmem:[#allocation2 + $0x10] sm:$0x3] %vm867_vm3, %v3779_v3 }
  0x60   : > { %871 = vst.msk [vmem:[#allocation2 + $0x28] sm:$0x3] %vm867_vm3, %v3779_v3 }
  0x61   : > { %3453 = vmatmul.msk.bf16.gmra.mxu0 %vm622_vm0, %v3562_v8  ;;  %874 = vst.msk [vmem:[#allocation2 + $0x40] sm:$0x3] %vm867_vm3, %v3779_v3 }
  0x62   : > { %877 = vst.msk [vmem:[#allocation2 + $0x58] sm:$0x3] %vm867_vm3, %v3779_v3 }
  0x63   : > { %880 = vst.msk [vmem:[#allocation2 + $0x70] sm:$0x3] %vm867_vm3, %v3779_v3 }
  0x64   : > { %883 = vst.msk [vmem:[#allocation2 + $0x88] sm:$0x3] %vm867_vm3, %v3779_v3 }
  0x65   : > { %886 = vst.msk [vmem:[#allocation2 + $0xa0] sm:$0x3] %vm867_vm3, %v3779_v3 }
  0x66   : > { %v955_v11 = vld [vmem:[#allocation2 + $0x10] sm:$0x3]  ;;  %889 = vst.msk [vmem:[#allocation2 + $0xb8] sm:$0x3] %vm867_vm3, %v3779_v3 }
  0x67   : > { %v1091_v12 = vrot.slane %v955_v11, 1  ;;  %892 = vst.msk [vmem:[#allocation2 + $0xd0] sm:$0x3] %vm867_vm3, %v3779_v3  ;;  %v1301_v15 = vrot.slane %v955_v11, 2 }
  0x68   : > { %895 = vst.msk [vmem:[#allocation2 + $0xe8] sm:$0x3] %vm867_vm3, %v3779_v3 }
  0x69   : > { %v1092_v13 = vsel %vm1087_vm2, %v1089_v7, %v1091_v12  ;;  %898 = vst.msk [vmem:[#allocation2 + $0x100] sm:$0x3] %vm867_vm3, %v3779_v3  ;;  %v1302_v16 = vsel %vm1297_vm4, %v1299_v14, %v1301_v15  ;;  %v3566_v12 = vld [vmem:[%s3954_s19 + $0x30] sm:$0xff] }
  0x6a   : > { %1170 = vrot.lane.b32.xlu0 %v1092_v13, %s3780_s29  ;;  %901 = vst.msk [vmem:[#allocation2 + $0x118] sm:$0x3] %vm867_vm3, %v3779_v3 }
  0x6b   : > { %904 = vst.msk [vmem:[#allocation2 + $0x130] sm:$0x3] %vm867_vm3, %v3779_v3 }
  0x6c   : > { %907 = vst.msk [vmem:[#allocation2 + $0x148] sm:$0x3] %vm867_vm3, %v3779_v3 }
  0x6d   : > { %910 = vst.msk [vmem:[#allocation2 + $0x160] sm:$0x3] %vm867_vm3, %v3779_v3 }
  0x6e   : > { %913 = vst.msk [vmem:[#allocation2 + $0x178] sm:$0x3] %vm867_vm3, %v3779_v3 }
  0x6f   : > { %916 = vst.msk [vmem:[#allocation2 + $0x190] sm:$0x3] %vm867_vm3, %v3779_v3 }
  0x70   : > { %919 = vst.msk [vmem:[#allocation2 + $0x1a8] sm:$0x3] %vm867_vm3, %v3779_v3 }
  0x71   : > { %3454 = vmatmul.msk.bf16.gmra.mxu0 %vm622_vm0, %v3563_v10 }
  0x72   : > { %1380 = vrot.lane.b32.xlu0 %v1302_v16, %s3781_s15 }
  0x81   : > { %3455 = vmatmul.msk.bf16.gmra.mxu0 %vm622_vm0, %v3564_v19 }
  0x91   : > { %3456 = vmatmul.msk.bf16.gmra.mxu0 %vm622_vm0, %v3565_v44  ;;  %v3569_v44 = vld [vmem:[%s3954_s19 + $0x48] sm:$0xff] }
  0x9f   : > { %v1379_v16 = vpop.permute.xlu2 %1378 }
  0xa1   : > { %3457 = vmatmul.msk.bf16.gmra.mxu0 %vm622_vm0, %v3566_v12 }
  0xb7   : > { %v1169_v11 = vpop.permute.xlu0 %1168 }
  0xb8   : > { %1265 = vst.msk [vmem:[#allocation3] sm:$0xff] %vm1264_vm5, %v1169_v11 }
  0xb9   : > { %1475 = vst.msk [vmem:[#allocation3] sm:$0xff] %vm1474_vm6, %v1379_v16 }
  0xbe   : > { %v680_v22 = vpop.f32.mrf.mxu0 }
  0xbf   : > { %v764_v23 = vmul.f32 %v4104_v20, %v680_v22 }
  0xc1   : > { %v800_v24 = vadd.f32 %v4109_v21, %v764_v23 }
  0xc3   : > { %v832_v25 = vmax.f32 %v800_v24, 0.0 }
  0xc5   : > { %921 = vst.msk [vmem:[#allocation2 + $0x19] sm:$0xff] %vm864_vm1, %v832_v25 }
  0xc6   : > { %v682_v26 = vpop.f32.mrf.mxu0 }
  0xc7   : > { %v765_v27 = vmul.f32 %v4104_v20, %v682_v26 }
  0xc9   : > { %v801_v28 = vadd.f32 %v4109_v21, %v765_v27 }
  0xcb   : > { %v833_v29 = vmax.f32 %v801_v28, 0.0 }
  0xcc   : > { %v956_v30 = vld [vmem:[#allocation2 + $0x18] sm:$0xff] }
  0xcd   : > { %922 = vst.msk [vmem:[#allocation2 + $0x21] sm:$0xff] %vm864_vm1, %v833_v29  ;;  %1509 = vrot.lane.b32.xlu1 %v956_v30, %s3782_s20  ;;  %v1093_v36 = vrot.slane %v956_v30, 1  ;;  %v1303_v57 = vrot.slane %v956_v30, 2  ;;  %v3567_v29 = vld [vmem:[%s3954_s19 + $0x38] sm:$0xff] }
  0xce   : > { %1009 = vst.msk [vmem:[#allocation3 + $0x10] sm:$0xff] %vm864_vm1, %v956_v30  ;;  %v685_v31 = vpop.f32.mrf.mxu0  ;;  %3458 = vmatmul.msk.bf16.gmra.mxu0 %vm622_vm0, %v3567_v29 }
  0xcf   : > { %v766_v32 = vmul.f32 %v4104_v20, %v685_v31 }
  0xd1   : > { %v802_v33 = vadd.f32 %v4109_v21, %v766_v32 }
  0xd3   : > { %v834_v34 = vmax.f32 %v802_v33, 0.0 }
  0xd4   : > { %v957_v35 = vld [vmem:[#allocation2 + $0x20] sm:$0xff]  ;;  %v958_v38 = vld [vmem:[#allocation2 + $0x28] sm:$0x3] }
  0xd5   : > { %923 = vst.msk [vmem:[#allocation2 + $0x31] sm:$0xff] %vm864_vm1, %v834_v34  ;;  %1511 = vrot.lane.b32.xlu2 %v957_v35, %s3782_s20  ;;  %v1094_v37 = vrot.slane %v957_v35, 1  ;;  %v1304_v42 = vrot.slane %v957_v35, 2  ;;  %v1306_v43 = vrot.slane %v958_v38, 2  ;;  %v1096_v47 = vrot.slane %v958_v38, 1  ;;  %v3568_v38 = vld [vmem:[%s3954_s19 + $0x40] sm:$0xff] }
  0xd6   : > { %1010 = vst.msk [vmem:[#allocation3 + $0x18] sm:$0xff] %vm864_vm1, %v957_v35  ;;  %v687_v39 = vpop.f32.mrf.mxu0 }
  0xd7   : > { %v767_v40 = vmul.f32 %v4104_v20, %v687_v39  ;;  %v1095_v41 = vsel %vm1087_vm2, %v1093_v36, %v1094_v37  ;;  %v1307_v48 = vsel %vm1297_vm4, %v1304_v42, %v1306_v43  ;;  %v1097_v51 = vsel %vm1087_vm2, %v1094_v37, %v1096_v47 }
  0xd8   : > { %1644 = vrot.lane.b32.xlu0 %v1095_v41, %s3783_s27  ;;  %1172 = vrot.lane.b32.xlu1 %v1095_v41, %s3780_s29  ;;  %v1305_v60 = vsel %vm1297_vm4, %v1303_v57, %v1304_v42 }
  0xd9   : > { %v803_v45 = vadd.f32 %v4109_v21, %v767_v40 }
  0xdb   : > { %v835_v46 = vmax.f32 %v803_v45, 0.0 }
  0xdc   : > { %v959_v49 = vld [vmem:[#allocation2 + $0x30] sm:$0xff]  ;;  %v1171_v13 = vpop.permute.xlu0 %1170 }
  0xdd   : > { %924 = vst.msk [vmem:[#allocation2 + $0x39] sm:$0xff] %vm864_vm1, %v835_v46  ;;  %1384 = vrot.lane.b32.xlu2 %v1307_v48, %s3781_s15  ;;  %v1308_v54 = vrot.slane %v959_v49, 2  ;;  %v1098_v0 = vrot.slane %v959_v49, 1 }
  0xde   : > { %1011 = vst.msk [vmem:[#allocation3 + $0x20] sm:$0xff] %vm864_vm1, %v959_v49  ;;  %v690_v50 = vpop.f32.mrf.mxu0  ;;  %3459 = vmatmul.msk.bf16.gmra.mxu0 %vm622_vm0, %v3568_v38 }
  0xdf   : > { %v768_v52 = vmul.f32 %v4104_v20, %v690_v50  ;;  %1266 = vst.msk [vmem:[#allocation3 + $0x8] sm:$0xff] %vm1264_vm5, %v1171_v13 }
  0xe0   : > { %1780 = vrot.lane.b32.xlu0 %v1307_v48, %s3784_s21  ;;  %1174 = vrot.lane.b32.xlu1 %v1097_v51, %s3780_s29 }
  0xe1   : > { %v804_v53 = vadd.f32 %v4109_v21, %v768_v52 }
  0xe3   : > { %v836_v55 = vmax.f32 %v804_v53, 0.0 }
  0xe4   : > { %v960_v56 = vld [vmem:[#allocation2 + $0x38] sm:$0xff]  ;;  %v961_v5 = vld [vmem:[#allocation2 + $0x40] sm:$0x3]  ;;  %v1381_v24 = vpop.permute.xlu0 %1380 }
  0xe5   : > { %1646 = vrot.lane.b32.xlu2 %v1097_v51, %s3783_s27  ;;  %v1309_v58 = vrot.slane %v960_v56, 2  ;;  %1012 = vst.msk [vmem:[#allocation3 + $0x28] sm:$0xff] %vm864_vm1, %v960_v56  ;;  %v1099_v1 = vrot.slane %v960_v56, 1  ;;  %v1311_v6 = vrot.slane %v961_v5, 2  ;;  %v1101_v9 = vrot.slane %v961_v5, 1 }
  0xe6   : > { %925 = vst.msk [vmem:[#allocation2 + $0x49] sm:$0xff] %vm864_vm1, %v836_v55  ;;  %v692_v59 = vpop.f32.mrf.mxu0 }
  0xe7   : > { %v4145_v61 = vsel %vm1297_vm4, %v1308_v54, %v1309_v58  ;;  %v769_v62 = vmul.f32 %v4104_v20, %v692_v59  ;;  %v1100_v4 = vsel %vm1087_vm2, %v1098_v0, %v1099_v1  ;;  %v1312_v8 = vsel %vm1297_vm4, %v1309_v58, %v1311_v6  ;;  %1476 = vst.msk [vmem:[#allocation3 + $0x8] sm:$0xff] %vm1474_vm6, %v1381_v24  ;;  %v3570_v59 = vld [vmem:[%s3954_s19 + $0x50] sm:$0xff] }
  0xe8   : > { %1382 = vrot.lane.b32.xlu1 %v1305_v60, %s3781_s15  ;;  %1386 = vrot.lane.b32.xlu0 %v4145_v61, %s3781_s15  ;;  %v1102_v10 = vsel %vm1087_vm2, %v1099_v1, %v1101_v9 }
  0xe9   : > { %v805_v63 = vadd.f32 %v4109_v21, %v769_v62 }
  0xeb   : > { %v837_v2 = vmax.f32 %v805_v63, 0.0 }
  0xed   : > { %1909 = vrot.lane.b32.xlu2 %v959_v49, %s3785_s25  ;;  %926 = vst.msk [vmem:[#allocation2 + $0x51] sm:$0xff] %vm864_vm1, %v837_v2  ;;  %v4154_v3 = vld [vmem:[#allocation2 + $0x48] sm:$0xff] }
  0xee   : > { %1013 = vst.msk [vmem:[#allocation3 + $0x30] sm:$0xff] %vm864_vm1, %v4154_v3  ;;  %v695_v14 = vpop.f32.mrf.mxu0  ;;  %v1103_v18 = vrot.slane %v4154_v3, 1  ;;  %v1313_v34 = vrot.slane %v4154_v3, 2  ;;  %3460 = vmatmul.msk.bf16.gmra.mxu0 %vm622_vm0, %v3569_v44 }
  0xef   : > { %v770_v15 = vmul.f32 %v4104_v20, %v695_v14 }
  0xf0   : > { %1778 = vrot.lane.b32.xlu1 %v1305_v60, %s3784_s21  ;;  %2044 = vrot.lane.b32.xlu0 %v1100_v4, %s3786_s26 }
  0xf1   : > { %v806_v17 = vadd.f32 %v4109_v21, %v770_v15 }
  0xf3   : > { %v838_v22 = vmax.f32 %v806_v17, 0.0 }
  0xf4   : > { %v4162_v7 = vld [vmem:[#allocation2 + $0x50] sm:$0xff]  ;;  %v964_v27 = vld [vmem:[#allocation2 + $0x58] sm:$0x3] }
  0xf5   : > { %1176 = vrot.lane.b32.xlu2 %v1100_v4, %s3780_s29  ;;  %1014 = vst.msk [vmem:[#allocation3 + $0x38] sm:$0xff] %vm864_vm1, %v4162_v7  ;;  %v1104_v19 = vrot.slane %v4162_v7, 1  ;;  %v1314_v31 = vrot.slane %v4162_v7, 2  ;;  %v1316_v32 = vrot.slane %v964_v27, 2  ;;  %v1106_v39 = vrot.slane %v964_v27, 1 }
  0xf6   : > { %927 = vst.msk [vmem:[#allocation2 + $0x61] sm:$0xff] %vm864_vm1, %v838_v22  ;;  %v697_v25 = vpop.f32.mrf.mxu0 }
  0xf7   : > { %v1105_v23 = vsel %vm1087_vm2, %v1103_v18, %v1104_v19  ;;  %v771_v26 = vmul.f32 %v4104_v20, %v697_v25  ;;  %v1317_v33 = vsel %vm1297_vm4, %v1314_v31, %v1316_v32  ;;  %v1315_v35 = vsel %vm1297_vm4, %v1313_v34, %v1314_v31  ;;  %v2343_v32 = vld [vmem:[%s5888_s4 + $0x10] sm:$0x3] }
  0xf8   : > { %1513 = vrot.lane.b32.xlu1 %v959_v49, %s3782_s20  ;;  %2180 = vrot.lane.b32.xlu0 %v1312_v8, %s3787_s9  ;;  %v1107_v40 = vsel %vm1087_vm2, %v1104_v19, %v1106_v39 }
  0xf9   : > { %v807_v28 = vadd.f32 %v4109_v21, %v771_v26 }
  0xfb   : > { %v839_v30 = vmax.f32 %v807_v28, 0.0 }
  0xfd   : > { %1178 = vrot.lane.b32.xlu2 %v1102_v10, %s3780_s29  ;;  %928 = vst.msk [vmem:[#allocation2 + $0x69] sm:$0xff] %vm864_vm1, %v839_v30  ;;  %v4210_v37 = vld [vmem:[#allocation2 + $0x60] sm:$0xff] }
  0xfe   : > { %1015 = vst.msk [vmem:[#allocation3 + $0x40] sm:$0xff] %vm864_vm1, %v4210_v37  ;;  %v700_v42 = vpop.f32.mrf.mxu0  ;;  %v1108_v58 = vrot.slane %v4210_v37, 1  ;;  %3461 = vmatmul.msk.bf16.gmra.mxu0 %vm622_vm0, %v3570_v59  ;;  %v1318_v60 = vrot.slane %v4210_v37, 2 }
  0xff   : > { %v772_v43 = vmul.f32 %v4104_v20, %v700_v42 }
 0x100   : > { %1911 = vrot.lane.b32.xlu1 %v960_v56, %s3785_s25  ;;  %1782 = vrot.lane.b32.xlu0 %v4145_v61, %s3784_s21 }
 0x101   : > { %v808_v45 = vadd.f32 %v4109_v21, %v772_v43 }
 0x103   : > { %v840_v46 = vmax.f32 %v808_v45, 0.0 }
 0x104   : > { %v4206_v36 = vld [vmem:[#allocation2 + $0x68] sm:$0xff]  ;;  %v967_v47 = vld [vmem:[#allocation2 + $0x70] sm:$0x3] }
 0x105   : > { %2046 = vrot.lane.b32.xlu2 %v1102_v10, %s3786_s26  ;;  %1016 = vst.msk [vmem:[#allocation3 + $0x48] sm:$0xff] %vm864_vm1, %v4206_v36  ;;  %v1109_v51 = vrot.slane %v4206_v36, 1  ;;  %v1111_v52 = vrot.slane %v967_v47, 1 }
 0x106   : > { %929 = vst.msk [vmem:[#allocation2 + $0x79] sm:$0xff] %vm864_vm1, %v840_v46  ;;  %v702_v49 = vpop.f32.mrf.mxu0 }
 0x107   : > { %v773_v50 = vmul.f32 %v4104_v20, %v702_v49  ;;  %v4243_v55 = vsel %vm1087_vm2, %v1109_v51, %v1111_v52  ;;  %v1110_v62 = vsel %vm1087_vm2, %v1108_v58, %v1109_v51 }
 0x108   : > { %1515 = vrot.lane.b32.xlu1 %v960_v56, %s3782_s20  ;;  %1784 = vrot.lane.b32.xlu0 %v1312_v8, %s3784_s21 }
 0x109   : > { %v809_v53 = vadd.f32 %v4109_v21, %v773_v50 }
 0x10b   : > { %v841_v54 = vmax.f32 %v809_v53, 0.0 }
 0x10d   : > { %1648 = vrot.lane.b32.xlu2 %v1100_v4, %s3783_s27  ;;  %930 = vst.msk [vmem:[#allocation2 + $0x81] sm:$0xff] %vm864_vm1, %v841_v54  ;;  %v4258_v63 = vld [vmem:[#allocation2 + $0x78] sm:$0xff] }
 0x10e   : > { %1017 = vst.msk [vmem:[#allocation3 + $0x50] sm:$0xff] %vm864_vm1, %v4258_v63  ;;  %v705_v12 = vpop.f32.mrf.mxu0  ;;  %v1323_v24 = vrot.slane %v4258_v63, 2 }
 0x10f   : > { %v774_v13 = vmul.f32 %v4104_v20, %v705_v12 }
 0x110   : > { %1388 = vrot.lane.b32.xlu1 %v1312_v8, %s3781_s15  ;;  %1180 = vrot.lane.b32.xlu0 %v1105_v23, %s3780_s29  ;;  %v3571_v8 = vld [vmem:[%s3954_s19 + $0x58] sm:$0xff] }
 0x111   : > { %3462 = vmatmul.msk.bf16.gmra.mxu0 %vm622_vm0, %v3571_v8  ;;  %v810_v16 = vadd.f32 %v4109_v21, %v774_v13 }
 0x113   : > { %v842_v17 = vmax.f32 %v810_v16, 0.0 }
 0x114   : > { %v4260_v0 = vld [vmem:[#allocation2 + $0x80] sm:$0xff]  ;;  %v970_v38 = vld [vmem:[#allocation2 + $0x88] sm:$0x3] }
 0x115   : > { %1650 = vrot.lane.b32.xlu2 %v1102_v10, %s3783_s27  ;;  %1018 = vst.msk [vmem:[#allocation3 + $0x58] sm:$0xff] %vm864_vm1, %v4260_v0  ;;  %v1324_v25 = vrot.slane %v4260_v0, 2  ;;  %v1114_v43 = vrot.slane %v4260_v0, 1  ;;  %v1116_v44 = vrot.slane %v970_v38, 1  ;;  %v1326_v51 = vrot.slane %v970_v38, 2 }
 0x116   : > { %931 = vst.msk [vmem:[#allocation2 + $0x91] sm:$0xff] %vm864_vm1, %v842_v17  ;;  %v707_v19 = vpop.f32.mrf.mxu0 }
 0x117   : > { %v775_v22 = vmul.f32 %v4104_v20, %v707_v19  ;;  %v1325_v30 = vsel %vm1297_vm4, %v1323_v24, %v1324_v25  ;;  %v4343_v52 = vsel %vm1087_vm2, %v1114_v43, %v1116_v44  ;;  %v4350_v54 = vsel %vm1297_vm4, %v1324_v25, %v1326_v51 }
 0x118   : > { %2178 = vrot.lane.b32.xlu1 %v4145_v61, %s3787_s9  ;;  %1392 = vrot.lane.b32.xlu0 %v1317_v33, %s3781_s15  ;;  %v1319_v61 = vrot.slane %v4206_v36, 2 }
 0x119   : > { %v811_v28 = vadd.f32 %v4109_v21, %v775_v22 }
 0x11a   : > { %v1320_v2 = vsel %vm1297_vm4, %v1318_v60, %v1319_v61 }
 0x11b   : > { %v843_v29 = vmax.f32 %v811_v28, 0.0 }
 0x11d   : > { %1390 = vrot.lane.b32.xlu2 %v1315_v35, %s3781_s15  ;;  %932 = vst.msk [vmem:[#allocation2 + $0x99] sm:$0xff] %vm864_vm1, %v843_v29  ;;  %v4326_v42 = vld [vmem:[#allocation2 + $0x90] sm:$0xff] }
 0x11e   : > { %1019 = vst.msk [vmem:[#allocation3 + $0x60] sm:$0xff] %vm864_vm1, %v4326_v42  ;;  %v710_v60 = vpop.f32.mrf.mxu0 }
 0x120   : > { %1913 = vrot.lane.b32.xlu1 %v4154_v3, %s3785_s25  ;;  %2182 = vrot.lane.b32.xlu0 %v1315_v35, %s3787_s9 }
 0x124   : > { %v4332_v46 = vld [vmem:[#allocation2 + $0x98] sm:$0xff] }
 0x125   : > { %2048 = vrot.lane.b32.xlu2 %v1105_v23, %s3786_s26  ;;  %1020 = vst.msk [vmem:[#allocation3 + $0x68] sm:$0xff] %vm864_vm1, %v4332_v46  ;;  %v1119_v8 = vrot.slane %v4332_v46, 1 }
 0x128   : > { %1517 = vrot.lane.b32.xlu1 %v4154_v3, %s3782_s20  ;;  %2184 = vrot.lane.b32.xlu0 %v1317_v33, %s3787_s9  ;;  %v1321_v3 = vrot.slane %v967_v47, 2  ;;  %v3573_v47 = vld [vmem:[%s3954_s19 + $0x68] sm:$0xff] }
 0x12a   : > { %v1322_v6 = vsel %vm1297_vm4, %v1319_v61, %v1321_v3  ;;  %v776_v61 = vmul.f32 %v4104_v20, %v710_v60 }
 0x12d   : > { %2050 = vrot.lane.b32.xlu2 %v1107_v40, %s3786_s26 }
 0x12f   : > { %v1512_v41 = vpop.permute.xlu2 %1511 }
 0x130   : > { %1607 = vst.msk [vmem:[#allocation3 + $0x8] sm:$0xff] %vm1605_vm7, %v1512_v41  ;;  %1915 = vrot.lane.b32.xlu1 %v4162_v7, %s3785_s25  ;;  %1786 = vrot.lane.b32.xlu0 %v1315_v35, %s3784_s21  ;;  %v3580_v41 = vld [vmem:[%s5888_s4] sm:$0xff]  }
 0x131   : > { %v3582_v45 = vunpack.c.h.bf16 %v3580_v41 }
 0x135   : > { %1652 = vrot.lane.b32.xlu2 %v1105_v23, %s3783_s27  ;;  %v3572_v23 = vld [vmem:[%s3954_s19 + $0x60] sm:$0xff] }
 0x136   : > { %3463 = vmatmul.msk.bf16.gmra.mxu0 %vm622_vm0, %v3572_v23  ;;  %v1329_v23 = vrot.slane %v4332_v46, 2 }
 0x137   : > { %v1385_v48 = vpop.permute.xlu2 %1384 }
 0x138   : > { %1519 = vrot.lane.b32.xlu1 %v4162_v7, %s3782_s20  ;;  %1788 = vrot.lane.b32.xlu0 %v1317_v33, %s3784_s21  ;;  %v2348_v33 = vunpack.c.l.bf16 %v2343_v32 }
 0x13a   : > { %3467 = vmatpush.msk.msra.mxu1 %vm2446_vm12, %v2348_v33 }
 0x13d   : > { %1654 = vrot.lane.b32.xlu2 %v1107_v40, %s3783_s27 }
 0x13f   : > { %v1510_v56 = vpop.permute.xlu1 %1509  ;;  %v1647_v57 = vpop.permute.xlu2 %1646 }
 0x140   : > { %1606 = vst.msk [vmem:[#allocation3] sm:$0xff] %vm1605_vm7, %v1510_v56  ;;  %1182 = vrot.lane.b32.xlu1 %v1107_v40, %s3780_s29  ;;  %1186 = vrot.lane.b32.xlu0 %v4243_v55, %s3780_s29 }
 0x141   : > { %1742 = vst.msk [vmem:[#allocation3 + $0x8] sm:$0xff] %vm1740_vm8, %v1647_v57 }
 0x145   : > { %1184 = vrot.lane.b32.xlu2 %v1110_v62, %s3780_s29 }
 0x146   : > { %3464 = vmatmul.msk.bf16.gmra.mxu0 %vm622_vm0, %v3573_v47 }
 0x147   : > { %v1910_v1 = vpop.permute.xlu2 %1909 }
 0x148   : > { %1917 = vrot.lane.b32.xlu1 %v4210_v37, %s3785_s25  ;;  %2186 = vrot.lane.b32.xlu0 %v1320_v2, %s3787_s9 }
 0x14a   : > { %v1645_v4 = vpop.permute.xlu0 %1644  ;;  %v1173_v5 = vpop.permute.xlu1 %1172 }
 0x14b   : > { %1741 = vst.msk [vmem:[#allocation3] sm:$0xff] %vm1740_vm8, %v1645_v4 }
 0x14c   : > { %1267 = vst.msk [vmem:[#allocation3 + $0x10] sm:$0xff] %vm1264_vm5, %v1173_v5  ;;  %v712_v5 = vpop.f32.mrf.mxu0 }
 0x14d   : > { %1396 = vrot.lane.b32.xlu2 %v1322_v6, %s3781_s15 }
 0x14f   : > { %v1177_v7 = vpop.permute.xlu2 %1176 }
 0x150   : > { %1269 = vst.msk [vmem:[#allocation3 + $0x20] sm:$0xff] %vm1264_vm5, %v1177_v7  ;;  %1521 = vrot.lane.b32.xlu1 %v4210_v37, %s3782_s20  ;;  %2188 = vrot.lane.b32.xlu0 %v1322_v6, %s3787_s9  ;;  %v1118_v7 = vrot.slane %v4326_v42, 1 }
 0x152   : > { %v1781_v9 = vpop.permute.xlu0 %1780  ;;  %v1175_v10 = vpop.permute.xlu1 %1174 }
 0x153   : > { %1876 = vst.msk [vmem:[#allocation3 + $0x8] sm:$0xff] %vm1874_vm9, %v1781_v9 }
 0x154   : > { %1268 = vst.msk [vmem:[#allocation3 + $0x18] sm:$0xff] %vm1264_vm5, %v1175_v10 }
 0x155   : > { %1478 = vst.msk [vmem:[#allocation3 + $0x18] sm:$0xff] %vm1474_vm6, %v1385_v48  ;;  %2052 = vrot.lane.b32.xlu2 %v1110_v62, %s3786_s26  ;;  %v3581_v48 = vunpack.c.l.bf16 %v3580_v41 }
 0x157   : > { %v1179_v11 = vpop.permute.xlu2 %1178 }
 0x158   : > { %1270 = vst.msk [vmem:[#allocation3 + $0x28] sm:$0xff] %vm1264_vm5, %v1179_v11  ;;  %1919 = vrot.lane.b32.xlu1 %v4206_v36, %s3785_s25  ;;  %1790 = vrot.lane.b32.xlu0 %v1320_v2, %s3784_s21 }
 0x15a   : > { %v1383_v14 = vpop.permute.xlu1 %1382  ;;  %v1387_v15 = vpop.permute.xlu0 %1386 }
 0x15b   : > { %1477 = vst.msk [vmem:[#allocation3 + $0x10] sm:$0xff] %vm1474_vm6, %v1383_v14  ;;  %v715_v14 = vpop.f32.mrf.mxu0 }
 0x15c   : > { %1479 = vst.msk [vmem:[#allocation3 + $0x20] sm:$0xff] %vm1474_vm6, %v1387_v15  ;;  %v4398_v15 = vld [vmem:[#allocation2 + $0xa0] sm:$0x3]  ;;  %v778_v16 = vmul.f32 %v4104_v20, %v715_v14 }
 0x15d   : > { %2054 = vrot.lane.b32.xlu2 %v4243_v55, %s3786_s26  ;;  %v1331_v24 = vrot.slane %v4398_v15, 2  ;;  %v1121_v51 = vrot.slane %v4398_v15, 1 }
 0x15e   : > { %v814_v22 = vadd.f32 %v4109_v21, %v778_v16 }
 0x15f   : > { %v2047_v18 = vpop.permute.xlu2 %2046 }
 0x160   : > { %1523 = vrot.lane.b32.xlu1 %v4206_v36, %s3782_s20  ;;  %1792 = vrot.lane.b32.xlu0 %v1322_v6, %s3784_s21  ;;  %v3587_v36 = vld [vmem:[%s5888_s4 + $0x8] sm:$0xff]   ;;  %v777_v6 = vmul.f32 %v4104_v20, %v712_v5  ;;  %v846_v25 = vmax.f32 %v814_v22, 0.0 }
 0x161   : > { %v3586_v37 = vunpack.c.h.bf16 %v3587_v36  ;;  %v3585_v39 = vunpack.c.l.bf16 %v3587_v36 }
 0x162   : > { %v1779_v26 = vpop.permute.xlu1 %1778  ;;  %v2045_v27 = vpop.permute.xlu0 %2044  ;;  %v813_v11 = vadd.f32 %v4109_v21, %v777_v6  ;;  %935 = vst.msk [vmem:[#allocation2 + $0xc1] sm:$0xff] %vm864_vm1, %v846_v25 }
 0x163   : > { %1875 = vst.msk [vmem:[#allocation3] sm:$0xff] %vm1874_vm9, %v1779_v26  ;;  %2462 = vmatpush.msra.mxu1 %v3586_v37  ;;  %v717_v28 = vpop.f32.mrf.mxu0 }
 0x164   : > { %2006 = vst.msk [vmem:[#allocation3] sm:$0xff] %vm2005_vm10, %v1910_v1  ;;  %v845_v12 = vmax.f32 %v813_v11, 0.0 }
 0x165   : > { %2141 = vst.msk [vmem:[#allocation3] sm:$0xff] %vm2140_vm11, %v2045_v27  ;;  %1656 = vrot.lane.b32.xlu2 %v1110_v62, %s3783_s27  ;;  %2463 = vmatpush.msra.mxu1 %v3585_v39  ;;  %v3574_v62 = vld [vmem:[%s3954_s19 + $0x70] sm:$0xff]  ;;  %v4412_v27 = vsel %vm1297_vm4, %v1329_v23, %v1331_v24 }
 0x166   : > { %3465 = vmatmul.msk.bf16.gmra.mxu0 %vm622_vm0, %v3574_v62  ;;  %934 = vst.msk [vmem:[#allocation2 + $0xb1] sm:$0xff] %vm864_vm1, %v845_v12 }
 0x167   : > { %v1649_v31 = vpop.permute.xlu2 %1648  ;;  %2464 = vmatpush.msra.mxu1 %v3582_v45 }
 0x168   : > { %1394 = vrot.lane.b32.xlu1 %v1320_v2, %s3781_s15  ;;  %1398 = vrot.lane.b32.xlu0 %v1325_v30, %s3781_s15  ;;  %v812_v2 = vadd.f32 %v4109_v21, %v776_v61 }
 0x169   : > { %2465 = vmatpush.msra.mxu1 %v3581_v48 }
 0x16a   : > { %v1514_v34 = vpop.permute.xlu1 %1513  ;;  %v2181_v35 = vpop.permute.xlu0 %2180  ;;  %v844_v3 = vmax.f32 %v812_v2, 0.0 }
 0x16b   : > { %1608 = vst.msk [vmem:[#allocation3 + $0x10] sm:$0xff] %vm1605_vm7, %v1514_v34 }
 0x16c   : > { %1743 = vst.msk [vmem:[#allocation3 + $0x10] sm:$0xff] %vm1740_vm8, %v1649_v31  ;;  %v779_v31 = vmul.f32 %v4104_v20, %v717_v28 }
 0x16d   : > { %1658 = vrot.lane.b32.xlu2 %v4243_v55, %s3783_s27  ;;  %v1113_v55 = vrot.slane %v4258_v63, 1  ;;  %933 = vst.msk [vmem:[#allocation2 + $0xa9] sm:$0xff] %vm864_vm1, %v844_v3  ;;  %v976_v60 = vld [vmem:[#allocation2 + $0xb8] sm:$0x3] }
 0x16e   : > { %v815_v36 = vadd.f32 %v4109_v21, %v779_v31  ;;  %v1126_v2 = vrot.slane %v976_v60, 1  ;;  %v1336_v24 = vrot.slane %v976_v60, 2 }
 0x16f   : > { %v1651_v40 = vpop.permute.xlu2 %1650  ;;  %v1115_v58 = vsel %vm1087_vm2, %v1113_v55, %v1114_v43 }
 0x170   : > { %1921 = vrot.lane.b32.xlu1 %v4258_v63, %s3785_s25  ;;  %2190 = vrot.lane.b32.xlu0 %v1325_v30, %s3787_s9  ;;  %v847_v38 = vmax.f32 %v815_v36, 0.0 }
 0x172   : > { %v1912_v49 = vpop.permute.xlu1 %1911  ;;  %v1783_v50 = vpop.permute.xlu0 %1782  ;;  %936 = vst.msk [vmem:[#allocation2 + $0xc9] sm:$0xff] %vm864_vm1, %v847_v38 }
 0x173   : > { %2007 = vst.msk [vmem:[#allocation3 + $0x8] sm:$0xff] %vm2005_vm10, %v1912_v49 }
 0x174   : > { %2142 = vst.msk [vmem:[#allocation3 + $0x8] sm:$0xff] %vm2140_vm11, %v2047_v18  ;;  %v4414_v29 = vld [vmem:[#allocation2 + $0xb0] sm:$0xff]  ;;  %v4424_v32 = vld [vmem:[#allocation2 + $0xa8] sm:$0xff] }
 0x175   : > { %2276 = vst.msk [vmem:[#allocation3 + $0x8] sm:$0xff] %vm2274_vm13, %v2181_v35  ;;  %1190 = vrot.lane.b32.xlu2 %v4343_v52, %s3780_s29  ;;  %v1334_v16 = vrot.slane %v4414_v29, 2 }
 0x176   : > { %1877 = vst.msk [vmem:[#allocation3 + $0x10] sm:$0xff] %vm1874_vm9, %v1783_v50 }
 0x177   : > { %v1391_v53 = vpop.permute.xlu2 %1390  ;;  %1022 = vst.msk [vmem:[#allocation3 + $0x78] sm:$0xff] %vm864_vm1, %v4414_v29 }
 0x178   : > { %1525 = vrot.lane.b32.xlu1 %v4258_v63, %s3782_s20  ;;  %2192 = vrot.lane.b32.xlu0 %v4350_v54, %s3787_s9  ;;  %1021 = vst.msk [vmem:[#allocation3 + $0x70] sm:$0xff] %vm864_vm1, %v4424_v32 }
 0x17a   : > { %v1516_v56 = vpop.permute.xlu1 %1515  ;;  %v1785_v57 = vpop.permute.xlu0 %1784 }
 0x17b   : > { %1609 = vst.msk [vmem:[#allocation3 + $0x18] sm:$0xff] %vm1605_vm7, %v1516_v56 }
 0x17c   : > { %1744 = vst.msk [vmem:[#allocation3 + $0x18] sm:$0xff] %vm1740_vm8, %v1651_v40  ;;  %v2308_v35 = vld [vmem:[#allocation3 + $0x8] sm:$0xff]  ;;  %v720_v40 = vpop.f32.mrf.mxu0 }
 0x17d   : > { %1878 = vst.msk [vmem:[#allocation3 + $0x18] sm:$0xff] %vm1874_vm9, %v1785_v57  ;;  %2056 = vrot.lane.b32.xlu2 %v1115_v58, %s3786_s26  ;;  %v780_v41 = vmul.f32 %v4104_v20, %v720_v40  ;;  %v4466_v57 = vsel %vm1087_vm2, %v1119_v8, %v1121_v51 }
 0x17f   : > { %v2049_v59 = vpop.permute.xlu2 %2048  ;;  %v816_v47 = vadd.f32 %v4109_v21, %v780_v41 }
 0x180   : > { %1923 = vrot.lane.b32.xlu1 %v4260_v0, %s3785_s25  ;;  %1794 = vrot.lane.b32.xlu0 %v1325_v30, %s3784_s21  ;;  %v1328_v30 = vrot.slane %v4326_v42, 2 }
 0x181   : > { %v848_v48 = vmax.f32 %v816_v47, 0.0 }
 0x182   : > { %v1389_v63 = vpop.permute.xlu1 %1388  ;;  %v1181_v1 = vpop.permute.xlu0 %1180  ;;  %v1330_v37 = vsel %vm1297_vm4, %v1328_v30, %v1329_v23 }
 0x183   : > { %1480 = vst.msk [vmem:[#allocation3 + $0x28] sm:$0xff] %vm1474_vm6, %v1389_v63 }
 0x184   : > { %1271 = vst.msk [vmem:[#allocation3 + $0x30] sm:$0xff] %vm1264_vm5, %v1181_v1  ;;  %v722_v50 = vpop.f32.mrf.mxu0  ;;  %v1124_v1 = vrot.slane %v4414_v29, 1 }
 0x185   : > { %1481 = vst.msk [vmem:[#allocation3 + $0x30] sm:$0xff] %vm1474_vm6, %v1391_v53  ;;  %2058 = vrot.lane.b32.xlu2 %v4343_v52, %s3786_s26  ;;  %v4456_v53 = vld [vmem:[#allocation2 + $0xc0] sm:$0xff] }
 0x186   : > { %937 = vst.msk [vmem:[#allocation2 + $0xd9] sm:$0xff] %vm864_vm1, %v848_v48 }
 0x187   : > { %v4375_v4 = vpop.permute.xlu2 %2050  ;;  %1023 = vst.msk [vmem:[#allocation3 + $0x80] sm:$0xff] %vm864_vm1, %v4456_v53 }
 0x188   : > { %1527 = vrot.lane.b32.xlu1 %v4260_v0, %s3782_s20  ;;  %1796 = vrot.lane.b32.xlu0 %v4350_v54, %s3784_s21  ;;  %v4392_v0 = vsel %vm1087_vm2, %v1118_v7, %v1119_v8  ;;  %v4490_v7 = vsel %vm1087_vm2, %v1124_v1, %v1126_v2 }
 0x18a   : > { %v2179_v9 = vpop.permute.xlu1 %2178  ;;  %v4384_v10 = vpop.permute.xlu0 %1392 }
 0x18b   : > { %2275 = vst.msk [vmem:[#allocation3] sm:$0xff] %vm2274_vm13, %v2179_v9 }
 0x18c   : > { %v725_v62 = vpop.f32.mrf.mxu0 }
 0x18d   : > { %1660 = vrot.lane.b32.xlu2 %v1115_v58, %s3783_s27  ;;  %v782_v63 = vmul.f32 %v4104_v20, %v725_v62  ;;  %v4494_v11 = vld [vmem:[#allocation2 + $0xd8] sm:$0xff]  ;;  %v979_v62 = vld [vmem:[#allocation2 + $0xd0] sm:$0x3] }
 0x18e   : > { %1025 = vst.msk [vmem:[#allocation3 + $0x90] sm:$0xff] %vm864_vm1, %v4494_v11 }
 0x18f   : > { %v1653_v13 = vpop.permute.xlu2 %1652  ;;  %v818_v5 = vadd.f32 %v4109_v21, %v782_v63 }
 0x190   : > { %1188 = vrot.lane.b32.xlu1 %v1115_v58, %s3780_s29  ;;  %1192 = vrot.lane.b32.xlu0 %v4392_v0, %s3780_s29 }
 0x191   : > { %v850_v6 = vmax.f32 %v818_v5, 0.0 }
 0x192   : > { %v1914_v17 = vpop.permute.xlu1 %1913  ;;  %v2183_v18 = vpop.permute.xlu0 %2182  ;;  %v2307_v19 = vld [vmem:[#allocation3] sm:$0xff] }
 0x193   : > { %2008 = vst.msk [vmem:[#allocation3 + $0x10] sm:$0xff] %vm2005_vm10, %v1914_v17  ;;  %3468 = vmatmul.msk.f32.vlgmr.msra.gmra.mxu1 %vm2349_vm14, %v2307_v19 }
 0x194   : > { %2143 = vst.msk [vmem:[#allocation3 + $0x10] sm:$0xff] %vm2140_vm11, %v2049_v59  ;;  %v4468_v59 = vld [vmem:[#allocation2 + $0xc8] sm:$0xff]  ;;  %v727_v9 = vpop.f32.mrf.mxu0 }
 0x195   : > { %2277 = vst.msk [vmem:[#allocation3 + $0x10] sm:$0xff] %vm2274_vm13, %v2183_v18  ;;  %1662 = vrot.lane.b32.xlu2 %v4343_v52, %s3783_s27  ;;  %v781_v52 = vmul.f32 %v4104_v20, %v722_v50  ;;  %v783_v12 = vmul.f32 %v4104_v20, %v727_v9  ;;  %v1133_v50 = vrot.slane %v4494_v11, 1 }
 0x196   : > { %1024 = vst.msk [vmem:[#allocation3 + $0x88] sm:$0xff] %vm864_vm1, %v4468_v59 }
 0x197   : > { %v1655_v26 = vpop.permute.xlu2 %1654  ;;  %v817_v56 = vadd.f32 %v4109_v21, %v781_v52  ;;  %939 = vst.msk [vmem:[#allocation2 + $0xf1] sm:$0xff] %vm864_vm1, %v850_v6  ;;  %v819_v15 = vadd.f32 %v4109_v21, %v783_v12 }
 0x198   : > { %1400 = vrot.lane.b32.xlu1 %v4350_v54, %s3781_s15  ;;  %1404 = vrot.lane.b32.xlu0 %v4412_v27, %s3781_s15 }
 0x199   : > { %v849_v58 = vmax.f32 %v817_v56, 0.0  ;;  %v851_v18 = vmax.f32 %v819_v15, 0.0 }
 0x19a   : > { %v1518_v33 = vpop.permute.xlu1 %1517  ;;  %v2185_v34 = vpop.permute.xlu0 %2184 }
 0x19b   : > { %1610 = vst.msk [vmem:[#allocation3 + $0x20] sm:$0xff] %vm1605_vm7, %v1518_v33  ;;  %3469 = vmatmul.msk.f32.gmra.mxu1 %vm2349_vm14, %v2308_v35  ;;  %v4532_v33 = vsel %vm1297_vm4, %v1334_v16, %v1336_v24 }
 0x19c   : > { %1745 = vst.msk [vmem:[#allocation3 + $0x20] sm:$0xff] %vm1740_vm8, %v1653_v13  ;;  %v2309_v45 = vld [vmem:[#allocation3 + $0x10] sm:$0xff]  ;;  %v730_v23 = vpop.f32.mrf.mxu0 }
 0x19d   : > { %1402 = vrot.lane.b32.xlu2 %v1330_v37, %s3781_s15  ;;  %938 = vst.msk [vmem:[#allocation2 + $0xe1] sm:$0xff] %vm864_vm1, %v849_v58  ;;  %v784_v25 = vmul.f32 %v4104_v20, %v730_v23 }
 0x19e   : > { %940 = vst.msk [vmem:[#allocation2 + $0xf9] sm:$0xff] %vm864_vm1, %v851_v18 }
 0x19f   : > { %v1185_v39 = vpop.permute.xlu2 %1184  ;;  %v820_v30 = vadd.f32 %v4109_v21, %v784_v25 }
 0x1a0   : > { %1273 = vst.msk [vmem:[#allocation3 + $0x40] sm:$0xff] %vm1264_vm5, %v1185_v39  ;;  %1925 = vrot.lane.b32.xlu1 %v4326_v42, %s3785_s25  ;;  %2194 = vrot.lane.b32.xlu0 %v1330_v37, %s3787_s9 }
 0x1a2   : > { %v1916_v43 = vpop.permute.xlu1 %1915  ;;  %v1787_v44 = vpop.permute.xlu0 %1786 }
 0x1a3   : > { %2009 = vst.msk [vmem:[#allocation3 + $0x18] sm:$0xff] %vm2005_vm10, %v1916_v43  ;;  %3470 = vmatmul.msk.f32.gmra.mxu1 %vm2349_vm14, %v2309_v45  ;;  %v1338_v43 = vrot.slane %v4456_v53, 2 }
 0x1a4   : > { %2144 = vst.msk [vmem:[#allocation3 + $0x18] sm:$0xff] %vm2140_vm11, %v4375_v4  ;;  %v732_v36 = vpop.f32.mrf.mxu0 }
 0x1a5   : > { %2278 = vst.msk [vmem:[#allocation3 + $0x18] sm:$0xff] %vm2274_vm13, %v2185_v34  ;;  %2060 = vrot.lane.b32.xlu2 %v4392_v0, %s3786_s26  ;;  %v852_v34 = vmax.f32 %v820_v30, 0.0  ;;  %v4543_v38 = vld [vmem:[#allocation2 + $0xf8] sm:$0xff] }
 0x1a6   : > { %1879 = vst.msk [vmem:[#allocation3 + $0x20] sm:$0xff] %vm1874_vm9, %v1787_v44  ;;  %v1339_v44 = vrot.slane %v4468_v59, 2 }
 0x1a7   : > { %v1397_v49 = vpop.permute.xlu2 %1396  ;;  %941 = vst.msk [vmem:[#allocation2 + $0x109] sm:$0xff] %vm864_vm1, %v852_v34 }
 0x1a8   : > { %1529 = vrot.lane.b32.xlu1 %v4326_v42, %s3782_s20  ;;  %2196 = vrot.lane.b32.xlu0 %v4412_v27, %s3787_s9  ;;  %1028 = vst.msk [vmem:[#allocation3 + $0xa8] sm:$0xff] %vm864_vm1, %v4543_v38  ;;  %v4559_v47 = vsel %vm1297_vm4, %v1338_v43, %v1339_v44 }
 0x1aa   : > { %v1520_v54 = vpop.permute.xlu1 %1519  ;;  %v1789_v55 = vpop.permute.xlu0 %1788 }
 0x1ab   : > { %1611 = vst.msk [vmem:[#allocation3 + $0x28] sm:$0xff] %vm1605_vm7, %v1520_v54 }
 0x1ac   : > { %1746 = vst.msk [vmem:[#allocation3 + $0x28] sm:$0xff] %vm1740_vm8, %v1655_v26  ;;  %v2310_v42 = vld [vmem:[#allocation3 + $0x18] sm:$0xff]  ;;  %v735_v48 = vpop.f32.mrf.mxu0 }
 0x1ad   : > { %1880 = vst.msk [vmem:[#allocation3 + $0x28] sm:$0xff] %vm1874_vm9, %v1789_v55  ;;  %3471 = vmatmul.msk.f32.gmra.mxu1 %vm2349_vm14, %v2310_v42  ;;  %2062 = vrot.lane.b32.xlu2 %v4466_v57, %s3786_s26  ;;  %v4575_v55 = vld [vmem:[%s5887_s3] ss:$0 sm:$0xff]  ;;  %v1129_v42 = vrot.slane %v4468_v59, 1 }
 0x1ae   : > { %v4605_v6 = vld [vmem:[#allocation2 + $0x108] sm:$0xff] }
 0x1af   : > { %v2053_v61 = vpop.permute.xlu2 %2052  ;;  %1029 = vst.msk [vmem:[#allocation3 + $0xb0] sm:$0xff] %vm864_vm1, %v4605_v6 }
 0x1b0   : > { %1927 = vrot.lane.b32.xlu1 %v4332_v46, %s3785_s25  ;;  %1798 = vrot.lane.b32.xlu0 %v1330_v37, %s3784_s21  ;;  %v785_v37 = vmul.f32 %v4104_v20, %v732_v36 }
 0x1b2   : > { %v1183_v3 = vpop.permute.xlu1 %1182  ;;  %v1187_v4 = vpop.permute.xlu0 %1186  ;;  %v821_v41 = vadd.f32 %v4109_v21, %v785_v37  ;;  %v4556_v21 = vld [vmem:[#allocation2 + $0xf0] sm:$0xff]  ;;  %v1343_v37 = vrot.slane %v4494_v11, 2 }
 0x1b3   : > { %1272 = vst.msk [vmem:[#allocation3 + $0x38] sm:$0xff] %vm1264_vm5, %v1183_v3  ;;  %v982_v3 = vld [vmem:[#allocation2 + $0xe8] sm:$0x3] }
 0x1b4   : > { %1482 = vst.msk [vmem:[#allocation3 + $0x38] sm:$0xff] %vm1474_vm6, %v4384_v10  ;;  %v1123_v10 = vrot.slane %v4424_v32, 1  ;;  %v737_v2 = vpop.f32.mrf.mxu0  ;;  %v1346_v15 = vrot.slane %v982_v3, 2 }
 0x1b5   : > { %1274 = vst.msk [vmem:[#allocation3 + $0x48] sm:$0xff] %vm1264_vm5, %v1187_v4  ;;  %1664 = vrot.lane.b32.xlu2 %v4392_v0, %s3783_s27  ;;  %v4502_v0 = vld [vmem:[#allocation2 + $0xe0] sm:$0xff] }
 0x1b6   : > { %1484 = vst.msk [vmem:[#allocation3 + $0x48] sm:$0xff] %vm1474_vm6, %v1397_v49  ;;  %v4514_v17 = vsel %vm1087_vm2, %v1123_v10, %v1124_v1  ;;  %v786_v49 = vmul.f32 %v4104_v20, %v735_v48  ;;  %v1134_v51 = vrot.slane %v4502_v0, 1  ;;  %v1128_v20 = vrot.slane %v4456_v53, 1  ;;  %v4602_v4 = vld [vmem:[%s5886_s2] ss:$0 sm:$0xff] }
 0x1b7   : > { %v2055_v8 = vpop.permute.xlu2 %2054  ;;  %1026 = vst.msk [vmem:[#allocation3 + $0x98] sm:$0xff] %vm864_vm1, %v4502_v0  ;;  %v787_v5 = vmul.f32 %v4602_v4, %v737_v2  ;;  %v1139_v48 = vrot.slane %v4543_v38, 1 }
 0x1b8   : > { %1531 = vrot.lane.b32.xlu1 %v4332_v46, %s3782_s20  ;;  %1198 = vrot.lane.b32.xlu0 %v4490_v7, %s3780_s29  ;;  %v1333_v46 = vrot.slane %v4424_v32, 2  ;;  %1027 = vst.msk [vmem:[#allocation3 + $0xa0] sm:$0xff] %vm864_vm1, %v4556_v21  ;;  %v822_v56 = vadd.f32 %v4575_v55, %v786_v49  ;;  %v4593_v1 = vsel %vm1087_vm2, %v1128_v20, %v1129_v42 }
 0x1b9   : > { %v823_v12 = vadd.f32 %v4575_v55, %v787_v5  ;;  %v3577_v5 = vld [vmem:[%s5894_s10] sm:$0xff] }
 0x1ba   : > { %v1918_v13 = vpop.permute.xlu1 %1917  ;;  %v2187_v14 = vpop.permute.xlu0 %2186  ;;  %v4521_v22 = vsel %vm1297_vm4, %v1333_v46, %v1334_v16  ;;  %v854_v60 = vmax.f32 %v822_v56, 0.0  ;;  %3000 = vmatpush.bf16.msra.mxu3 %v3577_v5 }
 0x1bb   : > { %2010 = vst.msk [vmem:[#allocation3 + $0x20] sm:$0xff] %vm2005_vm10, %v1918_v13  ;;  %v1341_v13 = vrot.slane %v979_v62, 2  ;;  %v855_v16 = vmax.f32 %v823_v12, 0.0 }
 0x1bc   : > { %2145 = vst.msk [vmem:[#allocation3 + $0x20] sm:$0xff] %vm2140_vm11, %v2053_v61  ;;  %v4589_v61 = vsel %vm1087_vm2, %v1133_v50, %v1134_v51  ;;  %v740_v24 = vpop.f32.mrf.mxu0 }
 0x1bd   : > { %2279 = vst.msk [vmem:[#allocation3 + $0x20] sm:$0xff] %vm2274_vm13, %v2187_v14  ;;  %1196 = vrot.lane.b32.xlu2 %v4514_v17, %s3780_s29  ;;  %v1344_v14 = vrot.slane %v4502_v0, 2  ;;  %v788_v25 = vmul.f32 %v4602_v4, %v740_v24 }
 0x1be   : > { %943 = vst.msk [vmem:[#allocation2 + $0x121] sm:$0xff] %vm864_vm1, %v854_v60  ;;  %v1138_v60 = vrot.slane %v4556_v21, 1 }
 0x1bf   : > { %v1657_v19 = vpop.permute.xlu2 %1656  ;;  %944 = vst.msk [vmem:[#allocation2 + $0x129] sm:$0xff] %vm864_vm1, %v855_v16  ;;  %v4628_v23 = vsel %vm1297_vm4, %v1344_v14, %v1346_v15  ;;  %v824_v30 = vadd.f32 %v4575_v55, %v788_v25  ;;  %v1349_v15 = vrot.slane %v4543_v38, 2 }
 0x1c0   : > { %1194 = vrot.lane.b32.xlu1 %v4466_v57, %s3780_s29  ;;  %2198 = vrot.lane.b32.xlu0 %v4521_v22, %s3787_s9 }
 0x1c2   : > { %v1522_v26 = vpop.permute.xlu1 %1521  ;;  %v2189_v28 = vpop.permute.xlu0 %2188 }
 0x1c3   : > { %1612 = vst.msk [vmem:[#allocation3 + $0x30] sm:$0xff] %vm1605_vm7, %v1522_v26 }
 0x1c4   : > { %1747 = vst.msk [vmem:[#allocation3 + $0x30] sm:$0xff] %vm1740_vm8, %v1657_v19  ;;  %v2311_v31 = vld [vmem:[#allocation3 + $0x20] sm:$0xff]  ;;  %v4625_v19 = vsel %vm1297_vm4, %v1339_v44, %v1341_v13 }
 0x1c5   : > { %3472 = vmatmul.msk.f32.gmra.mxu1 %vm2349_vm14, %v2311_v31  ;;  %1408 = vrot.lane.b32.xlu2 %v4532_v33, %s3781_s15  ;;  %v856_v31 = vmax.f32 %v824_v30, 0.0  ;;  %v4642_v36 = vld [vmem:[#allocation2 + $0x120] sm:$0xff]  ;;  %v3656_v30 = vld [vmem:[%s3954_s19] sm:$0xff] }
 0x1c6   : > { %1031 = vst.msk [vmem:[#allocation3 + $0xc0] sm:$0xff] %vm864_vm1, %v4642_v36  ;;  %3537 = vmatmul.msk.bf16.vlgmr.msra.gmra.mxu3 %vm622_vm0, %v3656_v30  ;;  %v4775_v5 = vld [vmem:[#allocation2 + $0x130] sm:$0x3] }
 0x1c7   : > { %v1659_v35 = vpop.permute.xlu2 %1658  ;;  %945 = vst.msk [vmem:[#allocation2 + $0x139] sm:$0xff] %vm864_vm1, %v856_v31 }
 0x1c8   : > { %1929 = vrot.lane.b32.xlu1 %v4424_v32, %s3785_s25  ;;  %1800 = vrot.lane.b32.xlu0 %v4412_v27, %s3784_s21  ;;  %v853_v27 = vmax.f32 %v821_v41, 0.0  ;;  %v4652_v41 = vld [vmem:[#allocation2 + $0x128] sm:$0xff] }
 0x1c9   : > { %1032 = vst.msk [vmem:[#allocation3 + $0xc8] sm:$0xff] %vm864_vm1, %v4652_v41 }
 0x1ca   : > { %v1920_v39 = vpop.permute.xlu1 %1919  ;;  %v1791_v40 = vpop.permute.xlu0 %1790  ;;  %942 = vst.msk [vmem:[#allocation2 + $0x111] sm:$0xff] %vm864_vm1, %v853_v27 }
 0x1cb   : > { %2011 = vst.msk [vmem:[#allocation3 + $0x28] sm:$0xff] %vm2005_vm10, %v1920_v39  ;;  %v4649_v39 = vld [vmem:[#allocation2 + $0x100] sm:$0x3] }
 0x1cc   : > { %2146 = vst.msk [vmem:[#allocation3 + $0x28] sm:$0xff] %vm2140_vm11, %v2055_v8  ;;  %v1141_v49 = vrot.slane %v4649_v39, 1  ;;  %v1351_v16 = vrot.slane %v4649_v39, 2 }
 0x1cd   : > { %2280 = vst.msk [vmem:[#allocation3 + $0x28] sm:$0xff] %vm2274_vm13, %v2189_v28  ;;  %2064 = vrot.lane.b32.xlu2 %v4514_v17, %s3786_s26 }
 0x1ce   : > { %1881 = vst.msk [vmem:[#allocation3 + $0x30] sm:$0xff] %vm1874_vm9, %v1791_v40  ;;  %v4724_v39 = vld [vmem:[#allocation2 + $0x138] sm:$0xff] }
 0x1cf   : > { %v1191_v45 = vpop.permute.xlu2 %1190  ;;  %1033 = vst.msk [vmem:[#allocation3 + $0xd0] sm:$0xff] %vm864_vm1, %v4724_v39 }
 0x1d0   : > { %1276 = vst.msk [vmem:[#allocation3 + $0x58] sm:$0xff] %vm1264_vm5, %v1191_v45  ;;  %1406 = vrot.lane.b32.xlu1 %v4521_v22, %s3781_s15  ;;  %1410 = vrot.lane.b32.xlu0 %v4559_v47, %s3781_s15  ;;  %v1136_v45 = vrot.slane %v982_v3, 1 }
 0x1d1   : > { %v4607_v8 = vld [vmem:[#allocation2 + $0x110] sm:$0xff] }
 0x1d2   : > { %v1524_v52 = vpop.permute.xlu1 %1523  ;;  %v1793_v54 = vpop.permute.xlu0 %1792  ;;  %1030 = vst.msk [vmem:[#allocation3 + $0xb8] sm:$0xff] %vm864_vm1, %v4607_v8  ;;  %v4673_v20 = vsel %vm1087_vm2, %v1134_v51, %v1136_v45  ;;  %v4688_v51 = vsel %vm1087_vm2, %v1138_v60, %v1139_v48  ;;  %v1354_v31 = vrot.slane %v4607_v8, 2  ;;  %v1144_v60 = vrot.slane %v4607_v8, 1 }
 0x1d3   : > { %1613 = vst.msk [vmem:[#allocation3 + $0x38] sm:$0xff] %vm1605_vm7, %v1524_v52  ;;  %v4664_v52 = vsel %vm1297_vm4, %v1343_v37, %v1344_v14 }
 0x1d4   : > { %1748 = vst.msk [vmem:[#allocation3 + $0x38] sm:$0xff] %vm1740_vm8, %v1659_v35  ;;  %v2312_v58 = vld [vmem:[#allocation3 + $0x28] sm:$0xff]  ;;  %v742_v35 = vpop.f32.mrf.mxu0 }
 0x1d5   : > { %1882 = vst.msk [vmem:[#allocation3 + $0x38] sm:$0xff] %vm1874_vm9, %v1793_v54  ;;  %3473 = vmatmul.msk.f32.gmra.mxu1 %vm2349_vm14, %v2312_v58  ;;  %1666 = vrot.lane.b32.xlu2 %v4466_v57, %s3783_s27  ;;  %v1131_v57 = vrot.slane %v979_v62, 1  ;;  %v789_v40 = vmul.f32 %v4602_v4, %v742_v35  ;;  %v4722_v35 = vsel %vm1297_vm4, %v1349_v15, %v1351_v16 }
 0x1d7   : > { %v2057_v63 = vpop.permute.xlu2 %2056  ;;  %v4617_v46 = vsel %vm1087_vm2, %v1129_v42, %v1131_v57  ;;  %v825_v27 = vadd.f32 %v4575_v55, %v789_v40  ;;  %v4676_v42 = vsel %vm1087_vm2, %v1139_v48, %v1141_v49  ;;  %v1148_v48 = vrot.slane %v4642_v36, 1 }
 0x1d8   : > { %1200 = vrot.lane.b32.xlu1 %v4593_v1, %s3780_s29  ;;  %1204 = vrot.lane.b32.xlu0 %v4589_v61, %s3780_s29  ;;  %v1149_v49 = vrot.slane %v4652_v41, 1 }
 0x1d9   : > { %v857_v54 = vmax.f32 %v825_v27, 0.0 }
 0x1da   : > { %v1395_v9 = vpop.permute.xlu1 %1394  ;;  %v4609_v10 = vpop.permute.xlu0 %1398 }
 0x1db   : > { %1483 = vst.msk [vmem:[#allocation3 + $0x40] sm:$0xff] %vm1474_vm6, %v1395_v9  ;;  %v2699_v9 = vld [vmem:[%s5891_s7] sm:$0x3] }
 0x1dc   : > { %946 = vst.msk [vmem:[#allocation2 + $0x141] sm:$0xff] %vm864_vm1, %v857_v54  ;;  %v745_v58 = vpop.f32.mrf.mxu0  ;;  %v2700_v12 = vunpack.c.l.bf16 %v2699_v9 }
 0x1dd   : > { %1202 = vrot.lane.b32.xlu2 %v4617_v46, %s3780_s29  ;;  %v790_v62 = vmul.f32 %v4602_v4, %v745_v58  ;;  %v1143_v58 = vrot.slane %v4605_v6, 1 }
 0x1de   : > { %3500 = vmatpush.msk.msra.mxu2 %vm2446_vm12, %v2700_v12 }
 0x1df   : > { %v2059_v18 = vpop.permute.xlu2 %2058  ;;  %v826_v57 = vadd.f32 %v4575_v55, %v790_v62 }
 0x1e0   : > { %1412 = vrot.lane.b32.xlu1 %v4625_v19, %s3781_s15  ;;  %1416 = vrot.lane.b32.xlu0 %v4628_v23, %s3781_s15 }
 0x1e1   : > { %v858_v3 = vmax.f32 %v826_v57, 0.0 }
 0x1e2   : > { %v1922_v26 = vpop.permute.xlu1 %1921  ;;  %v2191_v28 = vpop.permute.xlu0 %2190 }
 0x1e3   : > { %2012 = vst.msk [vmem:[#allocation3 + $0x30] sm:$0xff] %vm2005_vm10, %v1922_v26  ;;  %v4709_v24 = vld [vmem:[#allocation2 + $0x140] sm:$0xff] }
 0x1e4   : > { %2147 = vst.msk [vmem:[#allocation3 + $0x30] sm:$0xff] %vm2140_vm11, %v2057_v63  ;;  %v747_v14 = vpop.f32.mrf.mxu0 }
 0x1e5   : > { %2281 = vst.msk [vmem:[#allocation3 + $0x30] sm:$0xff] %vm2274_vm13, %v2191_v28  ;;  %2066 = vrot.lane.b32.xlu2 %v4490_v7, %s3786_s26 }
 0x1e6   : > { %947 = vst.msk [vmem:[#allocation2 + $0x151] sm:$0xff] %vm864_vm1, %v858_v3 }
 0x1e7   : > { %v1661_v34 = vpop.permute.xlu2 %1660  ;;  %1034 = vst.msk [vmem:[#allocation3 + $0xd8] sm:$0xff] %vm864_vm1, %v4709_v24 }
 0x1e8   : > { %1931 = vrot.lane.b32.xlu1 %v4414_v29, %s3785_s25  ;;  %2200 = vrot.lane.b32.xlu0 %v4532_v33, %s3787_s9 }
 0x1ea   : > { %v1526_v43 = vpop.permute.xlu1 %1525  ;;  %v2193_v44 = vpop.permute.xlu0 %2192 }
 0x1eb   : > { %1614 = vst.msk [vmem:[#allocation3 + $0x40] sm:$0xff] %vm1605_vm7, %v1526_v43 }
 0x1ec   : > { %1749 = vst.msk [vmem:[#allocation3 + $0x40] sm:$0xff] %vm1740_vm8, %v1661_v34  ;;  %v2313_v50 = vld [vmem:[#allocation3 + $0x30] sm:$0xff]  ;;  %v750_v27 = vpop.f32.mrf.mxu0 }
 0x1ed   : > { %3474 = vmatmul.msk.f32.gmra.mxu1 %vm2349_vm14, %v2313_v50  ;;  %1414 = vrot.lane.b32.xlu2 %v4664_v52, %s3781_s15  ;;  %v792_v45 = vmul.f32 %v4602_v4, %v750_v27  ;;  %v4779_v12 = vld [vmem:[#allocation2 + $0x150] sm:$0xff] }
 0x1ee   : > { %1035 = vst.msk [vmem:[#allocation3 + $0xe0] sm:$0xff] %vm864_vm1, %v4779_v12 }
 0x1ef   : > { %v1663_v56 = vpop.permute.xlu2 %1662 }
 0x1f0   : > { %1206 = vrot.lane.b32.xlu1 %v4673_v20, %s3780_s29  ;;  %1210 = vrot.lane.b32.xlu0 %v4676_v42, %s3780_s29 }
 0x1f2   : > { %v1924_v63 = vpop.permute.xlu1 %1923  ;;  %v1795_v2 = vpop.permute.xlu0 %1794 }
 0x1f3   : > { %2013 = vst.msk [vmem:[#allocation3 + $0x38] sm:$0xff] %vm2005_vm10, %v1924_v63  ;;  %v4762_v63 = vsel %vm1087_vm2, %v1148_v48, %v1149_v49 }
 0x1f4   : > { %2148 = vst.msk [vmem:[#allocation3 + $0x38] sm:$0xff] %vm2140_vm11, %v2059_v18  ;;  %v791_v18 = vmul.f32 %v4602_v4, %v747_v14  ;;  %v752_v3 = vpop.f32.mrf.mxu0 }
 0x1f5   : > { %2282 = vst.msk [vmem:[#allocation3 + $0x38] sm:$0xff] %vm2274_vm13, %v2193_v44  ;;  %1208 = vrot.lane.b32.xlu2 %v4688_v51, %s3780_s29  ;;  %v793_v9 = vmul.f32 %v4602_v4, %v752_v3 }
 0x1f6   : > { %1883 = vst.msk [vmem:[#allocation3 + $0x40] sm:$0xff] %vm1874_vm9, %v1795_v2  ;;  %v827_v28 = vadd.f32 %v4575_v55, %v791_v18  ;;  %v988_v2 = vld [vmem:[#allocation2 + $0x118] sm:$0x3] }
 0x1f7   : > { %v1403_v13 = vpop.permute.xlu2 %1402  ;;  %v829_v16 = vadd.f32 %v4575_v55, %v793_v9  ;;  %v3657_v18 = vld [vmem:[%s3954_s19 + $0x8] sm:$0xff]  ;;  %v1356_v4 = vrot.slane %v988_v2, 2 }
 0x1f8   : > { %1533 = vrot.lane.b32.xlu1 %v4424_v32, %s3782_s20  ;;  %1802 = vrot.lane.b32.xlu0 %v4521_v22, %s3784_s21  ;;  %v1348_v32 = vrot.slane %v4556_v21, 2  ;;  %v1353_v22 = vrot.slane %v4605_v6, 2  ;;  %v859_v37 = vmax.f32 %v827_v28, 0.0 }
 0x1f9   : > { %3538 = vmatmul.msk.bf16.gmra.mxu3 %vm622_vm0, %v3657_v18  ;;  %v861_v30 = vmax.f32 %v829_v16, 0.0  ;;  %v1151_v18 = vrot.slane %v4775_v5, 1 }
 0x1fa   : > { %v1528_v25 = vpop.permute.xlu1 %1527  ;;  %v1797_v26 = vpop.permute.xlu0 %1796  ;;  %948 = vst.msk [vmem:[#allocation2 + $0x159] sm:$0xff] %vm864_vm1, %v859_v37  ;;  %v4734_v43 = vsel %vm1297_vm4, %v1348_v32, %v1349_v15  ;;  %v4739_v44 = vsel %vm1297_vm4, %v1353_v22, %v1354_v31  ;;  %v4812_v22 = vld [vmem:[%s5890_s6] ss:$0 sm:$0xff] }
 0x1fb   : > { %1615 = vst.msk [vmem:[#allocation3 + $0x48] sm:$0xff] %vm1605_vm7, %v1528_v25  ;;  %v1359_v25 = vrot.slane %v4652_v41, 2 }
 0x1fc   : > { %1750 = vst.msk [vmem:[#allocation3 + $0x48] sm:$0xff] %vm1740_vm8, %v1663_v56  ;;  %v2314_v34 = vld [vmem:[#allocation3 + $0x38] sm:$0xff]  ;;  %v828_v56 = vadd.f32 %v4575_v55, %v792_v45  ;;  %v4803_v55 = vld [vmem:[%s5889_s5] ss:$0 sm:$0xff] }
 0x1fd   : > { %1884 = vst.msk [vmem:[#allocation3 + $0x48] sm:$0xff] %vm1874_vm9, %v1797_v26  ;;  %3475 = vmatmul.msk.f32.gmra.mxu1 %vm2349_vm14, %v2314_v34  ;;  %1420 = vrot.lane.b32.xlu2 %v4722_v35, %s3781_s15  ;;  %v1361_v26 = vrot.slane %v4775_v5, 2  ;;  %v4817_v34 = vsel %vm1297_vm4, %v1354_v31, %v1356_v4  ;;  %v1154_v4 = vrot.slane %v4709_v24, 1 }
 0x1fe   : > { %v860_v62 = vmax.f32 %v828_v56, 0.0  ;;  %950 = vst.msk [vmem:[#allocation2 + $0x171] sm:$0xff] %vm864_vm1, %v861_v30 }
 0x1ff   : > { %v4731_v40 = vpop.permute.xlu2 %2060  ;;  %v4820_v37 = vsel %vm1297_vm4, %v1359_v25, %v1361_v26 }
 0x200   : > { %1418 = vrot.lane.b32.xlu1 %v4734_v43, %s3781_s15  ;;  %1422 = vrot.lane.b32.xlu0 %v4739_v44, %s3781_s15  ;;  %949 = vst.msk [vmem:[#allocation2 + $0x169] sm:$0xff] %vm864_vm1, %v860_v62 }
 0x202   : > { %v1189_v50 = vpop.permute.xlu1 %1188  ;;  %v1193_v54 = vpop.permute.xlu0 %1192 }
 0x203   : > { %1275 = vst.msk [vmem:[#allocation3 + $0x50] sm:$0xff] %vm1264_vm5, %v1189_v50 }
 0x204   : > { %1485 = vst.msk [vmem:[#allocation3 + $0x50] sm:$0xff] %vm1474_vm6, %v4609_v10  ;;  %v4768_v10 = vsel %vm1087_vm2, %v1143_v58, %v1144_v60  ;;  %v1358_v58 = vrot.slane %v4642_v36, 2 }
 0x205   : > { %1277 = vst.msk [vmem:[#allocation3 + $0x60] sm:$0xff] %vm1264_vm5, %v1193_v54  ;;  %1668 = vrot.lane.b32.xlu2 %v4514_v17, %s3783_s27  ;;  %v1146_v17 = vrot.slane %v988_v2, 1 }
 0x206   : > { %1487 = vst.msk [vmem:[#allocation3 + $0x60] sm:$0xff] %vm1474_vm6, %v1403_v13  ;;  %v4781_v13 = vld [vmem:[#allocation2 + $0x158] sm:$0xff] }
 0x207   : > { %v4765_v57 = vpop.permute.xlu2 %2062  ;;  %v4794_v28 = vsel %vm1087_vm2, %v1144_v60, %v1146_v17  ;;  %1036 = vst.msk [vmem:[#allocation3 + $0xe8] sm:$0xff] %vm864_vm1, %v4781_v13  ;;  %v994_v60 = vld [vmem:[#allocation2 + $0x148] sm:$0x3]  ;;  %v4851_v3 = vld [vmem:[#allocation2 + $0x170] sm:$0xff] }
 0x208   : > { %1212 = vrot.lane.b32.xlu1 %v4768_v10, %s3780_s29  ;;  %1216 = vrot.lane.b32.xlu0 %v4762_v63, %s3780_s29  ;;  %v4848_v62 = vld [vmem:[#allocation2 + $0x168] sm:$0xff]  ;;  %1038 = vst.msk [vmem:[#allocation3 + $0xf8] sm:$0xff] %vm864_vm1, %v4851_v3  ;;  %v1156_v26 = vrot.slane %v994_v60, 1 }
 0x209   : > { %1037 = vst.msk [vmem:[#allocation3 + $0xf0] sm:$0xff] %vm864_vm1, %v4848_v62 }
 0x20a   : > { %v1401_v14 = vpop.permute.xlu1 %1400  ;;  %v4783_v15 = vpop.permute.xlu0 %1404 }
 0x20b   : > { %1486 = vst.msk [vmem:[#allocation3 + $0x58] sm:$0xff] %vm1474_vm6, %v1401_v14  ;;  %v3658_v14 = vld [vmem:[%s3954_s19 + $0x10] sm:$0xff] }
 0x20c   : > { %3539 = vmatmul.msk.bf16.gmra.mxu3 %vm622_vm0, %v3658_v14 }
 0x20d   : > { %1214 = vrot.lane.b32.xlu2 %v4794_v28, %s3780_s29 }
 0x20f   : > { %v1665_v32 = vpop.permute.xlu2 %1664 }
 0x210   : > { %v2467_v27 = vpop.f32.mrf.mxu1  ;;  %1424 = vrot.lane.b32.xlu1 %v4817_v34, %s3781_s15  ;;  %1428 = vrot.lane.b32.xlu0 %v4820_v37, %s3781_s15 }
 0x211   : > { %v2567_v45 = vmul.f32 %v4803_v55, %v2467_v27  ;;  %v4865_v27 = vsel %vm1297_vm4, %v1358_v58, %v1359_v25 }
 0x212   : > { %v1926_v48 = vpop.permute.xlu1 %1925  ;;  %v2195_v50 = vpop.permute.xlu0 %2194 }
 0x213   : > { %v2603_v54 = vadd.f32 %v4812_v22, %v2567_v45  ;;  %2014 = vst.msk [vmem:[#allocation3 + $0x40] sm:$0xff] %vm2005_vm10, %v1926_v48  ;;  %v4876_v48 = vsel %vm1087_vm2, %v1149_v49, %v1151_v18 }
 0x214   : > { %2149 = vst.msk [vmem:[#allocation3 + $0x40] sm:$0xff] %vm2140_vm11, %v4731_v40 }
 0x215   : > { %2283 = vst.msk [vmem:[#allocation3 + $0x40] sm:$0xff] %vm2274_vm13, %v2195_v50  ;;  %2068 = vrot.lane.b32.xlu2 %v4593_v1, %s3786_s26  ;;  %v2635_v31 = vmax.f32 %v2603_v54, 0.0  ;;  %v1153_v50 = vrot.slane %v4724_v39, 1 }
 0x217   : > { %2667 = vst.msk [vmem:[%s4834_s23] sm:$0xff] %vm864_vm1, %v2635_v31  ;;  %3501 = vmatmul.msk.f32.vlgmr.msra.gmra.mxu2 %vm864_vm1, %v2635_v31  ;;  %v1197_v56 = vpop.permute.xlu2 %1196 }
 0x218   : > { %1279 = vst.msk [vmem:[#allocation3 + $0x70] sm:$0xff] %vm1264_vm5, %v1197_v56  ;;  %v2470_v40 = vpop.f32.mrf.mxu1  ;;  %1933 = vrot.lane.b32.xlu1 %v4456_v53, %s3785_s25  ;;  %2202 = vrot.lane.b32.xlu0 %v4559_v47, %s3787_s9 }
 0x219   : > { %v2568_v2 = vmul.f32 %v4803_v55, %v2470_v40  ;;  %v4892_v40 = vsel %vm1087_vm2, %v1153_v50, %v1154_v4 }
 0x21a   : > { %v1530_v17 = vpop.permute.xlu1 %1529  ;;  %v2197_v9 = vpop.permute.xlu0 %2196 }
 0x21b   : > { %v2604_v16 = vadd.f32 %v4812_v22, %v2568_v2  ;;  %1616 = vst.msk [vmem:[#allocation3 + $0x50] sm:$0xff] %vm1605_vm7, %v1530_v17  ;;  %v1366_v17 = vrot.slane %v994_v60, 2 }
 0x21c   : > { %1751 = vst.msk [vmem:[#allocation3 + $0x50] sm:$0xff] %vm1740_vm8, %v1665_v32  ;;  %v2315_v30 = vld [vmem:[#allocation3 + $0x40] sm:$0xff]  ;;  %v4879_v32 = vsel %vm1087_vm2, %v1154_v4, %v1156_v26  ;;  %v1363_v26 = vrot.slane %v4724_v39, 2 }
 0x21d   : > { %3476 = vmatmul.msk.f32.gmra.mxu1 %vm2349_vm14, %v2315_v30  ;;  %1426 = vrot.lane.b32.xlu2 %v4865_v27, %s3781_s15  ;;  %v2636_v45 = vmax.f32 %v2604_v16, 0.0  ;;  %v3659_v16 = vld [vmem:[%s3954_s19 + $0x18] sm:$0xff] }
 0x21e   : > { %3540 = vmatmul.msk.bf16.gmra.mxu3 %vm622_vm0, %v3659_v16 }
 0x21f   : > { %2668 = vst.msk [vmem:[%s4834_s23 + $0x8] sm:$0xff] %vm864_vm1, %v2636_v45  ;;  %3502 = vmatmul.msk.f32.gmra.mxu2 %vm864_vm1, %v2636_v45  ;;  %v1409_v5 = vpop.permute.xlu2 %1408 }
 0x220   : > { %v2473_v25 = vpop.f32.mrf.mxu1  ;;  %1218 = vrot.lane.b32.xlu1 %v4876_v48, %s3780_s29  ;;  %1222 = vrot.lane.b32.xlu0 %v4879_v32, %s3780_s29 }
 0x221   : > { %v2569_v54 = vmul.f32 %v4803_v55, %v2473_v25 }
 0x222   : > { %v1928_v31 = vpop.permute.xlu1 %1927  ;;  %v1799_v56 = vpop.permute.xlu0 %1798 }
 0x223   : > { %v2605_v49 = vadd.f32 %v4812_v22, %v2569_v54  ;;  %2015 = vst.msk [vmem:[#allocation3 + $0x48] sm:$0xff] %vm2005_vm10, %v1928_v31 }
 0x224   : > { %2150 = vst.msk [vmem:[#allocation3 + $0x48] sm:$0xff] %vm2140_vm11, %v4765_v57  ;;  %v1364_v57 = vrot.slane %v4709_v24, 2 }
 0x225   : > { %2284 = vst.msk [vmem:[#allocation3 + $0x48] sm:$0xff] %vm2274_vm13, %v2197_v9  ;;  %1220 = vrot.lane.b32.xlu2 %v4892_v40, %s3780_s29  ;;  %v2637_v58 = vmax.f32 %v2605_v49, 0.0 }
 0x226   : > { %1885 = vst.msk [vmem:[#allocation3 + $0x50] sm:$0xff] %vm1874_vm9, %v1799_v56  ;;  %v4915_v30 = vsel %vm1297_vm4, %v1364_v57, %v1366_v17  ;;  %v4923_v50 = vsel %vm1297_vm4, %v1363_v26, %v1364_v57  ;;  %v1164_v56 = vrot.slane %v4851_v3, 1  ;;  %v1158_v57 = vrot.slane %v4779_v12, 1  ;;  %v3660_v26 = vld [vmem:[%s3954_s19 + $0x20] sm:$0xff] }
 0x227   : > { %2669 = vst.msk [vmem:[%s4834_s23 + $0x10] sm:$0xff] %vm864_vm1, %v2637_v58  ;;  %3503 = vmatmul.msk.f32.gmra.mxu2 %vm864_vm1, %v2637_v58  ;;  %v2065_v2 = vpop.permute.xlu2 %2064  ;;  %v1159_v17 = vrot.slane %v4781_v13, 1 }
 0x228   : > { %1535 = vrot.lane.b32.xlu1 %v4414_v29, %s3782_s20  ;;  %1804 = vrot.lane.b32.xlu0 %v4532_v33, %s3784_s21  ;;  %v1368_v29 = vrot.slane %v4779_v12, 2  ;;  %v1369_v33 = vrot.slane %v4781_v13, 2 }
 0x22a   : > { %v2476_v9 = vpop.f32.mrf.mxu1  ;;  %v1532_v14 = vpop.permute.xlu1 %1531  ;;  %v4926_v54 = vsel %vm1297_vm4, %v1368_v29, %v1369_v33 }
 0x22b   : > { %v2570_v18 = vmul.f32 %v4803_v55, %v2476_v9  ;;  %1617 = vst.msk [vmem:[#allocation3 + $0x58] sm:$0xff] %vm1605_vm7, %v1532_v14  ;;  %v1199_v4 = vpop.permute.xlu0 %1198  ;;  %v997_v14 = vld [vmem:[#allocation2 + $0x160] sm:$0x3] }
 0x22c   : > { %1280 = vst.msk [vmem:[#allocation3 + $0x78] sm:$0xff] %vm1264_vm5, %v1199_v4  ;;  %v2316_v60 = vld [vmem:[#allocation3 + $0x48] sm:$0xff] }
 0x22d   : > { %v2606_v45 = vadd.f32 %v4812_v22, %v2570_v18  ;;  %1490 = vst.msk [vmem:[#allocation3 + $0x78] sm:$0xff] %vm1474_vm6, %v1409_v5  ;;  %3477 = vmatmul.msk.f32.gmra.mxu1 %vm2349_vm14, %v2316_v60  ;;  %1432 = vrot.lane.b32.xlu2 %v4915_v30, %s3781_s15  ;;  %v1163_v5 = vrot.slane %v4848_v62, 1  ;;  %v4951_v18 = vsel %vm1087_vm2, %v1158_v57, %v1159_v17  ;;  %v1371_v60 = vrot.slane %v997_v14, 2 }
 0x22e   : > { %3541 = vmatmul.msk.bf16.gmra.mxu3 %vm622_vm0, %v3660_v26  ;;  %v1373_v26 = vrot.slane %v4848_v62, 2 }
 0x22f   : > { %v1667_v25 = vpop.permute.xlu2 %1666  ;;  %v2638_v31 = vmax.f32 %v2606_v45, 0.0  ;;  %v4948_v9 = vsel %vm1087_vm2, %v1163_v5, %v1164_v56  ;;  %v1374_v45 = vrot.slane %v4851_v3, 2 }
 0x230   : > { %1752 = vst.msk [vmem:[#allocation3 + $0x58] sm:$0xff] %vm1740_vm8, %v1667_v25  ;;  %1430 = vrot.lane.b32.xlu1 %v4923_v50, %s3781_s15  ;;  %1434 = vrot.lane.b32.xlu0 %v4926_v54, %s3781_s15 }
 0x231   : > { %2670 = vst.msk [vmem:[%s4834_s23 + $0x18] sm:$0xff] %vm864_vm1, %v2638_v31  ;;  %3504 = vmatmul.msk.f32.gmra.mxu2 %vm864_vm1, %v2638_v31 }
 0x232   : > { %v1195_v49 = vpop.permute.xlu1 %1194 }
 0x233   : > { %1278 = vst.msk [vmem:[#allocation3 + $0x68] sm:$0xff] %vm1264_vm5, %v1195_v49  ;;  %v2199_v58 = vpop.permute.xlu0 %2198  ;;  %v4971_v49 = vsel %vm1297_vm4, %v1369_v33, %v1371_v60  ;;  %v3661_v60 = vld [vmem:[%s3954_s19 + $0x28] sm:$0xff] }
 0x234   : > { %1488 = vst.msk [vmem:[#allocation3 + $0x68] sm:$0xff] %vm1474_vm6, %v4783_v15  ;;  %v1161_v15 = vrot.slane %v997_v14, 1 }
 0x235   : > { %1670 = vrot.lane.b32.xlu2 %v4490_v7, %s3783_s27  ;;  %v1000_v7 = vld [vmem:[#allocation2 + $0x178] sm:$0x3] }
 0x236   : > { %v1376_v25 = vrot.slane %v1000_v7, 2  ;;  %v4964_v31 = vsel %vm1087_vm2, %v1159_v17, %v1161_v15 }
 0x237   : > { %v1203_v16 = vpop.permute.xlu2 %1202 }
 0x238   : > { %1282 = vst.msk [vmem:[#allocation3 + $0x88] sm:$0xff] %vm1264_vm5, %v1203_v16  ;;  %1224 = vrot.lane.b32.xlu1 %v4951_v18, %s3780_s29  ;;  %1228 = vrot.lane.b32.xlu0 %v4948_v9, %s3780_s29  ;;  %v4974_v57 = vsel %vm1297_vm4, %v1374_v45, %v1376_v25 }
 0x23a   : > { %v1930_v4 = vpop.permute.xlu1 %1929 }
 0x23b   : > { %2016 = vst.msk [vmem:[#allocation3 + $0x50] sm:$0xff] %vm2005_vm10, %v1930_v4  ;;  %v1801_v29 = vpop.permute.xlu0 %1800 }
 0x23c   : > { %2151 = vst.msk [vmem:[#allocation3 + $0x50] sm:$0xff] %vm2140_vm11, %v2065_v2 }
 0x23d   : > { %2285 = vst.msk [vmem:[#allocation3 + $0x50] sm:$0xff] %vm2274_vm13, %v2199_v58  ;;  %1226 = vrot.lane.b32.xlu2 %v4964_v31, %s3780_s29 }
 0x23e   : > { %1886 = vst.msk [vmem:[#allocation3 + $0x58] sm:$0xff] %vm1874_vm9, %v1801_v29  ;;  %3542 = vmatmul.msk.bf16.gmra.mxu3 %vm622_vm0, %v3661_v60 }
 0x23f   : > { %v2067_v5 = vpop.permute.xlu2 %2066 }
 0x240   : > { %1436 = vrot.lane.b32.xlu1 %v4971_v49, %s3781_s15  ;;  %1440 = vrot.lane.b32.xlu0 %v4974_v57, %s3781_s15 }
 0x242   : > { %v2479_v2 = vpop.f32.mrf.mxu1  ;;  %v1407_v58 = vpop.permute.xlu1 %1406 }
 0x243   : > { %v2571_v17 = vmul.f32 %v4803_v55, %v2479_v2  ;;  %1489 = vst.msk [vmem:[#allocation3 + $0x70] sm:$0xff] %vm1474_vm6, %v1407_v58  ;;  %v1411_v14 = vpop.permute.xlu0 %1410  ;;  %v1166_v2 = vrot.slane %v1000_v7, 1  ;;  %v4999_v58 = vsel %vm1297_vm4, %v1373_v26, %v1374_v45  ;;  %v3662_v26 = vld [vmem:[%s3954_s19 + $0x30] sm:$0xff] }
 0x244   : > { %v2317_v33 = vld [vmem:[#allocation3 + $0x50] sm:$0xff] }
 0x245   : > { %v2607_v16 = vadd.f32 %v4812_v22, %v2571_v17  ;;  %3478 = vmatmul.msk.f32.gmra.mxu1 %vm2349_vm14, %v2317_v33  ;;  %2070 = vrot.lane.b32.xlu2 %v4617_v46, %s3786_s26  ;;  %v5008_v33 = vsel %vm1087_vm2, %v1164_v56, %v1166_v2 }
 0x247   : > { %v1415_v15 = vpop.permute.xlu2 %1414  ;;  %v2639_v4 = vmax.f32 %v2607_v16, 0.0 }
 0x248   : > { %1935 = vrot.lane.b32.xlu1 %v4468_v59, %s3785_s25  ;;  %2204 = vrot.lane.b32.xlu0 %v4625_v19, %s3787_s9 }
 0x249   : > { %2671 = vst.msk [vmem:[%s4834_s23 + $0x20] sm:$0xff] %vm864_vm1, %v2639_v4  ;;  %3505 = vmatmul.msk.f32.gmra.mxu2 %vm864_vm1, %v2639_v4 }
 0x24a   : > { %v1201_v29 = vpop.permute.xlu1 %1200 }
 0x24b   : > { %1281 = vst.msk [vmem:[#allocation3 + $0x80] sm:$0xff] %vm1264_vm5, %v1201_v29  ;;  %v1205_v25 = vpop.permute.xlu0 %1204 }
 0x24c   : > { %1491 = vst.msk [vmem:[#allocation3 + $0x80] sm:$0xff] %vm1474_vm6, %v1411_v14 }
 0x24d   : > { %1283 = vst.msk [vmem:[#allocation3 + $0x90] sm:$0xff] %vm1264_vm5, %v1205_v25  ;;  %1438 = vrot.lane.b32.xlu2 %v4999_v58, %s3781_s15 }
 0x24e   : > { %1493 = vst.msk [vmem:[#allocation3 + $0x90] sm:$0xff] %vm1474_vm6, %v1415_v15  ;;  %3543 = vmatmul.msk.bf16.gmra.mxu3 %vm622_vm0, %v3662_v26 }
 0x24f   : > { %v1209_v17 = vpop.permute.xlu2 %1208 }
 0x250   : > { %1285 = vst.msk [vmem:[#allocation3 + $0xa0] sm:$0xff] %vm1264_vm5, %v1209_v17  ;;  %1230 = vrot.lane.b32.xlu1 %v5008_v33, %s3780_s29  ;;  %1806 = vrot.lane.b32.xlu0 %v4559_v47, %s3784_s21  ;;  %v3663_v17 = vld [vmem:[%s3954_s19 + $0x38] sm:$0xff]  ;;  %s5170_s29 = scalar_lea.vmem [#allocation7], %s3380_s22 }
 0x252   : > { %v2482_v7 = vpop.f32.mrf.mxu1  ;;  %v1413_v45 = vpop.permute.xlu1 %1412 }
 0x253   : > { %v2572_v14 = vmul.f32 %v4803_v55, %v2482_v7  ;;  %1492 = vst.msk [vmem:[#allocation3 + $0x88] sm:$0xff] %vm1474_vm6, %v1413_v45  ;;  %v1417_v16 = vpop.permute.xlu0 %1416 }
 0x255   : > { %v2608_v15 = vadd.f32 %v4812_v22, %v2572_v14  ;;  %1672 = vrot.lane.b32.xlu2 %v4593_v1, %s3783_s27 }
 0x257   : > { %v1421_v56 = vpop.permute.xlu2 %1420  ;;  %v2640_v4 = vmax.f32 %v2608_v15, 0.0 }
 0x258   : > { %1537 = vrot.lane.b32.xlu1 %v4456_v53, %s3782_s20  ;;  %2206 = vrot.lane.b32.xlu0 %v4664_v52, %s3787_s9 }
 0x259   : > { %2672 = vst.msk [vmem:[%s4834_s23 + $0x28] sm:$0xff] %vm864_vm1, %v2640_v4  ;;  %3506 = vmatmul.msk.f32.gmra.mxu2 %vm864_vm1, %v2640_v4 }
 0x25a   : > { %v1932_v47 = vpop.permute.xlu1 %1931 }
 0x25b   : > { %2017 = vst.msk [vmem:[#allocation3 + $0x58] sm:$0xff] %vm2005_vm10, %v1932_v47  ;;  %v2201_v29 = vpop.permute.xlu0 %2200  ;;  %v3664_v47 = vld [vmem:[%s3954_s19 + $0x40] sm:$0xff] }
 0x25c   : > { %2152 = vst.msk [vmem:[#allocation3 + $0x58] sm:$0xff] %vm2140_vm11, %v2067_v5 }
 0x25d   : > { %2286 = vst.msk [vmem:[#allocation3 + $0x58] sm:$0xff] %vm2274_vm13, %v2201_v29  ;;  %2072 = vrot.lane.b32.xlu2 %v4589_v61, %s3786_s26 }
 0x25e   : > { %3544 = vmatmul.msk.bf16.gmra.mxu3 %vm622_vm0, %v3663_v17  ;;  %v3002_v17 = vpop.f32.mrf.mxu3 }
 0x25f   : > { %v1669_v53 = vpop.permute.xlu2 %1668 }
 0x260   : > { %1937 = vrot.lane.b32.xlu1 %v4494_v11, %s3785_s25  ;;  %1808 = vrot.lane.b32.xlu0 %v4625_v19, %s3784_s21 }
 0x262   : > { %v1207_v1 = vpop.permute.xlu1 %1206 }
 0x263   : > { %1284 = vst.msk [vmem:[#allocation3 + $0x98] sm:$0xff] %vm1264_vm5, %v1207_v1  ;;  %v1211_v60 = vpop.permute.xlu0 %1210 }
 0x264   : > { %1494 = vst.msk [vmem:[#allocation3 + $0x98] sm:$0xff] %vm1474_vm6, %v1417_v16  ;;  %v2318_v5 = vld [vmem:[#allocation3 + $0x58] sm:$0xff] }
 0x265   : > { %1286 = vst.msk [vmem:[#allocation3 + $0xa8] sm:$0xff] %vm1264_vm5, %v1211_v60  ;;  %3479 = vmatmul.msk.f32.gmra.mxu1 %vm2349_vm14, %v2318_v5  ;;  %1674 = vrot.lane.b32.xlu2 %v4617_v46, %s3783_s27  ;;  %v5092_v60 = vld [vmem:[%s3954_s19 + $0x78] sm:$0xff] }
 0x266   : > { %1496 = vst.msk [vmem:[#allocation3 + $0xa8] sm:$0xff] %vm1474_vm6, %v1421_v56  ;;  %3466 = vmatmul.msk.bf16.gmra.mxu0 %vm622_vm0, %v5092_v60 }
 0x267   : > { %v1215_v25 = vpop.permute.xlu2 %1214 }
 0x268   : > { %1288 = vst.msk [vmem:[#allocation3 + $0xb8] sm:$0xff] %vm1264_vm5, %v1215_v25  ;;  %1539 = vrot.lane.b32.xlu1 %v4468_v59, %s3782_s20  ;;  %2208 = vrot.lane.b32.xlu0 %v4628_v23, %s3787_s9 }
 0x26a   : > { %v2485_v19 = vpop.f32.mrf.mxu1  ;;  %v1534_v2 = vpop.permute.xlu1 %1533 }
 0x26b   : > { %v2573_v7 = vmul.f32 %v4803_v55, %v2485_v19  ;;  %1618 = vst.msk [vmem:[#allocation3 + $0x60] sm:$0xff] %vm1605_vm7, %v1534_v2  ;;  %v1803_v46 = vpop.permute.xlu0 %1802  ;;  %v3665_v19 = vld [vmem:[%s3954_s19 + $0x48] sm:$0xff] }
 0x26c   : > { %1753 = vst.msk [vmem:[#allocation3 + $0x60] sm:$0xff] %vm1740_vm8, %v1669_v53 }
 0x26d   : > { %v2609_v45 = vadd.f32 %v4812_v22, %v2573_v7  ;;  %1887 = vst.msk [vmem:[#allocation3 + $0x60] sm:$0xff] %vm1874_vm9, %v1803_v46  ;;  %2074 = vrot.lane.b32.xlu2 %v4673_v20, %s3786_s26  ;;  %v5118_v46 = vld [vmem:[%s5895_s11] ss:$0 sm:$0xff] }
 0x26e   : > { %3545 = vmatmul.msk.bf16.gmra.mxu3 %vm622_vm0, %v3664_v47 }
 0x26f   : > { %v2069_v59 = vpop.permute.xlu2 %2068  ;;  %v2641_v14 = vmax.f32 %v2609_v45, 0.0 }
 0x270   : > { %1939 = vrot.lane.b32.xlu1 %v4502_v0, %s3785_s25  ;;  %1810 = vrot.lane.b32.xlu0 %v4664_v52, %s3784_s21 }
 0x271   : > { %2673 = vst.msk [vmem:[%s4834_s23 + $0x30] sm:$0xff] %vm864_vm1, %v2641_v14  ;;  %3507 = vmatmul.msk.f32.gmra.mxu2 %vm864_vm1, %v2641_v14  ;;  %v3086_v14 = vmul.f32 %v5118_v46, %v3002_v17 }
 0x272   : > { %v1419_v16 = vpop.permute.xlu1 %1418 }
 0x273   : > { %1495 = vst.msk [vmem:[#allocation3 + $0xa0] sm:$0xff] %vm1474_vm6, %v1419_v16  ;;  %v1423_v15 = vpop.permute.xlu0 %1422  ;;  %v5135_v16 = vld [vmem:[%s5896_s12] ss:$0 sm:$0xff] }
 0x275   : > { %1676 = vrot.lane.b32.xlu2 %v4589_v61, %s3783_s27 }
 0x277   : > { %v1427_v56 = vpop.permute.xlu2 %1426 }
 0x278   : > { %1541 = vrot.lane.b32.xlu1 %v4494_v11, %s3782_s20  ;;  %2210 = vrot.lane.b32.xlu0 %v4734_v43, %s3787_s9 }
 0x27a   : > { %v2488_v4 = vpop.f32.mrf.mxu1  ;;  %v1213_v52 = vpop.permute.xlu1 %1212 }
 0x27b   : > { %v2574_v26 = vmul.f32 %v4803_v55, %v2488_v4  ;;  %1287 = vst.msk [vmem:[#allocation3 + $0xb0] sm:$0xff] %vm1264_vm5, %v1213_v52  ;;  %v1217_v29 = vpop.permute.xlu0 %1216  ;;  %v3666_v52 = vld [vmem:[%s3954_s19 + $0x50] sm:$0xff] }
 0x27c   : > { %1497 = vst.msk [vmem:[#allocation3 + $0xb0] sm:$0xff] %vm1474_vm6, %v1423_v15  ;;  %v3004_v15 = vpop.f32.mrf.mxu3 }
 0x27d   : > { %v2610_v61 = vadd.f32 %v4812_v22, %v2574_v26  ;;  %1289 = vst.msk [vmem:[#allocation3 + $0xc0] sm:$0xff] %vm1264_vm5, %v1217_v29  ;;  %2076 = vrot.lane.b32.xlu2 %v4688_v51, %s3786_s26 }
 0x27e   : > { %1499 = vst.msk [vmem:[#allocation3 + $0xc0] sm:$0xff] %vm1474_vm6, %v1427_v56  ;;  %3546 = vmatmul.msk.bf16.gmra.mxu3 %vm622_vm0, %v3665_v19 }
 0x27f   : > { %v1221_v11 = vpop.permute.xlu2 %1220  ;;  %v2642_v53 = vmax.f32 %v2610_v61, 0.0 }
 0x280   : > { %1291 = vst.msk [vmem:[#allocation3 + $0xd0] sm:$0xff] %vm1264_vm5, %v1221_v11  ;;  %1941 = vrot.lane.b32.xlu1 %v4556_v21, %s3785_s25  ;;  %1812 = vrot.lane.b32.xlu0 %v4628_v23, %s3784_s21 }
 0x281   : > { %2674 = vst.msk [vmem:[%s4834_s23 + $0x38] sm:$0xff] %vm864_vm1, %v2642_v53  ;;  %3508 = vmatmul.msk.f32.gmra.mxu2 %vm864_vm1, %v2642_v53 }
 0x282   : > { %v1425_v1 = vpop.permute.xlu1 %1424 }
 0x283   : > { %1498 = vst.msk [vmem:[#allocation3 + $0xb8] sm:$0xff] %vm1474_vm6, %v1425_v1  ;;  %v1429_v5 = vpop.permute.xlu0 %1428 }
 0x285   : > { %1678 = vrot.lane.b32.xlu2 %v4673_v20, %s3783_s27 }
 0x287   : > { %v1433_v25 = vpop.permute.xlu2 %1432 }
 0x288   : > { %1543 = vrot.lane.b32.xlu1 %v4502_v0, %s3782_s20  ;;  %2212 = vrot.lane.b32.xlu0 %v4722_v35, %s3787_s9 }
 0x28a   : > { %v1934_v23 = vpop.permute.xlu1 %1933 }
 0x28b   : > { %2018 = vst.msk [vmem:[#allocation3 + $0x60] sm:$0xff] %vm2005_vm10, %v1934_v23  ;;  %v2203_v2 = vpop.permute.xlu0 %2202  ;;  %v3087_v23 = vmul.f32 %v5118_v46, %v3004_v15 }
 0x28c   : > { %2153 = vst.msk [vmem:[#allocation3 + $0x60] sm:$0xff] %vm2140_vm11, %v2069_v59  ;;  %v5129_v59 = vld [vmem:[%s5892_s8] ss:$0 sm:$0xff] }
 0x28d   : > { %2287 = vst.msk [vmem:[#allocation3 + $0x60] sm:$0xff] %vm2274_vm13, %v2203_v2  ;;  %2078 = vrot.lane.b32.xlu2 %v4676_v42, %s3786_s26  ;;  %v3123_v17 = vadd.f32 %v5135_v16, %v3087_v23 }
 0x28e   : > { %3547 = vmatmul.msk.bf16.gmra.mxu3 %vm622_vm0, %v3666_v52 }
 0x28f   : > { %v1671_v20 = vpop.permute.xlu2 %1670 }
 0x290   : > { %1943 = vrot.lane.b32.xlu1 %v4543_v38, %s3785_s25  ;;  %1814 = vrot.lane.b32.xlu0 %v4734_v43, %s3784_s21 }
 0x292   : > { %v1219_v0 = vpop.permute.xlu1 %1218 }
 0x293   : > { %1290 = vst.msk [vmem:[#allocation3 + $0xc8] sm:$0xff] %vm1264_vm5, %v1219_v0  ;;  %v1223_v7 = vpop.permute.xlu0 %1222 }
 0x294   : > { %1500 = vst.msk [vmem:[#allocation3 + $0xc8] sm:$0xff] %vm1474_vm6, %v1429_v5  ;;  %v2319_v45 = vld [vmem:[#allocation3 + $0x60] sm:$0xff] }
 0x295   : > { %1292 = vst.msk [vmem:[#allocation3 + $0xd8] sm:$0xff] %vm1264_vm5, %v1223_v7  ;;  %3480 = vmatmul.msk.f32.gmra.mxu1 %vm2349_vm14, %v2319_v45  ;;  %1680 = vrot.lane.b32.xlu2 %v4688_v51, %s3783_s27  ;;  %v5145_v51 = vld [vmem:[%s5925_s13] ss:$0 sm:$0xff] }
 0x296   : > { %1502 = vst.msk [vmem:[#allocation3 + $0xd8] sm:$0xff] %vm1474_vm6, %v1433_v25 }
 0x297   : > { %v1227_v43 = vpop.permute.xlu2 %1226 }
 0x298   : > { %1294 = vst.msk [vmem:[#allocation3 + $0xe8] sm:$0xff] %vm1264_vm5, %v1227_v43  ;;  %1545 = vrot.lane.b32.xlu1 %v4556_v21, %s3782_s20  ;;  %2214 = vrot.lane.b32.xlu0 %v4739_v44, %s3787_s9  ;;  %v3122_v21 = vadd.f32 %v5135_v16, %v3086_v14 }
 0x29a   : > { %v2491_v56 = vpop.f32.mrf.mxu1  ;;  %v2817_v4 = vpop.f32.mrf.mxu2 }
 0x29b   : > { %v2575_v47 = vmul.f32 %v4803_v55, %v2491_v56  ;;  %v2917_v26 = vmul.f32 %v5129_v59, %v2817_v4  ;;  %v1536_v29 = vpop.permute.xlu1 %1535  ;;  %v1805_v61 = vpop.permute.xlu0 %1804 }
 0x29c   : > { %1619 = vst.msk [vmem:[#allocation3 + $0x68] sm:$0xff] %vm1605_vm7, %v1536_v29 }
 0x29d   : > { %v2611_v11 = vadd.f32 %v4812_v22, %v2575_v47  ;;  %v2953_v53 = vadd.f32 %v5145_v51, %v2917_v26  ;;  %1754 = vst.msk [vmem:[#allocation3 + $0x68] sm:$0xff] %vm1740_vm8, %v1671_v20  ;;  %2080 = vrot.lane.b32.xlu2 %v4768_v10, %s3786_s26  ;;  %v3667_v47 = vld [vmem:[%s3954_s19 + $0x58] sm:$0xff] }
 0x29e   : > { %1888 = vst.msk [vmem:[#allocation3 + $0x68] sm:$0xff] %vm1874_vm9, %v1805_v61  ;;  %3548 = vmatmul.msk.bf16.gmra.mxu3 %vm622_vm0, %v3667_v47 }
 0x29f   : > { %v2643_v1 = vmax.f32 %v2611_v11, 0.0  ;;  %v3154_v5 = vadd.f32 %v3122_v21, %v2953_v53  ;;  %v5160_v25 = vpop.permute.xlu2 %2070 }
 0x2a0   : > { %1945 = vrot.lane.b32.xlu1 %v4605_v6, %s3785_s25  ;;  %1816 = vrot.lane.b32.xlu0 %v4722_v35, %s3784_s21  ;;  %v3007_v35 = vpop.f32.mrf.mxu3 }
 0x2a1   : > { %2675 = vst.msk [vmem:[%s4834_s23 + $0x40] sm:$0xff] %vm864_vm1, %v2643_v1  ;;  %v3186_v19 = vmax.f32 %v3154_v5, 0.0  ;;  %3509 = vmatmul.msk.f32.gmra.mxu2 %vm864_vm1, %v2643_v1  ;;  %v3088_v15 = vmul.f32 %v5118_v46, %v3007_v35 }
 0x2a2   : > { %v2820_v2 = vpop.f32.mrf.mxu2 }
 0x2a3   : > { %3218 = vst.msk [vmem:[%s5170_s29] sm:$0xff] %vm622_vm0, %v3186_v19  ;;  %v2918_v20 = vmul.f32 %v5129_v59, %v2820_v2  ;;  %v1431_v0 = vpop.permute.xlu1 %1430  ;;  %v1435_v7 = vpop.permute.xlu0 %1434  ;;  %v3124_v21 = vadd.f32 %v5135_v16, %v3088_v15 }
 0x2a4   : > { %1501 = vst.msk [vmem:[#allocation3 + $0xd0] sm:$0xff] %vm1474_vm6, %v1431_v0 }
 0x2a5   : > { %v2954_v45 = vadd.f32 %v5145_v51, %v2918_v20  ;;  %1682 = vrot.lane.b32.xlu2 %v4676_v42, %s3783_s27 }
 0x2a7   : > { %v3155_v43 = vadd.f32 %v3123_v17, %v2954_v45  ;;  %v1439_v14 = vpop.permute.xlu2 %1438 }
 0x2a8   : > { %1547 = vrot.lane.b32.xlu1 %v4543_v38, %s3782_s20  ;;  %2216 = vrot.lane.b32.xlu0 %v4817_v34, %s3787_s9  ;;  %v3009_v53 = vpop.f32.mrf.mxu3 }
 0x2a9   : > { %v3187_v56 = vmax.f32 %v3155_v43, 0.0  ;;  %v3089_v2 = vmul.f32 %v5118_v46, %v3009_v53 }
 0x2aa   : > { %v2494_v4 = vpop.f32.mrf.mxu1  ;;  %v2823_v52 = vpop.f32.mrf.mxu2 }
 0x2ab   : > { %3219 = vst.msk [vmem:[%s5170_s29 + $0x8] sm:$0xff] %vm622_vm0, %v3187_v56  ;;  %v2576_v42 = vmul.f32 %v4803_v55, %v2494_v4  ;;  %v2919_v26 = vmul.f32 %v5129_v59, %v2823_v52  ;;  %v1225_v29 = vpop.permute.xlu1 %1224  ;;  %v1229_v38 = vpop.permute.xlu0 %1228 }
 0x2ac   : > { %1293 = vst.msk [vmem:[#allocation3 + $0xe0] sm:$0xff] %vm1264_vm5, %v1225_v29 }
 0x2ad   : > { %v2612_v61 = vadd.f32 %v4812_v22, %v2576_v42  ;;  %v2955_v11 = vadd.f32 %v5145_v51, %v2919_v26  ;;  %1503 = vst.msk [vmem:[#allocation3 + $0xe0] sm:$0xff] %vm1474_vm6, %v1435_v7  ;;  %2082 = vrot.lane.b32.xlu2 %v4794_v28, %s3786_s26 }
 0x2ae   : > { %1295 = vst.msk [vmem:[#allocation3 + $0xf0] sm:$0xff] %vm1264_vm5, %v1229_v38 }
 0x2af   : > { %v2644_v1 = vmax.f32 %v2612_v61, 0.0  ;;  %v3156_v5 = vadd.f32 %v3124_v21, %v2955_v11  ;;  %1505 = vst.msk [vmem:[#allocation3 + $0xf0] sm:$0xff] %vm1474_vm6, %v1439_v14  ;;  %v1673_v23 = vpop.permute.xlu2 %1672  ;;  %v3668_v14 = vld [vmem:[%s3954_s19 + $0x60] sm:$0xff] }
 0x2b0   : > { %1947 = vrot.lane.b32.xlu1 %v4607_v8, %s3785_s25  ;;  %1818 = vrot.lane.b32.xlu0 %v4739_v44, %s3784_s21  ;;  %v3125_v44 = vadd.f32 %v5135_v16, %v3089_v2  ;;  %v3012_v21 = vpop.f32.mrf.mxu3 }
 0x2b1   : > { %2676 = vst.msk [vmem:[%s4834_s23 + $0x48] sm:$0xff] %vm864_vm1, %v2644_v1  ;;  %v3188_v19 = vmax.f32 %v3156_v5, 0.0  ;;  %3510 = vmatmul.msk.f32.gmra.mxu2 %vm864_vm1, %v2644_v1  ;;  %3549 = vmatmul.msk.bf16.gmra.mxu3 %vm622_vm0, %v3668_v14  ;;  %v3090_v38 = vmul.f32 %v5118_v46, %v3012_v21 }
 0x2b3   : > { %3220 = vst.msk [vmem:[%s5170_s29 + $0x10] sm:$0xff] %vm622_vm0, %v3188_v19  ;;  %v1437_v20 = vpop.permute.xlu1 %1436  ;;  %v1441_v17 = vpop.permute.xlu0 %1440  ;;  %v3126_v1 = vadd.f32 %v5135_v16, %v3090_v38 }
 0x2b4   : > { %1504 = vst.msk [vmem:[#allocation3 + $0xe8] sm:$0xff] %vm1474_vm6, %v1437_v20  ;;  %v2826_v0 = vpop.f32.mrf.mxu2 }
 0x2b5   : > { %v2920_v7 = vmul.f32 %v5129_v59, %v2826_v0  ;;  %1684 = vrot.lane.b32.xlu2 %v4768_v10, %s3783_s27 }
 0x2b7   : > { %v2956_v35 = vadd.f32 %v5145_v51, %v2920_v7  ;;  %v2073_v45 = vpop.permute.xlu2 %2072 }
 0x2b8   : > { %1549 = vrot.lane.b32.xlu1 %v4605_v6, %s3782_s20  ;;  %2218 = vrot.lane.b32.xlu0 %v4865_v27, %s3787_s9  ;;  %v3014_v0 = vpop.f32.mrf.mxu3 }
 0x2b9   : > { %v3157_v43 = vadd.f32 %v3125_v44, %v2956_v35  ;;  %v3670_v44 = vld [vmem:[%s3954_s19 + $0x70] sm:$0xff] }
 0x2bb   : > { %v3189_v15 = vmax.f32 %v3157_v43, 0.0  ;;  %v1936_v56 = vpop.permute.xlu1 %1935  ;;  %v2205_v4 = vpop.permute.xlu0 %2204 }
 0x2bc   : > { %2019 = vst.msk [vmem:[#allocation3 + $0x68] sm:$0xff] %vm2005_vm10, %v1936_v56 }
 0x2bd   : > { %3221 = vst.msk [vmem:[%s5170_s29 + $0x18] sm:$0xff] %vm622_vm0, %v3189_v15  ;;  %2084 = vrot.lane.b32.xlu2 %v4762_v63, %s3786_s26 }
 0x2be   : > { %2154 = vst.msk [vmem:[#allocation3 + $0x68] sm:$0xff] %vm2140_vm11, %v5160_v25 }
 0x2bf   : > { %2288 = vst.msk [vmem:[#allocation3 + $0x68] sm:$0xff] %vm2274_vm13, %v2205_v4  ;;  %v1675_v6 = vpop.permute.xlu2 %1674 }
 0x2c0   : > { %1949 = vrot.lane.b32.xlu1 %v4642_v36, %s3785_s25  ;;  %1820 = vrot.lane.b32.xlu0 %v4817_v34, %s3784_s21 }
 0x2c2   : > { %v2497_v10 = vpop.f32.mrf.mxu1 }
 0x2c3   : > { %v2577_v52 = vmul.f32 %v4803_v55, %v2497_v10  ;;  %v1231_v47 = vpop.permute.xlu1 %1230  ;;  %v1807_v42 = vpop.permute.xlu0 %1806 }
 0x2c4   : > { %1296 = vst.msk [vmem:[#allocation3 + $0xf8] sm:$0xff] %vm1264_vm5, %v1231_v47  ;;  %v3017_v10 = vpop.f32.mrf.mxu3 }
 0x2c5   : > { %v2613_v25 = vadd.f32 %v4812_v22, %v2577_v52  ;;  %1506 = vst.msk [vmem:[#allocation3 + $0xf8] sm:$0xff] %vm1474_vm6, %v1441_v17  ;;  %1686 = vrot.lane.b32.xlu2 %v4794_v28, %s3783_s27  ;;  %v3669_v28 = vld [vmem:[%s3954_s19 + $0x68] sm:$0xff] }
 0x2c6   : > { %v2320_v26 = vld [vmem:[#allocation3 + $0x68] sm:$0xff]  ;;  %3550 = vmatmul.msk.bf16.gmra.mxu3 %vm622_vm0, %v3669_v28 }
 0x2c7   : > { %v2645_v29 = vmax.f32 %v2613_v25, 0.0  ;;  %3481 = vmatmul.msk.f32.gmra.mxu1 %vm2349_vm14, %v2320_v26  ;;  %v5241_v34 = vpop.permute.xlu2 %2074 }
 0x2c8   : > { %1551 = vrot.lane.b32.xlu1 %v4607_v8, %s3782_s20  ;;  %2220 = vrot.lane.b32.xlu0 %v4820_v37, %s3787_s9 }
 0x2c9   : > { %2677 = vst.msk [vmem:[%s4834_s23 + $0x50] sm:$0xff] %vm864_vm1, %v2645_v29  ;;  %3511 = vmatmul.msk.f32.gmra.mxu2 %vm864_vm1, %v2645_v29 }
 0x2cb   : > { %v1538_v61 = vpop.permute.xlu1 %1537  ;;  %v2207_v11 = vpop.permute.xlu0 %2206 }
 0x2cc   : > { %1620 = vst.msk [vmem:[#allocation3 + $0x70] sm:$0xff] %vm1605_vm7, %v1538_v61  ;;  %v2829_v53 = vpop.f32.mrf.mxu2 }
 0x2cd   : > { %1755 = vst.msk [vmem:[#allocation3 + $0x70] sm:$0xff] %vm1740_vm8, %v1673_v23  ;;  %v2921_v8 = vmul.f32 %v5129_v59, %v2829_v53  ;;  %2086 = vrot.lane.b32.xlu2 %v4876_v48, %s3786_s26 }
 0x2ce   : > { %1889 = vst.msk [vmem:[#allocation3 + $0x70] sm:$0xff] %vm1874_vm9, %v1807_v42 }
 0x2cf   : > { %v2957_v5 = vadd.f32 %v5145_v51, %v2921_v8  ;;  %v1677_v19 = vpop.permute.xlu2 %1676 }
 0x2d0   : > { %1951 = vrot.lane.b32.xlu1 %v4652_v41, %s3785_s25  ;;  %1822 = vrot.lane.b32.xlu0 %v4865_v27, %s3784_s21  ;;  %v3091_v27 = vmul.f32 %v5118_v46, %v3014_v0 }
 0x2d1   : > { %v3158_v23 = vadd.f32 %v3126_v1, %v2957_v5 }
 0x2d2   : > { %v3127_v14 = vadd.f32 %v5135_v16, %v3091_v27 }
 0x2d3   : > { %v3190_v2 = vmax.f32 %v3158_v23, 0.0  ;;  %v1938_v20 = vpop.permute.xlu1 %1937  ;;  %v1809_v17 = vpop.permute.xlu0 %1808 }
 0x2d4   : > { %2020 = vst.msk [vmem:[#allocation3 + $0x70] sm:$0xff] %vm2005_vm10, %v1938_v20  ;;  %v3671_v20 = vld [vmem:[%s5886_s2] ss:$0 sm:$0xff] }
 0x2d5   : > { %3222 = vst.msk [vmem:[%s5170_s29 + $0x20] sm:$0xff] %vm622_vm0, %v3190_v2  ;;  %1688 = vrot.lane.b32.xlu2 %v4762_v63, %s3783_s27 }
 0x2d6   : > { %2155 = vst.msk [vmem:[#allocation3 + $0x70] sm:$0xff] %vm2140_vm11, %v2073_v45  ;;  %3551 = vmatmul.msk.bf16.gmra.mxu3 %vm622_vm0, %v3670_v44  ;;  %v3672_v44 = vld [vmem:[%s5887_s3] ss:$0 sm:$0xff] }
 0x2d7   : > { %2289 = vst.msk [vmem:[#allocation3 + $0x70] sm:$0xff] %vm2274_vm13, %v2207_v11  ;;  %v2077_v7 = vpop.permute.xlu2 %2076 }
 0x2d8   : > { %1553 = vrot.lane.b32.xlu1 %v4642_v36, %s3782_s20  ;;  %2222 = vrot.lane.b32.xlu0 %v4923_v50, %s3787_s9 }
 0x2db   : > { %v1540_v35 = vpop.permute.xlu1 %1539  ;;  %v2209_v43 = vpop.permute.xlu0 %2208 }
 0x2dc   : > { %1621 = vst.msk [vmem:[#allocation3 + $0x78] sm:$0xff] %vm1605_vm7, %v1540_v35  ;;  %v2832_v63 = vpop.f32.mrf.mxu2 }
 0x2dd   : > { %1756 = vst.msk [vmem:[#allocation3 + $0x78] sm:$0xff] %vm1740_vm8, %v1675_v6  ;;  %v2922_v45 = vmul.f32 %v5129_v59, %v2832_v63  ;;  %2088 = vrot.lane.b32.xlu2 %v4892_v40, %s3786_s26 }
 0x2de   : > { %1890 = vst.msk [vmem:[#allocation3 + $0x78] sm:$0xff] %vm1874_vm9, %v1809_v17  ;;  %v2321_v36 = vld [vmem:[#allocation3 + $0x70] sm:$0xff] }
 0x2df   : > { %v2958_v15 = vadd.f32 %v5145_v51, %v2922_v45  ;;  %3482 = vmatmul.msk.f32.gmra.mxu1 %vm2349_vm14, %v2321_v36  ;;  %v1679_v56 = vpop.permute.xlu2 %1678 }
 0x2e0   : > { %1953 = vrot.lane.b32.xlu1 %v4724_v39, %s3785_s25  ;;  %1824 = vrot.lane.b32.xlu0 %v4820_v37, %s3784_s21 }
 0x2e1   : > { %v3159_v4 = vadd.f32 %v3127_v14, %v2958_v15 }
 0x2e2   : > { %v2500_v6 = vpop.f32.mrf.mxu1 }
 0x2e3   : > { %v3191_v52 = vmax.f32 %v3159_v4, 0.0  ;;  %v2578_v47 = vmul.f32 %v4803_v55, %v2500_v6  ;;  %v1940_v42 = vpop.permute.xlu1 %1939  ;;  %v1811_v25 = vpop.permute.xlu0 %1810 }
 0x2e4   : > { %2021 = vst.msk [vmem:[#allocation3 + $0x78] sm:$0xff] %vm2005_vm10, %v1940_v42  ;;  %v3019_v55 = vpop.f32.mrf.mxu3  ;;  %v755_v2 = vpop.f32.mrf.mxu0 }
 0x2e5   : > { %3223 = vst.msk [vmem:[%s5170_s29 + $0x28] sm:$0xff] %vm622_vm0, %v3191_v52  ;;  %v2614_v26 = vadd.f32 %v4812_v22, %v2578_v47  ;;  %1690 = vrot.lane.b32.xlu2 %v4876_v48, %s3783_s27  ;;  %v3093_v23 = vmul.f32 %v5118_v46, %v3019_v55  ;;  %v794_v17 = vmul.f32 %v3671_v20, %v755_v2  ;;  %v5396_v55 = vld [vmem:[%s5890_s6] ss:$0 sm:$0xff] }
 0x2e6   : > { %2156 = vst.msk [vmem:[#allocation3 + $0x78] sm:$0xff] %vm2140_vm11, %v5241_v34  ;;  %3552 = vmatmul.msk.bf16.gmra.mxu3 %vm622_vm0, %v5092_v60  ;;  %v3092_v60 = vmul.f32 %v5118_v46, %v3017_v10 }
 0x2e7   : > { %v2646_v37 = vmax.f32 %v2614_v26, 0.0  ;;  %2290 = vst.msk [vmem:[#allocation3 + $0x78] sm:$0xff] %vm2274_vm13, %v2209_v43  ;;  %v2079_v21 = vpop.permute.xlu2 %2078  ;;  %v830_v35 = vadd.f32 %v3672_v44, %v794_v17  ;;  %v3129_v43 = vadd.f32 %v5135_v16, %v3093_v23 }
 0x2e8   : > { %1555 = vrot.lane.b32.xlu1 %v4652_v41, %s3782_s20  ;;  %2224 = vrot.lane.b32.xlu0 %v4915_v30, %s3787_s9  ;;  %v3128_v11 = vadd.f32 %v5135_v16, %v3092_v60 }
 0x2e9   : > { %2678 = vst.msk [vmem:[%s4834_s23 + $0x58] sm:$0xff] %vm864_vm1, %v2646_v37  ;;  %3512 = vmatmul.msk.f32.gmra.mxu2 %vm864_vm1, %v2646_v37  ;;  %v862_v63 = vmax.f32 %v830_v35, 0.0 }
 0x2eb   : > { %v1542_v22 = vpop.permute.xlu1 %1541  ;;  %v2211_v48 = vpop.permute.xlu0 %2210  ;;  %951 = vst.msk [vmem:[#allocation2 + $0x181] sm:$0xff] %vm864_vm1, %v862_v63 }
 0x2ec   : > { %1622 = vst.msk [vmem:[#allocation3 + $0x80] sm:$0xff] %vm1605_vm7, %v1542_v22  ;;  %v757_v15 = vpop.f32.mrf.mxu0 }
 0x2ed   : > { %1757 = vst.msk [vmem:[#allocation3 + $0x80] sm:$0xff] %vm1740_vm8, %v1677_v19  ;;  %2090 = vrot.lane.b32.xlu2 %v4879_v32, %s3786_s26 }
 0x2ee   : > { %1891 = vst.msk [vmem:[#allocation3 + $0x80] sm:$0xff] %vm1874_vm9, %v1811_v25  ;;  %v2322_v41 = vld [vmem:[#allocation3 + $0x78] sm:$0xff]  ;;  %v5389_v25 = vld [vmem:[%s5889_s5] ss:$0 sm:$0xff] }
 0x2ef   : > { %3483 = vmatmul.msk.f32.gmra.mxu1 %vm2349_vm14, %v2322_v41  ;;  %v5317_v29 = vpop.permute.xlu2 %1680 }
 0x2f0   : > { %1955 = vrot.lane.b32.xlu1 %v4709_v24, %s3785_s25  ;;  %1826 = vrot.lane.b32.xlu0 %v4923_v50, %s3784_s21 }
 0x2f3   : > { %v1942_v34 = vpop.permute.xlu1 %1941  ;;  %v1813_v38 = vpop.permute.xlu0 %1812 }
 0x2f4   : > { %2022 = vst.msk [vmem:[#allocation3 + $0x80] sm:$0xff] %vm2005_vm10, %v1942_v34  ;;  %v2835_v28 = vpop.f32.mrf.mxu2 }
 0x2f5   : > { %2157 = vst.msk [vmem:[#allocation3 + $0x80] sm:$0xff] %vm2140_vm11, %v2077_v7  ;;  %v2923_v61 = vmul.f32 %v5129_v59, %v2835_v28  ;;  %1692 = vrot.lane.b32.xlu2 %v4892_v40, %s3783_s27 }
 0x2f6   : > { %2291 = vst.msk [vmem:[#allocation3 + $0x80] sm:$0xff] %vm2274_vm13, %v2211_v48 }
 0x2f7   : > { %v2959_v50 = vadd.f32 %v5145_v51, %v2923_v61  ;;  %v5332_v53 = vpop.permute.xlu2 %2080 }
 0x2f8   : > { %1557 = vrot.lane.b32.xlu1 %v4724_v39, %s3782_s20  ;;  %2226 = vrot.lane.b32.xlu0 %v4926_v54, %s3787_s9 }
 0x2f9   : > { %v3160_v8 = vadd.f32 %v3128_v11, %v2959_v50 }
 0x2fb   : > { %v3192_v1 = vmax.f32 %v3160_v8, 0.0  ;;  %v1544_v5 = vpop.permute.xlu1 %1543  ;;  %v2213_v19 = vpop.permute.xlu0 %2212 }
 0x2fc   : > { %1623 = vst.msk [vmem:[#allocation3 + $0x88] sm:$0xff] %vm1605_vm7, %v1544_v5 }
 0x2fd   : > { %3224 = vst.msk [vmem:[%s5170_s29 + $0x30] sm:$0xff] %vm622_vm0, %v3192_v1  ;;  %2092 = vrot.lane.b32.xlu2 %v4951_v18, %s3786_s26  ;;  %v2323_v40 = vld [vmem:[#allocation3 + $0x80] sm:$0xff] }
 0x2fe   : > { %1758 = vst.msk [vmem:[#allocation3 + $0x88] sm:$0xff] %vm1740_vm8, %v1679_v56  ;;  %3484 = vmatmul.msk.f32.gmra.mxu1 %vm2349_vm14, %v2323_v40  ;;  %v795_v56 = vmul.f32 %v3671_v20, %v757_v15  ;;  %v5442_v40 = vld [vmem:[#allocation2 + $0x180] sm:$0xff] }
 0x2ff   : > { %1892 = vst.msk [vmem:[#allocation3 + $0x88] sm:$0xff] %vm1874_vm9, %v1813_v38  ;;  %v5346_v39 = vpop.permute.xlu2 %1682  ;;  %v1773_v20 = vrot.slane %v5442_v40, 2  ;;  %v1639_v63 = vrot.slane %v5442_v40, 1 }
 0x300   : > { %1957 = vrot.lane.b32.xlu1 %v4779_v12, %s3785_s25  ;;  %1828 = vrot.lane.b32.xlu0 %v4915_v30, %s3784_s21  ;;  %v831_v10 = vadd.f32 %v3672_v44, %v795_v56 }
 0x302   : > { %v863_v52 = vmax.f32 %v831_v10, 0.0 }
 0x303   : > { %v1944_v0 = vpop.permute.xlu1 %1943  ;;  %v1815_v7 = vpop.permute.xlu0 %1814 }
 0x304   : > { %2023 = vst.msk [vmem:[#allocation3 + $0x88] sm:$0xff] %vm2005_vm10, %v1944_v0  ;;  %v2838_v27 = vpop.f32.mrf.mxu2 }
 0x305   : > { %2158 = vst.msk [vmem:[#allocation3 + $0x88] sm:$0xff] %vm2140_vm11, %v2079_v21  ;;  %v2924_v30 = vmul.f32 %v5129_v59, %v2838_v27  ;;  %1694 = vrot.lane.b32.xlu2 %v4879_v32, %s3783_s27 }
 0x306   : > { %2292 = vst.msk [vmem:[#allocation3 + $0x88] sm:$0xff] %vm2274_vm13, %v2213_v19 }
 0x307   : > { %v2960_v45 = vadd.f32 %v5145_v51, %v2924_v30  ;;  %v2083_v14 = vpop.permute.xlu2 %2082  ;;  %952 = vst.msk [vmem:[#allocation2 + $0x189] sm:$0xff] %vm864_vm1, %v863_v52 }
 0x308   : > { %1559 = vrot.lane.b32.xlu1 %v4709_v24, %s3782_s20  ;;  %2228 = vrot.lane.b32.xlu0 %v4971_v49, %s3787_s9 }
 0x309   : > { %v3161_v36 = vadd.f32 %v3129_v43, %v2960_v45 }
 0x30b   : > { %v3193_v4 = vmax.f32 %v3161_v36, 0.0  ;;  %v1546_v32 = vpop.permute.xlu1 %1545  ;;  %v2215_v6 = vpop.permute.xlu0 %2214 }
 0x30c   : > { %1624 = vst.msk [vmem:[#allocation3 + $0x90] sm:$0xff] %vm1605_vm7, %v1546_v32 }
 0x30d   : > { %3225 = vst.msk [vmem:[%s5170_s29 + $0x38] sm:$0xff] %vm622_vm0, %v3193_v4  ;;  %2094 = vrot.lane.b32.xlu2 %v4964_v31, %s3786_s26  ;;  %v2324_v24 = vld [vmem:[#allocation3 + $0x88] sm:$0xff] }
 0x30e   : > { %1759 = vst.msk [vmem:[#allocation3 + $0x90] sm:$0xff] %vm1740_vm8, %v5317_v29  ;;  %3485 = vmatmul.msk.f32.gmra.mxu1 %vm2349_vm14, %v2324_v24  ;;  %v1003_v32 = vld [vmem:[#allocation2 + $0x190] sm:$0x3] }
 0x30f   : > { %1893 = vst.msk [vmem:[#allocation3 + $0x90] sm:$0xff] %vm1874_vm9, %v1815_v7  ;;  %v1685_v47 = vpop.permute.xlu2 %1684  ;;  %v1776_v24 = vrot.slane %v1003_v32, 2 }
 0x310   : > { %1959 = vrot.lane.b32.xlu1 %v4781_v13, %s3785_s25  ;;  %1830 = vrot.lane.b32.xlu0 %v4926_v54, %s3784_s21 }
 0x312   : > { %v2503_v42 = vpop.f32.mrf.mxu1 }
 0x313   : > { %v2579_v26 = vmul.f32 %v5389_v25, %v2503_v42  ;;  %v1946_v37 = vpop.permute.xlu1 %1945  ;;  %v1817_v21 = vpop.permute.xlu0 %1816 }
 0x314   : > { %2024 = vst.msk [vmem:[#allocation3 + $0x90] sm:$0xff] %vm2005_vm10, %v1946_v37 }
 0x315   : > { %v2615_v54 = vadd.f32 %v5396_v55, %v2579_v26  ;;  %2159 = vst.msk [vmem:[#allocation3 + $0x90] sm:$0xff] %vm2140_vm11, %v5332_v53  ;;  %1696 = vrot.lane.b32.xlu2 %v4951_v18, %s3783_s27 }
 0x316   : > { %2293 = vst.msk [vmem:[#allocation3 + $0x90] sm:$0xff] %vm2274_vm13, %v2215_v6 }
 0x317   : > { %v2647_v22 = vmax.f32 %v2615_v54, 0.0  ;;  %v2085_v48 = vpop.permute.xlu2 %2084 }
 0x318   : > { %1561 = vrot.lane.b32.xlu1 %v4779_v12, %s3782_s20  ;;  %2230 = vrot.lane.b32.xlu0 %v4999_v58, %s3787_s9  ;;  %v3022_v12 = vpop.f32.mrf.mxu3 }
 0x319   : > { %2679 = vst.msk [vmem:[%s4834_s23 + $0x60] sm:$0xff] %vm864_vm1, %v2647_v22  ;;  %3513 = vmatmul.msk.f32.gmra.mxu2 %vm864_vm1, %v2647_v22  ;;  %v3094_v34 = vmul.f32 %v5118_v46, %v3022_v12 }
 0x31b   : > { %v1548_v41 = vpop.permute.xlu1 %1547  ;;  %v2217_v29 = vpop.permute.xlu0 %2216  ;;  %v3130_v50 = vadd.f32 %v5135_v16, %v3094_v34  ;;  %v5512_v34 = vld [vmem:[#allocation2 + $0x1a0] sm:$0xff] }
 0x31c   : > { %1625 = vst.msk [vmem:[#allocation3 + $0x98] sm:$0xff] %vm1605_vm7, %v1548_v41 }
 0x31d   : > { %1760 = vst.msk [vmem:[#allocation3 + $0x98] sm:$0xff] %vm1740_vm8, %v5346_v39  ;;  %2096 = vrot.lane.b32.xlu2 %v4948_v9, %s3786_s26  ;;  %v2325_v18 = vld [vmem:[#allocation3 + $0x90] sm:$0xff]  ;;  %v5444_v39 = vld [vmem:[#allocation2 + $0x188] sm:$0xff] }
 0x31e   : > { %1894 = vst.msk [vmem:[#allocation3 + $0x98] sm:$0xff] %vm1874_vm9, %v1817_v21  ;;  %3486 = vmatmul.msk.f32.gmra.mxu1 %vm2349_vm14, %v2325_v18  ;;  %v1774_v17 = vrot.slane %v5444_v39, 2  ;;  %v1640_v45 = vrot.slane %v5444_v39, 1  ;;  %v1642_v21 = vrot.slane %v1003_v32, 1 }
 0x31f   : > { %v1687_v60 = vpop.permute.xlu2 %1686 }
 0x320   : > { %1961 = vrot.lane.b32.xlu1 %v4848_v62, %s3785_s25  ;;  %1832 = vrot.lane.b32.xlu0 %v4971_v49, %s3784_s21  ;;  %v1641_v56 = vsel %vm1087_vm2, %v1639_v63, %v1640_v45  ;;  %v1777_v37 = vsel %vm1297_vm4, %v1774_v17, %v1776_v24 }
 0x323   : > { %v1948_v38 = vpop.permute.xlu1 %1947  ;;  %v1819_v28 = vpop.permute.xlu0 %1818 }
 0x324   : > { %2025 = vst.msk [vmem:[#allocation3 + $0x98] sm:$0xff] %vm2005_vm10, %v1948_v38  ;;  %v2841_v61 = vpop.f32.mrf.mxu2 }
 0x325   : > { %2160 = vst.msk [vmem:[#allocation3 + $0x98] sm:$0xff] %vm2140_vm11, %v2083_v14  ;;  %v2925_v11 = vmul.f32 %v5129_v59, %v2841_v61  ;;  %1698 = vrot.lane.b32.xlu2 %v4964_v31, %s3783_s27 }
 0x326   : > { %2294 = vst.msk [vmem:[#allocation3 + $0x98] sm:$0xff] %vm2274_vm13, %v2217_v29  ;;  %v1643_v29 = vsel %vm1087_vm2, %v1640_v45, %v1642_v21 }
 0x327   : > { %v2961_v49 = vadd.f32 %v5145_v51, %v2925_v11  ;;  %v2087_v53 = vpop.permute.xlu2 %2086 }
 0x328   : > { %1563 = vrot.lane.b32.xlu1 %v4781_v13, %s3782_s20  ;;  %2232 = vrot.lane.b32.xlu0 %v4974_v57, %s3787_s9  ;;  %v3024_v13 = vpop.f32.mrf.mxu3 }
 0x329   : > { %v3162_v8 = vadd.f32 %v3130_v50, %v2961_v49  ;;  %v3095_v2 = vmul.f32 %v5118_v46, %v3024_v13  ;;  %v2174_v50 = vrot.slane %v5512_v34, 2 }
 0x32b   : > { %v3194_v1 = vmax.f32 %v3162_v8, 0.0  ;;  %v1550_v5 = vpop.permute.xlu1 %1549  ;;  %v2219_v19 = vpop.permute.xlu0 %2218  ;;  %v3131_v35 = vadd.f32 %v5135_v16, %v3095_v2 }
 0x32c   : > { %1626 = vst.msk [vmem:[#allocation3 + $0xa0] sm:$0xff] %vm1605_vm7, %v1550_v5 }
 0x32d   : > { %3226 = vst.msk [vmem:[%s5170_s29 + $0x40] sm:$0xff] %vm622_vm0, %v3194_v1  ;;  %2098 = vrot.lane.b32.xlu2 %v5008_v33, %s3786_s26  ;;  %v2326_v31 = vld [vmem:[#allocation3 + $0x98] sm:$0xff] }
 0x32e   : > { %1761 = vst.msk [vmem:[#allocation3 + $0xa0] sm:$0xff] %vm1740_vm8, %v1685_v47  ;;  %3487 = vmatmul.msk.f32.gmra.mxu1 %vm2349_vm14, %v2326_v31 }
 0x32f   : > { %1895 = vst.msk [vmem:[#allocation3 + $0xa0] sm:$0xff] %vm1874_vm9, %v1819_v28  ;;  %v5447_v23 = vpop.permute.xlu2 %1688 }
 0x330   : > { %1963 = vrot.lane.b32.xlu1 %v4851_v3, %s3785_s25  ;;  %1834 = vrot.lane.b32.xlu0 %v4999_v58, %s3784_s21  ;;  %v1775_v58 = vsel %vm1297_vm4, %v1773_v20, %v1774_v17  ;;  %v3027_v42 = vpop.f32.mrf.mxu3 }
 0x331   : > { %v3096_v22 = vmul.f32 %v5118_v46, %v3027_v42 }
 0x333   : > { %v1950_v0 = vpop.permute.xlu1 %1949  ;;  %v1821_v7 = vpop.permute.xlu0 %1820  ;;  %v3132_v18 = vadd.f32 %v5135_v16, %v3096_v22 }
 0x334   : > { %2026 = vst.msk [vmem:[#allocation3 + $0xa0] sm:$0xff] %vm2005_vm10, %v1950_v0  ;;  %v2844_v27 = vpop.f32.mrf.mxu2  ;;  %v1006_v0 = vld [vmem:[#allocation2 + $0x1a8] sm:$0x3] }
 0x335   : > { %2161 = vst.msk [vmem:[#allocation3 + $0xa0] sm:$0xff] %vm2140_vm11, %v2085_v48  ;;  %v2926_v44 = vmul.f32 %v5129_v59, %v2844_v27  ;;  %1700 = vrot.lane.b32.xlu2 %v4948_v9, %s3783_s27  ;;  %v2042_v45 = vrot.slane %v1006_v0, 1 }
 0x336   : > { %2295 = vst.msk [vmem:[#allocation3 + $0xa0] sm:$0xff] %vm2274_vm13, %v2219_v19  ;;  %v2040_v19 = vrot.slane %v5512_v34, 1 }
 0x337   : > { %v2962_v30 = vadd.f32 %v5145_v51, %v2926_v44  ;;  %v5465_v43 = vpop.permute.xlu2 %2088 }
 0x338   : > { %1565 = vrot.lane.b32.xlu1 %v4848_v62, %s3782_s20  ;;  %2234 = vrot.lane.b32.xlu0 %v1775_v58, %s3787_s9  ;;  %v3029_v63 = vpop.f32.mrf.mxu3 }
 0x339   : > { %v3163_v14 = vadd.f32 %v3131_v35, %v2962_v30  ;;  %v2176_v35 = vrot.slane %v1006_v0, 2 }
 0x33b   : > { %v3195_v36 = vmax.f32 %v3163_v14, 0.0  ;;  %v1552_v9 = vpop.permute.xlu1 %1551  ;;  %v2221_v15 = vpop.permute.xlu0 %2220  ;;  %v3097_v14 = vmul.f32 %v5118_v46, %v3029_v63 }
 0x33c   : > { %1627 = vst.msk [vmem:[#allocation3 + $0xa8] sm:$0xff] %vm1605_vm7, %v1552_v9  ;;  %v2043_v9 = vsel %vm1087_vm2, %v2040_v19, %v2042_v45 }
 0x33d   : > { %3227 = vst.msk [vmem:[%s5170_s29 + $0x48] sm:$0xff] %vm622_vm0, %v3195_v36  ;;  %v2327_v4 = vld [vmem:[#allocation3 + $0xa0] sm:$0xff]  ;;  %2100 = vrot.lane.b32.xlu2 %v1641_v56, %s3786_s26 }
 0x33e   : > { %1762 = vst.msk [vmem:[#allocation3 + $0xa8] sm:$0xff] %vm1740_vm8, %v1687_v60  ;;  %3488 = vmatmul.msk.f32.gmra.mxu1 %vm2349_vm14, %v2327_v4  ;;  %v1004_v60 = vld [vmem:[#allocation2 + $0x198] sm:$0xff] }
 0x33f   : > { %1896 = vst.msk [vmem:[#allocation3 + $0xa8] sm:$0xff] %vm1874_vm9, %v1821_v7  ;;  %v5480_v62 = vpop.permute.xlu2 %1690  ;;  %v2173_v11 = vrot.slane %v1004_v60, 2  ;;  %v2039_v5 = vrot.slane %v1004_v60, 1 }
 0x340   : > { %1965 = vrot.lane.b32.xlu1 %v5442_v40, %s3785_s25  ;;  %1836 = vrot.lane.b32.xlu0 %v4974_v57, %s3784_s21 }
 0x341   : > { %v2175_v1 = vsel %vm1297_vm4, %v2173_v11, %v2174_v50  ;;  %v2041_v13 = vsel %vm1087_vm2, %v2039_v5, %v2040_v19 }
 0x343   : > { %v1952_v6 = vpop.permute.xlu1 %1951  ;;  %v1823_v10 = vpop.permute.xlu0 %1822 }
 0x344   : > { %2027 = vst.msk [vmem:[#allocation3 + $0xa8] sm:$0xff] %vm2005_vm10, %v1952_v6  ;;  %v2506_v52 = vpop.f32.mrf.mxu1  ;;  %v3133_v6 = vadd.f32 %v5135_v16, %v3097_v14 }
 0x345   : > { %2162 = vst.msk [vmem:[#allocation3 + $0xa8] sm:$0xff] %vm2140_vm11, %v2087_v53  ;;  %v2580_v47 = vmul.f32 %v5389_v25, %v2506_v52  ;;  %1702 = vrot.lane.b32.xlu2 %v5008_v33, %s3783_s27 }
 0x346   : > { %2296 = vst.msk [vmem:[#allocation3 + $0xa8] sm:$0xff] %vm2274_vm13, %v2221_v15 }
 0x347   : > { %v2616_v57 = vadd.f32 %v5396_v55, %v2580_v47  ;;  %v5493_v26 = vpop.permute.xlu2 %2090 }
 0x348   : > { %1567 = vrot.lane.b32.xlu1 %v4851_v3, %s3782_s20  ;;  %2236 = vrot.lane.b32.xlu0 %v1777_v37, %s3787_s9 }
 0x349   : > { %v2648_v54 = vmax.f32 %v2616_v57, 0.0 }
 0x34b   : > { %2680 = vst.msk [vmem:[%s4834_s23 + $0x68] sm:$0xff] %vm864_vm1, %v2648_v54  ;;  %3514 = vmatmul.msk.f32.gmra.mxu2 %vm864_vm1, %v2648_v54  ;;  %v1554_v33 = vpop.permute.xlu1 %1553  ;;  %v2223_v48 = vpop.permute.xlu0 %2222 }
 0x34c   : > { %1628 = vst.msk [vmem:[#allocation3 + $0xb0] sm:$0xff] %vm1605_vm7, %v1554_v33  ;;  %v2847_v41 = vpop.f32.mrf.mxu2 }
 0x34d   : > { %1763 = vst.msk [vmem:[#allocation3 + $0xb0] sm:$0xff] %vm1740_vm8, %v5447_v23  ;;  %v2927_v3 = vmul.f32 %v5129_v59, %v2847_v41  ;;  %v2328_v12 = vld [vmem:[#allocation3 + $0xa8] sm:$0xff]  ;;  %2102 = vrot.lane.b32.xlu2 %v1643_v29, %s3786_s26 }
 0x34e   : > { %1897 = vst.msk [vmem:[#allocation3 + $0xb0] sm:$0xff] %vm1874_vm9, %v1823_v10  ;;  %3489 = vmatmul.msk.f32.gmra.mxu1 %vm2349_vm14, %v2328_v12 }
 0x34f   : > { %v2963_v38 = vadd.f32 %v5145_v51, %v2927_v3  ;;  %v1693_v28 = vpop.permute.xlu2 %1692 }
 0x350   : > { %1967 = vrot.lane.b32.xlu1 %v5444_v39, %s3785_s25  ;;  %1838 = vrot.lane.b32.xlu0 %v1775_v58, %s3784_s21 }
 0x351   : > { %v3164_v61 = vadd.f32 %v3132_v18, %v2963_v38 }
 0x353   : > { %v3196_v49 = vmax.f32 %v3164_v61, 0.0  ;;  %v1954_v53 = vpop.permute.xlu1 %1953  ;;  %v1825_v8 = vpop.permute.xlu0 %1824 }
 0x354   : > { %2028 = vst.msk [vmem:[#allocation3 + $0xb0] sm:$0xff] %vm2005_vm10, %v1954_v53  ;;  %v3032_v53 = vpop.f32.mrf.mxu3 }
 0x355   : > { %3228 = vst.msk [vmem:[%s5170_s29 + $0x50] sm:$0xff] %vm622_vm0, %v3196_v49  ;;  %1704 = vrot.lane.b32.xlu2 %v1641_v56, %s3783_s27 }
 0x356   : > { %2163 = vst.msk [vmem:[#allocation3 + $0xb0] sm:$0xff] %vm2140_vm11, %v5465_v43  ;;  %v2177_v43 = vsel %vm1297_vm4, %v2174_v50, %v2176_v35 }
 0x357   : > { %2297 = vst.msk [vmem:[#allocation3 + $0xb0] sm:$0xff] %vm2274_vm13, %v2223_v48  ;;  %v5528_v31 = vpop.permute.xlu2 %2092 }
 0x358   : > { %1569 = vrot.lane.b32.xlu1 %v5442_v40, %s3782_s20  ;;  %2238 = vrot.lane.b32.xlu0 %v2175_v1, %s3787_s9 }
 0x35b   : > { %v1556_v23 = vpop.permute.xlu1 %1555  ;;  %v2225_v2 = vpop.permute.xlu0 %2224 }
 0x35c   : > { %1629 = vst.msk [vmem:[#allocation3 + $0xb8] sm:$0xff] %vm1605_vm7, %v1556_v23  ;;  %v2509_v20 = vpop.f32.mrf.mxu1 }
 0x35d   : > { %1764 = vst.msk [vmem:[#allocation3 + $0xb8] sm:$0xff] %vm1740_vm8, %v5480_v62  ;;  %v2581_v17 = vmul.f32 %v5389_v25, %v2509_v20  ;;  %2104 = vrot.lane.b32.xlu2 %v2041_v13, %s3786_s26 }
 0x35e   : > { %1898 = vst.msk [vmem:[#allocation3 + $0xb8] sm:$0xff] %vm1874_vm9, %v1825_v8  ;;  %v2329_v40 = vld [vmem:[#allocation3 + $0xb0] sm:$0xff] }
 0x35f   : > { %v2617_v7 = vadd.f32 %v5396_v55, %v2581_v17  ;;  %3490 = vmatmul.msk.f32.gmra.mxu1 %vm2349_vm14, %v2329_v40  ;;  %v1695_v27 = vpop.permute.xlu2 %1694  ;;  %v5606_v8 = vld [vmem:[%s5895_s11] ss:$0 sm:$0xff] }
 0x360   : > { %1969 = vrot.lane.b32.xlu1 %v1004_v60, %s3785_s25  ;;  %1840 = vrot.lane.b32.xlu0 %v1777_v37, %s3784_s21  ;;  %v3098_v1 = vmul.f32 %v5606_v8, %v3032_v53  ;;  %v5621_v17 = vld [vmem:[%s5896_s12] ss:$0 sm:$0xff] }
 0x361   : > { %v2649_v44 = vmax.f32 %v2617_v7, 0.0 }
 0x362   : > { %v3134_v40 = vadd.f32 %v5621_v17, %v3098_v1 }
 0x363   : > { %2681 = vst.msk [vmem:[%s4834_s23 + $0x70] sm:$0xff] %vm864_vm1, %v2649_v44  ;;  %3515 = vmatmul.msk.f32.gmra.mxu2 %vm864_vm1, %v2649_v44  ;;  %v1956_v58 = vpop.permute.xlu1 %1955  ;;  %v1827_v30 = vpop.permute.xlu0 %1826  ;;  %v5630_v44 = vld [vmem:[%s5925_s13] ss:$0 sm:$0xff] }
 0x364   : > { %2029 = vst.msk [vmem:[#allocation3 + $0xb8] sm:$0xff] %vm2005_vm10, %v1956_v58 }
 0x365   : > { %2164 = vst.msk [vmem:[#allocation3 + $0xb8] sm:$0xff] %vm2140_vm11, %v5493_v26  ;;  %1706 = vrot.lane.b32.xlu2 %v1643_v29, %s3783_s27 }
 0x366   : > { %2298 = vst.msk [vmem:[#allocation3 + $0xb8] sm:$0xff] %vm2274_vm13, %v2225_v2  ;;  %v5615_v2 = vld [vmem:[%s5892_s8] ss:$0 sm:$0xff] }
 0x367   : > { %v2095_v36 = vpop.permute.xlu2 %2094 }
 0x368   : > { %1571 = vrot.lane.b32.xlu1 %v5444_v39, %s3782_s20  ;;  %2240 = vrot.lane.b32.xlu0 %v2177_v43, %s3787_s9  ;;  %s5926_s20 = sld [smem:[#allocation19_spill]] }
 0x36b   : > { %v1558_v15 = vpop.permute.xlu1 %1557  ;;  %v2227_v56 = vpop.permute.xlu0 %2226 }
 0x36c   : > { %1630 = vst.msk [vmem:[#allocation3 + $0xc0] sm:$0xff] %vm1605_vm7, %v1558_v15  ;;  %v2512_v4 = vpop.f32.mrf.mxu1  ;;  %v2850_v62 = vpop.f32.mrf.mxu2 }
 0x36d   : > { %1765 = vst.msk [vmem:[#allocation3 + $0xc0] sm:$0xff] %vm1740_vm8, %v1693_v28  ;;  %v2582_v32 = vmul.f32 %v5389_v25, %v2512_v4  ;;  %v2928_v39 = vmul.f32 %v5129_v59, %v2850_v62  ;;  %v2330_v46 = vld [vmem:[#allocation3 + $0xb8] sm:$0xff]  ;;  %2106 = vrot.lane.b32.xlu2 %v2043_v9, %s3786_s26 }
 0x36e   : > { %1899 = vst.msk [vmem:[#allocation3 + $0xc0] sm:$0xff] %vm1874_vm9, %v1827_v30  ;;  %3491 = vmatmul.msk.f32.gmra.mxu1 %vm2349_vm14, %v2330_v46  ;;  %s3729_s28 = scalar_lea.hbm %s5926_s20, 512 }
 0x36f   : > { %v2618_v10 = vadd.f32 %v5396_v55, %v2582_v32  ;;  %v2964_v24 = vadd.f32 %v5145_v51, %v2928_v39  ;;  %v1697_v57 = vpop.permute.xlu2 %1696 }
 0x370   : > { %1971 = vrot.lane.b32.xlu1 %v5512_v34, %s3785_s25  ;;  %s3268_s25 = sshll.u32 %s5170_s29, 4  ;;  %s3269_s25 = int_to_ptr.vmem [resolvable:$true] %s3268_s25 }
 0x371   : > { %v2650_v52 = vmax.f32 %v2618_v10, 0.0  ;;  %v3165_v47 = vadd.f32 %v3133_v6, %v2964_v24 }
 0x373   : > { %2682 = vst.msk [vmem:[%s4834_s23 + $0x78] sm:$0xff] %vm864_vm1, %v2650_v52  ;;  %v3197_v59 = vmax.f32 %v3165_v47, 0.0  ;;  %3516 = vmatmul.msk.f32.gmra.mxu2 %vm864_vm1, %v2650_v52  ;;  %v1958_v16 = vpop.permute.xlu1 %1957  ;;  %v1829_v42 = vpop.permute.xlu0 %1828 }
 0x374   : > { %2030 = vst.msk [vmem:[#allocation3 + $0xc0] sm:$0xff] %vm2005_vm10, %v1958_v16 }
 0x375   : > { %3229 = vst.msk [vmem:[%s5170_s29 + $0x58] sm:$0xff] %vm622_vm0, %v3197_v59 }
 0x376   : > { %2165 = vst.msk [vmem:[#allocation3 + $0xc0] sm:$0xff] %vm2140_vm11, %v5528_v31 }
 0x377   : > { %2299 = vst.msk [vmem:[#allocation3 + $0xc0] sm:$0xff] %vm2274_vm13, %v2227_v56  ;;  %v2097_v33 = vpop.permute.xlu2 %2096 }
 0x37b   : > { %v1560_v51 = vpop.permute.xlu1 %1559  ;;  %v2515_v26 = vpop.f32.mrf.mxu1 }
 0x37c   : > { %1631 = vst.msk [vmem:[#allocation3 + $0xc8] sm:$0xff] %vm1605_vm7, %v1560_v51  ;;  %v2583_v37 = vmul.f32 %v5389_v25, %v2515_v26  ;;  %v2229_v21 = vpop.permute.xlu0 %2228 }
 0x37d   : > { %1766 = vst.msk [vmem:[#allocation3 + $0xc8] sm:$0xff] %vm1740_vm8, %v1695_v27 }
 0x37e   : > { %1900 = vst.msk [vmem:[#allocation3 + $0xc8] sm:$0xff] %vm1874_vm9, %v1829_v42  ;;  %v2619_v54 = vadd.f32 %v5396_v55, %v2583_v37  ;;  %v2331_v22 = vld [vmem:[#allocation3 + $0xc0] sm:$0xff] }
 0x37f   : > { %3492 = vmatmul.msk.f32.gmra.mxu1 %vm2349_vm14, %v2331_v22  ;;  %v1699_v3 = vpop.permute.xlu2 %1698 }
 0x380   : > { %v2651_v48 = vmax.f32 %v2619_v54, 0.0 }
 0x382   : > { %2683 = vst.msk [vmem:[%s4834_s23 + $0x80] sm:$0xff] %vm864_vm1, %v2651_v48  ;;  %3517 = vmatmul.msk.f32.gmra.mxu2 %vm864_vm1, %v2651_v48 }
 0x383   : > { %v1960_v41 = vpop.permute.xlu1 %1959 }
 0x384   : > { %2031 = vst.msk [vmem:[#allocation3 + $0xc8] sm:$0xff] %vm2005_vm10, %v1960_v41  ;;  %v1831_v29 = vpop.permute.xlu0 %1830 }
 0x385   : > { %2166 = vst.msk [vmem:[#allocation3 + $0xc8] sm:$0xff] %vm2140_vm11, %v2095_v36 }
 0x386   : > { %2300 = vst.msk [vmem:[#allocation3 + $0xc8] sm:$0xff] %vm2274_vm13, %v2229_v21  ;;  %v3034_v21 = vpop.f32.mrf.mxu3 }
 0x387   : > { %v2099_v50 = vpop.permute.xlu2 %2098 }
 0x38b   : > { %v1562_v18 = vpop.permute.xlu1 %1561  ;;  %v2518_v12 = vpop.f32.mrf.mxu1 }
 0x38c   : > { %1632 = vst.msk [vmem:[#allocation3 + $0xd0] sm:$0xff] %vm1605_vm7, %v1562_v18  ;;  %v2584_v60 = vmul.f32 %v5389_v25, %v2518_v12  ;;  %v2231_v34 = vpop.permute.xlu0 %2230 }
 0x38d   : > { %1767 = vst.msk [vmem:[#allocation3 + $0xd0] sm:$0xff] %vm1740_vm8, %v1697_v57  ;;  %v2332_v38 = vld [vmem:[#allocation3 + $0xc8] sm:$0xff] }
 0x38e   : > { %1901 = vst.msk [vmem:[#allocation3 + $0xd0] sm:$0xff] %vm1874_vm9, %v1831_v29  ;;  %v2620_v28 = vadd.f32 %v5396_v55, %v2584_v60  ;;  %3493 = vmatmul.msk.f32.gmra.mxu1 %vm2349_vm14, %v2332_v38 }
 0x38f   : > { %v1701_v7 = vpop.permute.xlu2 %1700 }
 0x390   : > { %v2652_v61 = vmax.f32 %v2620_v28, 0.0 }
 0x392   : > { %2684 = vst.msk [vmem:[%s4834_s23 + $0x88] sm:$0xff] %vm864_vm1, %v2652_v61  ;;  %3518 = vmatmul.msk.f32.gmra.mxu2 %vm864_vm1, %v2652_v61 }
 0x393   : > { %v1962_v11 = vpop.permute.xlu1 %1961 }
 0x394   : > { %2032 = vst.msk [vmem:[#allocation3 + $0xd0] sm:$0xff] %vm2005_vm10, %v1962_v11  ;;  %v1833_v49 = vpop.permute.xlu0 %1832 }
 0x395   : > { %2167 = vst.msk [vmem:[#allocation3 + $0xd0] sm:$0xff] %vm2140_vm11, %v2097_v33  ;;  %v3099_v33 = vmul.f32 %v5606_v8, %v3034_v21 }
 0x396   : > { %2301 = vst.msk [vmem:[#allocation3 + $0xd0] sm:$0xff] %vm2274_vm13, %v2231_v34 }
 0x397   : > { %v2101_v14 = vpop.permute.xlu2 %2100  ;;  %v3135_v12 = vadd.f32 %v5621_v17, %v3099_v33 }
 0x39b   : > { %v1564_v5 = vpop.permute.xlu1 %1563  ;;  %v2521_v19 = vpop.f32.mrf.mxu1 }
 0x39c   : > { %1633 = vst.msk [vmem:[#allocation3 + $0xd8] sm:$0xff] %vm1605_vm7, %v1564_v5  ;;  %v2585_v31 = vmul.f32 %v5389_v25, %v2521_v19  ;;  %v2233_v13 = vpop.permute.xlu0 %2232  ;;  %v2853_v23 = vpop.f32.mrf.mxu2 }
 0x39d   : > { %1768 = vst.msk [vmem:[#allocation3 + $0xd8] sm:$0xff] %vm1740_vm8, %v1699_v3  ;;  %v2929_v20 = vmul.f32 %v5615_v2, %v2853_v23  ;;  %v2333_v0 = vld [vmem:[#allocation3 + $0xd0] sm:$0xff]  ;;  %v3037_v23 = vpop.f32.mrf.mxu3 }
 0x39e   : > { %1902 = vst.msk [vmem:[#allocation3 + $0xd8] sm:$0xff] %vm1874_vm9, %v1833_v49  ;;  %v2621_v27 = vadd.f32 %v5396_v55, %v2585_v31  ;;  %3494 = vmatmul.msk.f32.gmra.mxu1 %vm2349_vm14, %v2333_v0 }
 0x39f   : > { %v2965_v35 = vadd.f32 %v5630_v44, %v2929_v20  ;;  %v1703_v39 = vpop.permute.xlu2 %1702 }
 0x3a0   : > { %v2653_v58 = vmax.f32 %v2621_v27, 0.0 }
 0x3a1   : > { %v3166_v30 = vadd.f32 %v3134_v40, %v2965_v35 }
 0x3a2   : > { %2685 = vst.msk [vmem:[%s4834_s23 + $0x90] sm:$0xff] %vm864_vm1, %v2653_v58  ;;  %3519 = vmatmul.msk.f32.gmra.mxu2 %vm864_vm1, %v2653_v58 }
 0x3a3   : > { %v3198_v43 = vmax.f32 %v3166_v30, 0.0  ;;  %v1964_v63 = vpop.permute.xlu1 %1963 }
 0x3a4   : > { %2033 = vst.msk [vmem:[#allocation3 + $0xd8] sm:$0xff] %vm2005_vm10, %v1964_v63  ;;  %v1835_v45 = vpop.permute.xlu0 %1834 }
 0x3a5   : > { %3230 = vst.msk [vmem:[%s5170_s29 + $0x60] sm:$0xff] %vm622_vm0, %v3198_v43 }
 0x3a6   : > { %2168 = vst.msk [vmem:[#allocation3 + $0xd8] sm:$0xff] %vm2140_vm11, %v2099_v50 }
 0x3a7   : > { %2302 = vst.msk [vmem:[#allocation3 + $0xd8] sm:$0xff] %vm2274_vm13, %v2233_v13  ;;  %v2103_v52 = vpop.permute.xlu2 %2102 }
 0x3ab   : > { %v1566_v36 = vpop.permute.xlu1 %1565  ;;  %v2524_v9 = vpop.f32.mrf.mxu1 }
 0x3ac   : > { %1634 = vst.msk [vmem:[#allocation3 + $0xe0] sm:$0xff] %vm1605_vm7, %v1566_v36  ;;  %v2586_v15 = vmul.f32 %v5389_v25, %v2524_v9  ;;  %v2235_v56 = vpop.permute.xlu0 %2234 }
 0x3ad   : > { %1769 = vst.msk [vmem:[#allocation3 + $0xe0] sm:$0xff] %vm1740_vm8, %v1701_v7  ;;  %v3100_v7 = vmul.f32 %v5606_v8, %v3037_v23 }
 0x3ae   : > { %1903 = vst.msk [vmem:[#allocation3 + $0xe0] sm:$0xff] %vm1874_vm9, %v1835_v45  ;;  %v2622_v4 = vadd.f32 %v5396_v55, %v2586_v15  ;;  %v2334_v62 = vld [vmem:[#allocation3 + $0xd8] sm:$0xff] }
 0x3af   : > { %3495 = vmatmul.msk.f32.gmra.mxu1 %vm2349_vm14, %v2334_v62  ;;  %v1705_v26 = vpop.permute.xlu2 %1704  ;;  %v3136_v30 = vadd.f32 %v5621_v17, %v3100_v7 }
 0x3b0   : > { %v2654_v32 = vmax.f32 %v2622_v4, 0.0  ;;  %v3039_v4 = vpop.f32.mrf.mxu3 }
 0x3b1   : > { %v3101_v62 = vmul.f32 %v5606_v8, %v3039_v4 }
 0x3b2   : > { %2686 = vst.msk [vmem:[%s4834_s23 + $0x98] sm:$0xff] %vm864_vm1, %v2654_v32  ;;  %3520 = vmatmul.msk.f32.gmra.mxu2 %vm864_vm1, %v2654_v32 }
 0x3b3   : > { %v1966_v6 = vpop.permute.xlu1 %1965 }
 0x3b4   : > { %2034 = vst.msk [vmem:[#allocation3 + $0xe0] sm:$0xff] %vm2005_vm10, %v1966_v6  ;;  %v1837_v46 = vpop.permute.xlu0 %1836  ;;  %v3137_v6 = vadd.f32 %v5621_v17, %v3101_v62 }
 0x3b5   : > { %2169 = vst.msk [vmem:[#allocation3 + $0xe0] sm:$0xff] %vm2140_vm11, %v2101_v14 }
 0x3b6   : > { %2303 = vst.msk [vmem:[#allocation3 + $0xe0] sm:$0xff] %vm2274_vm13, %v2235_v56 }
 0x3b7   : > { %v2105_v60 = vpop.permute.xlu2 %2104 }
 0x3bb   : > { %v2527_v10 = vpop.f32.mrf.mxu1  ;;  %v1568_v24 = vpop.permute.xlu1 %1567 }
 0x3bc   : > { %v2587_v47 = vmul.f32 %v5389_v25, %v2527_v10  ;;  %1635 = vst.msk [vmem:[#allocation3 + $0xe8] sm:$0xff] %vm1605_vm7, %v1568_v24  ;;  %v2237_v59 = vpop.permute.xlu0 %2236 }
 0x3bd   : > { %1770 = vst.msk [vmem:[#allocation3 + $0xe8] sm:$0xff] %vm1740_vm8, %v1703_v39  ;;  %v2335_v16 = vld [vmem:[#allocation3 + $0xe0] sm:$0xff] }
 0x3be   : > { %v2623_v42 = vadd.f32 %v5396_v55, %v2587_v47  ;;  %1904 = vst.msk [vmem:[#allocation3 + $0xe8] sm:$0xff] %vm1874_vm9, %v1837_v46  ;;  %3496 = vmatmul.msk.f32.gmra.mxu1 %vm2349_vm14, %v2335_v16  ;;  %v3042_v16 = vpop.f32.mrf.mxu3 }
 0x3bf   : > { %v1707_v49 = vpop.permute.xlu2 %1706 }
 0x3c0   : > { %v2655_v57 = vmax.f32 %v2623_v42, 0.0 }
 0x3c2   : > { %2687 = vst.msk [vmem:[%s4834_s23 + $0xa0] sm:$0xff] %vm864_vm1, %v2655_v57  ;;  %3521 = vmatmul.msk.f32.gmra.mxu2 %vm864_vm1, %v2655_v57  ;;  %v3102_v57 = vmul.f32 %v5606_v8, %v3042_v16 }
 0x3c3   : > { %v1968_v51 = vpop.permute.xlu1 %1967 }
 0x3c4   : > { %2035 = vst.msk [vmem:[#allocation3 + $0xe8] sm:$0xff] %vm2005_vm10, %v1968_v51  ;;  %v1839_v37 = vpop.permute.xlu0 %1838 }
 0x3c5   : > { %2170 = vst.msk [vmem:[#allocation3 + $0xe8] sm:$0xff] %vm2140_vm11, %v2103_v52 }
 0x3c6   : > { %2304 = vst.msk [vmem:[#allocation3 + $0xe8] sm:$0xff] %vm2274_vm13, %v2237_v59 }
 0x3c7   : > { %v2107_v40 = vpop.permute.xlu2 %2106 }
 0x3cb   : > { %v2530_v54 = vpop.f32.mrf.mxu1  ;;  %v1570_v22 = vpop.permute.xlu1 %1569 }
 0x3cc   : > { %v2588_v48 = vmul.f32 %v5389_v25, %v2530_v54  ;;  %1636 = vst.msk [vmem:[#allocation3 + $0xf0] sm:$0xff] %vm1605_vm7, %v1570_v22  ;;  %v2239_v38 = vpop.permute.xlu0 %2238 }
 0x3cd   : > { %1771 = vst.msk [vmem:[#allocation3 + $0xf0] sm:$0xff] %vm1740_vm8, %v1705_v26  ;;  %v2336_v41 = vld [vmem:[#allocation3 + $0xe8] sm:$0xff] }
 0x3ce   : > { %v2624_v29 = vadd.f32 %v5396_v55, %v2588_v48  ;;  %1905 = vst.msk [vmem:[#allocation3 + $0xf0] sm:$0xff] %vm1874_vm9, %v1839_v37  ;;  %v2856_v3 = vpop.f32.mrf.mxu2  ;;  %3497 = vmatmul.msk.f32.gmra.mxu1 %vm2349_vm14, %v2336_v41  ;;  %v3138_v37 = vadd.f32 %v5621_v17, %v3102_v57 }
 0x3cf   : > { %v2930_v18 = vmul.f32 %v5615_v2, %v2856_v3 }
 0x3d0   : > { %v2656_v34 = vmax.f32 %v2624_v29, 0.0  ;;  %v3044_v29 = vpop.f32.mrf.mxu3 }
 0x3d1   : > { %v2966_v28 = vadd.f32 %v5630_v44, %v2930_v18  ;;  %v3103_v18 = vmul.f32 %v5606_v8, %v3044_v29 }
 0x3d2   : > { %2688 = vst.msk [vmem:[%s4834_s23 + $0xa8] sm:$0xff] %vm864_vm1, %v2656_v34  ;;  %3522 = vmatmul.msk.f32.gmra.mxu2 %vm864_vm1, %v2656_v34 }
 0x3d3   : > { %v3167_v61 = vadd.f32 %v3135_v12, %v2966_v28  ;;  %v1970_v11 = vpop.permute.xlu1 %1969  ;;  %v3139_v34 = vadd.f32 %v5621_v17, %v3103_v18 }
 0x3d4   : > { %2036 = vst.msk [vmem:[#allocation3 + $0xf0] sm:$0xff] %vm2005_vm10, %v1970_v11  ;;  %v1841_v53 = vpop.permute.xlu0 %1840 }
 0x3d5   : > { %v3199_v50 = vmax.f32 %v3167_v61, 0.0  ;;  %2171 = vst.msk [vmem:[#allocation3 + $0xf0] sm:$0xff] %vm2140_vm11, %v2105_v60 }
 0x3d6   : > { %2305 = vst.msk [vmem:[#allocation3 + $0xf0] sm:$0xff] %vm2274_vm13, %v2239_v38 }
 0x3d7   : > { %3231 = vst.msk [vmem:[%s5170_s29 + $0x68] sm:$0xff] %vm622_vm0, %v3199_v50 }
 0x3db   : > { %v1572_v1 = vpop.permute.xlu1 %1571 }
 0x3dc   : > { %v2533_v5 = vpop.f32.mrf.mxu1  ;;  %1637 = vst.msk [vmem:[#allocation3 + $0xf8] sm:$0xff] %vm1605_vm7, %v1572_v1  ;;  %v2241_v27 = vpop.permute.xlu0 %2240 }
 0x3dd   : > { %v2589_v19 = vmul.f32 %v5389_v25, %v2533_v5  ;;  %1772 = vst.msk [vmem:[#allocation3 + $0xf8] sm:$0xff] %vm1740_vm8, %v1707_v49  ;;  %v2337_v31 = vld [vmem:[#allocation3 + $0xf0] sm:$0xff] }
 0x3de   : > { %1906 = vst.msk [vmem:[#allocation3 + $0xf8] sm:$0xff] %vm1874_vm9, %v1841_v53  ;;  %3498 = vmatmul.msk.f32.gmra.mxu1 %vm2349_vm14, %v2337_v31  ;;  %v3047_v53 = vpop.f32.mrf.mxu3 }
 0x3df   : > { %v2625_v13 = vadd.f32 %v5396_v55, %v2589_v19  ;;  %v3104_v5 = vmul.f32 %v5606_v8, %v3047_v53 }
 0x3e1   : > { %v2657_v20 = vmax.f32 %v2625_v13, 0.0  ;;  %v3140_v13 = vadd.f32 %v5621_v17, %v3104_v5 }
 0x3e3   : > { %2689 = vst.msk [vmem:[%s4834_s23 + $0xb0] sm:$0xff] %vm864_vm1, %v2657_v20  ;;  %3523 = vmatmul.msk.f32.gmra.mxu2 %vm864_vm1, %v2657_v20  ;;  %v1972_v0 = vpop.permute.xlu1 %1971 }
 0x3e4   : > { %2037 = vst.msk [vmem:[#allocation3 + $0xf8] sm:$0xff] %vm2005_vm10, %v1972_v0 }
 0x3e5   : > { %2172 = vst.msk [vmem:[#allocation3 + $0xf8] sm:$0xff] %vm2140_vm11, %v2107_v40 }
 0x3e6   : > { %v2859_v35 = vpop.f32.mrf.mxu2  ;;  %2306 = vst.msk [vmem:[#allocation3 + $0xf8] sm:$0xff] %vm2274_vm13, %v2241_v27 }
 0x3e7   : > { %v2931_v58 = vmul.f32 %v5615_v2, %v2859_v35  ;;  %v3049_v35 = vpop.f32.mrf.mxu3 }
 0x3e9   : > { %v2967_v43 = vadd.f32 %v5630_v44, %v2931_v58 }
 0x3eb   : > { %v3168_v63 = vadd.f32 %v3136_v30, %v2967_v43  ;;  %v2536_v45 = vpop.f32.mrf.mxu1  ;;  %v3105_v30 = vmul.f32 %v5606_v8, %v3049_v35 }
 0x3ec   : > { %v2590_v14 = vmul.f32 %v5389_v25, %v2536_v45 }
 0x3ed   : > { %v3200_v36 = vmax.f32 %v3168_v63, 0.0  ;;  %v2338_v9 = vld [vmem:[#allocation3 + $0xf8] sm:$0xff]  ;;  %v3141_v45 = vadd.f32 %v5621_v17, %v3105_v30 }
 0x3ee   : > { %v2626_v15 = vadd.f32 %v5396_v55, %v2590_v14  ;;  %3499 = vmatmul.msk.f32.gmra.mxu1 %vm2349_vm14, %v2338_v9 }
 0x3ef   : > { %3232 = vst.msk [vmem:[%s5170_s29 + $0x70] sm:$0xff] %vm622_vm0, %v3200_v36  ;;  %v3052_v62 = vpop.f32.mrf.mxu3 }
 0x3f0   : > { %v2658_v56 = vmax.f32 %v2626_v15, 0.0 }
 0x3f2   : > { %2690 = vst.msk [vmem:[%s4834_s23 + $0xb8] sm:$0xff] %vm864_vm1, %v2658_v56  ;;  %3524 = vmatmul.msk.f32.gmra.mxu2 %vm864_vm1, %v2658_v56 }
 0x3f6   : > { %v2862_v32 = vpop.f32.mrf.mxu2 }
 0x3f7   : > { %v2932_v39 = vmul.f32 %v5615_v2, %v2862_v32  ;;  %v3054_v57 = vpop.f32.mrf.mxu3 }
 0x3f9   : > { %v2968_v46 = vadd.f32 %v5630_v44, %v2932_v39  ;;  %v3106_v39 = vmul.f32 %v5606_v8, %v3052_v62 }
 0x3fb   : > { %v3169_v10 = vadd.f32 %v3137_v6, %v2968_v46 }
 0x3fc   : > { %v2539_v24 = vpop.f32.mrf.mxu1 }
 0x3fd   : > { %v3201_v52 = vmax.f32 %v3169_v10, 0.0  ;;  %v2591_v47 = vmul.f32 %v5389_v25, %v2539_v24  ;;  %v3142_v10 = vadd.f32 %v5621_v17, %v3106_v39 }
 0x3ff   : > { %3233 = vst.msk [vmem:[%s5170_s29 + $0x78] sm:$0xff] %vm622_vm0, %v3201_v52  ;;  %v2627_v59 = vadd.f32 %v5396_v55, %v2591_v47 }
 0x401   : > { %v2659_v42 = vmax.f32 %v2627_v59, 0.0 }
 0x403   : > { %2691 = vst.msk [vmem:[%s4834_s23 + $0xc0] sm:$0xff] %vm864_vm1, %v2659_v42  ;;  %3525 = vmatmul.msk.f32.gmra.mxu2 %vm864_vm1, %v2659_v42 }
 0x405   : > { %v2865_v51 = vpop.f32.mrf.mxu2 }
 0x406   : > { %v2933_v26 = vmul.f32 %v5615_v2, %v2865_v51 }
 0x408   : > { %v2969_v21 = vadd.f32 %v5630_v44, %v2933_v26  ;;  %v3107_v26 = vmul.f32 %v5606_v8, %v3054_v57 }
 0x40a   : > { %v3170_v54 = vadd.f32 %v3138_v37, %v2969_v21 }
 0x40b   : > { %v2542_v22 = vpop.f32.mrf.mxu1 }
 0x40c   : > { %v3202_v33 = vmax.f32 %v3170_v54, 0.0  ;;  %v2592_v48 = vmul.f32 %v5389_v25, %v2542_v22  ;;  %v3143_v54 = vadd.f32 %v5621_v17, %v3107_v26 }
 0x40e   : > { %3234 = vst.msk [vmem:[%s5170_s29 + $0x80] sm:$0xff] %vm622_vm0, %v3202_v33  ;;  %v2628_v41 = vadd.f32 %v5396_v55, %v2592_v48 }
 0x410   : > { %v2660_v3 = vmax.f32 %v2628_v41, 0.0 }
 0x412   : > { %2692 = vst.msk [vmem:[%s4834_s23 + $0xc8] sm:$0xff] %vm864_vm1, %v2660_v3  ;;  %3526 = vmatmul.msk.f32.gmra.mxu2 %vm864_vm1, %v2660_v3 }
 0x415   : > { %v2868_v12 = vpop.f32.mrf.mxu2 }
 0x416   : > { %v2934_v60 = vmul.f32 %v5615_v2, %v2868_v12  ;;  %v3057_v12 = vpop.f32.mrf.mxu3 }
 0x418   : > { %v2970_v38 = vadd.f32 %v5630_v44, %v2934_v60  ;;  %v3108_v60 = vmul.f32 %v5606_v8, %v3057_v12 }
 0x41a   : > { %v3171_v28 = vadd.f32 %v3139_v34, %v2970_v38 }
 0x41b   : > { %v2545_v61 = vpop.f32.mrf.mxu1 }
 0x41c   : > { %v3203_v11 = vmax.f32 %v3171_v28, 0.0  ;;  %v2593_v50 = vmul.f32 %v5389_v25, %v2545_v61  ;;  %v3144_v28 = vadd.f32 %v5621_v17, %v3108_v60 }
 0x41e   : > { %3235 = vst.msk [vmem:[%s5170_s29 + $0x88] sm:$0xff] %vm622_vm0, %v3203_v11  ;;  %v2629_v49 = vadd.f32 %v5396_v55, %v2593_v50  ;;  %v3059_v5 = vpop.f32.mrf.mxu3 }
 0x420   : > { %v2661_v1 = vmax.f32 %v2629_v49, 0.0 }
 0x422   : > { %2693 = vst.msk [vmem:[%s4834_s23 + $0xd0] sm:$0xff] %vm864_vm1, %v2661_v1  ;;  %3527 = vmatmul.msk.f32.gmra.mxu2 %vm864_vm1, %v2661_v1 }
 0x425   : > { %v2871_v19 = vpop.f32.mrf.mxu2 }
 0x426   : > { %v2935_v31 = vmul.f32 %v5615_v2, %v2871_v19 }
 0x428   : > { %v2971_v23 = vadd.f32 %v5630_v44, %v2935_v31  ;;  %v3109_v31 = vmul.f32 %v5606_v8, %v3059_v5 }
 0x42a   : > { %v3172_v20 = vadd.f32 %v3140_v13, %v2971_v23 }
 0x42c   : > { %v3204_v40 = vmax.f32 %v3172_v20, 0.0  ;;  %v2548_v0 = vpop.f32.mrf.mxu1  ;;  %v3145_v20 = vadd.f32 %v5621_v17, %v3109_v31 }
 0x42d   : > { %v2594_v7 = vmul.f32 %v5389_v25, %v2548_v0  ;;  %v3062_v0 = vpop.f32.mrf.mxu3 }
 0x42e   : > { %3236 = vst.msk [vmem:[%s5170_s29 + $0x90] sm:$0xff] %vm622_vm0, %v3204_v40 }
 0x42f   : > { %v2630_v27 = vadd.f32 %v5396_v55, %v2594_v7  ;;  %v3110_v7 = vmul.f32 %v5606_v8, %v3062_v0 }
 0x431   : > { %v2662_v58 = vmax.f32 %v2630_v27, 0.0 }
 0x433   : > { %2694 = vst.msk [vmem:[%s4834_s23 + $0xd8] sm:$0xff] %vm864_vm1, %v2662_v58  ;;  %3528 = vmatmul.msk.f32.gmra.mxu2 %vm864_vm1, %v2662_v58  ;;  %v3146_v58 = vadd.f32 %v5621_v17, %v3110_v7 }
 0x435   : > { %v2874_v43 = vpop.f32.mrf.mxu2 }
 0x436   : > { %v2936_v63 = vmul.f32 %v5615_v2, %v2874_v43 }
 0x438   : > { %v2972_v14 = vadd.f32 %v5630_v44, %v2936_v63 }
 0x43a   : > { %v3173_v36 = vadd.f32 %v3141_v45, %v2972_v14  ;;  %v3064_v45 = vpop.f32.mrf.mxu3 }
 0x43b   : > { %v2551_v9 = vpop.f32.mrf.mxu1  ;;  %v3111_v14 = vmul.f32 %v5606_v8, %v3064_v45 }
 0x43c   : > { %v3205_v15 = vmax.f32 %v3173_v36, 0.0  ;;  %v2595_v56 = vmul.f32 %v5389_v25, %v2551_v9 }
 0x43e   : > { %3237 = vst.msk [vmem:[%s5170_s29 + $0x98] sm:$0xff] %vm622_vm0, %v3205_v15  ;;  %v2631_v4 = vadd.f32 %v5396_v55, %v2595_v56  ;;  %v3147_v15 = vadd.f32 %v5621_v17, %v3111_v14 }
 0x440   : > { %v2663_v32 = vmax.f32 %v2631_v4, 0.0 }
 0x442   : > { %2695 = vst.msk [vmem:[%s4834_s23 + $0xe0] sm:$0xff] %vm864_vm1, %v2663_v32  ;;  %3529 = vmatmul.msk.f32.gmra.mxu2 %vm864_vm1, %v2663_v32  ;;  %v3067_v32 = vpop.f32.mrf.mxu3 }
 0x443   : > { %v3112_v39 = vmul.f32 %v5606_v8, %v3067_v32 }
 0x445   : > { %v2877_v6 = vpop.f32.mrf.mxu2 }
 0x446   : > { %v2937_v46 = vmul.f32 %v5615_v2, %v2877_v6 }
 0x448   : > { %v2973_v24 = vadd.f32 %v5630_v44, %v2937_v46 }
 0x44a   : > { %v3174_v52 = vadd.f32 %v3142_v10, %v2973_v24  ;;  %v3148_v10 = vadd.f32 %v5621_v17, %v3112_v39 }
 0x44b   : > { %v2554_v47 = vpop.f32.mrf.mxu1 }
 0x44c   : > { %v3206_v59 = vmax.f32 %v3174_v52, 0.0  ;;  %v2596_v16 = vmul.f32 %v5389_v25, %v2554_v47 }
 0x44e   : > { %3238 = vst.msk [vmem:[%s5170_s29 + $0xa0] sm:$0xff] %vm622_vm0, %v3206_v59  ;;  %v2632_v42 = vadd.f32 %v5396_v55, %v2596_v16  ;;  %v3069_v59 = vpop.f32.mrf.mxu3 }
 0x44f   : > { %v3113_v16 = vmul.f32 %v5606_v8, %v3069_v59 }
 0x450   : > { %v2664_v51 = vmax.f32 %v2632_v42, 0.0 }
 0x452   : > { %2696 = vst.msk [vmem:[%s4834_s23 + $0xe8] sm:$0xff] %vm864_vm1, %v2664_v51  ;;  %3530 = vmatmul.msk.f32.gmra.mxu2 %vm864_vm1, %v2664_v51  ;;  %v3149_v51 = vadd.f32 %v5621_v17, %v3113_v16 }
 0x455   : > { %v2880_v37 = vpop.f32.mrf.mxu2 }
 0x456   : > { %v2938_v21 = vmul.f32 %v5615_v2, %v2880_v37 }
 0x458   : > { %v2974_v22 = vadd.f32 %v5630_v44, %v2938_v21 }
 0x45a   : > { %v3175_v33 = vadd.f32 %v3143_v54, %v2974_v22  ;;  %v3072_v54 = vpop.f32.mrf.mxu3 }
 0x45b   : > { %v2557_v48 = vpop.f32.mrf.mxu1  ;;  %v3114_v22 = vmul.f32 %v5606_v8, %v3072_v54 }
 0x45c   : > { %v3207_v41 = vmax.f32 %v3175_v33, 0.0  ;;  %v2597_v29 = vmul.f32 %v5389_v25, %v2557_v48 }
 0x45e   : > { %3239 = vst.msk [vmem:[%s5170_s29 + $0xa8] sm:$0xff] %vm622_vm0, %v3207_v41  ;;  %v2633_v3 = vadd.f32 %v5396_v55, %v2597_v29  ;;  %v3150_v41 = vadd.f32 %v5621_v17, %v3114_v22 }
 0x460   : > { %v2665_v18 = vmax.f32 %v2633_v3, 0.0 }
 0x462   : > { %2697 = vst.msk [vmem:[%s4834_s23 + $0xf0] sm:$0xff] %vm864_vm1, %v2665_v18  ;;  %3531 = vmatmul.msk.f32.gmra.mxu2 %vm864_vm1, %v2665_v18  ;;  %v3074_v12 = vpop.f32.mrf.mxu3 }
 0x463   : > { %v3115_v60 = vmul.f32 %v5606_v8, %v3074_v12 }
 0x466   : > { %v2883_v34 = vpop.f32.mrf.mxu2 }
 0x467   : > { %v2939_v38 = vmul.f32 %v5615_v2, %v2883_v34 }
 0x469   : > { %v2975_v61 = vadd.f32 %v5630_v44, %v2939_v38 }
 0x46b   : > { %v3176_v11 = vadd.f32 %v3144_v28, %v2975_v61  ;;  %v2560_v50 = vpop.f32.mrf.mxu1  ;;  %v3151_v28 = vadd.f32 %v5621_v17, %v3115_v60 }
 0x46c   : > { %v2598_v49 = vmul.f32 %v5389_v25, %v2560_v50 }
 0x46d   : > { %v3208_v53 = vmax.f32 %v3176_v11, 0.0 }
 0x46e   : > { %v2634_v1 = vadd.f32 %v5396_v55, %v2598_v49  ;;  %v3077_v49 = vpop.f32.mrf.mxu3 }
 0x46f   : > { %3240 = vst.msk [vmem:[%s5170_s29 + $0xb0] sm:$0xff] %vm622_vm0, %v3208_v53  ;;  %v3116_v53 = vmul.f32 %v5606_v8, %v3077_v49 }
 0x470   : > { %v2666_v19 = vmax.f32 %v2634_v1, 0.0 }
 0x472   : > { %2698 = vst.msk [vmem:[%s4834_s23 + $0xf8] sm:$0xff] %vm864_vm1, %v2666_v19  ;;  %3532 = vmatmul.msk.f32.gmra.mxu2 %vm864_vm1, %v2666_v19  ;;  %v3152_v19 = vadd.f32 %v5621_v17, %v3116_v53  ;;  %s3578_s23 = sshll.u32 %s3885_s17, 8  ;;  %s3251_s17 = scalar_lea.sflag [#allocation6], %s3950_s18 }
 0x473   : > { %s3267_s21 = scalar_lea.hbm %s5926_s20, %s3578_s23 }
 0x474   : > { %s3270_s26 = sshll.u32 %s3267_s21, 4  ;;  %s3271_s26 = int_to_ptr.hbm [resolvable:$true] %s3270_s26 }
 0x475   : > { %v2886_v13 = vpop.f32.mrf.mxu2  ;;  %s3723_s9 = sshra.s32 %s3271_s26, 4  ;;  %s3724_s9 = int_to_ptr.hbm [resolvable:$true] %s3723_s9 }
 0x476   : > { %v2940_v23 = vmul.f32 %v5615_v2, %v2886_v13  ;;  %s3725_s19 = scalar_lea.hbm %s3724_s9, 256  ;;  %p3730_p1 = scmp.lt.s32.totalorder %s3724_s9, %s5926_s20 }
 0x477   : > { %p3726_p9 = scmp.ne.s32.totalorder %s3724_s9, %s3725_s19  ;;  %p3731_p3 = scmp.lt.s32.totalorder %s3729_s28, %s3725_s19 }
 0x478   : > { %v2976_v25 = vadd.f32 %v5630_v44, %v2940_v23 }
 0x479   : > { %p3727_p13 = pnand %p3726_p9, %p3914_p11  ;;  %p3732_p4 = por %p3731_p3, %p3730_p1 }
 0x47a   : > { %v3177_v40 = vadd.f32 %v3145_v20, %v2976_v25  ;;  %v3079_v20 = vpop.f32.mrf.mxu3 }
 0x47b   : > { %v3117_v25 = vmul.f32 %v5606_v8, %v3079_v20  ;;  %p3728_p0 = pneg %p3727_p13 }
 0x47c   : > { %v3209_v55 = vmax.f32 %v3177_v40, 0.0 }
 0x47d   : > { %v3153_v0 = vadd.f32 %v5621_v17, %v3117_v25  ;;  %p3733_p7 = pnand %p3732_p4, %p3728_p0 }
 0x47e   : > { %3241 = vst.msk [vmem:[%s5170_s29 + $0xb8] sm:$0xff] %vm622_vm0, %v3209_v55 }
 0x486   : > { %v2889_v27 = vpop.f32.mrf.mxu2 }
 0x487   : > { %v2941_v35 = vmul.f32 %v5615_v2, %v2889_v27 }
 0x489   : > { %v2977_v30 = vadd.f32 %v5630_v44, %v2941_v35 }
 0x48b   : > { %v3178_v43 = vadd.f32 %v3146_v58, %v2977_v30 }
 0x48d   : > { %v3210_v63 = vmax.f32 %v3178_v43, 0.0 }
 0x48f   : > { %3242 = vst.msk [vmem:[%s5170_s29 + $0xc0] sm:$0xff] %vm622_vm0, %v3210_v63 }
 0x495   : > { %v2892_v36 = vpop.f32.mrf.mxu2 }
 0x496   : > { %v2942_v9 = vmul.f32 %v5615_v2, %v2892_v36 }
 0x498   : > { %v2978_v56 = vadd.f32 %v5630_v44, %v2942_v9 }
 0x49a   : > { %v3179_v4 = vadd.f32 %v3147_v15, %v2978_v56 }
 0x49c   : > { %v3211_v62 = vmax.f32 %v3179_v4, 0.0 }
 0x49e   : > { %3243 = vst.msk [vmem:[%s5170_s29 + $0xc8] sm:$0xff] %vm622_vm0, %v3211_v62 }
 0x4a5   : > { %v2895_v6 = vpop.f32.mrf.mxu2 }
 0x4a6   : > { %v2943_v46 = vmul.f32 %v5615_v2, %v2895_v6 }
 0x4a8   : > { %v2979_v24 = vadd.f32 %v5630_v44, %v2943_v46 }
 0x4aa   : > { %v3180_v52 = vadd.f32 %v3148_v10, %v2979_v24 }
 0x4ac   : > { %v3212_v47 = vmax.f32 %v3180_v52, 0.0 }
 0x4ae   : > { %3244 = vst.msk [vmem:[%s5170_s29 + $0xd0] sm:$0xff] %vm622_vm0, %v3212_v47 }
 0x4b6   : > { %v2898_v42 = vpop.f32.mrf.mxu2 }
 0x4b7   : > { %v2944_v57 = vmul.f32 %v5615_v2, %v2898_v42 }
 0x4b9   : > { %v2980_v26 = vadd.f32 %v5630_v44, %v2944_v57 }
 0x4bb   : > { %v3181_v37 = vadd.f32 %v3149_v51, %v2980_v26 }
 0x4bd   : > { %v3213_v21 = vmax.f32 %v3181_v37, 0.0 }
 0x4bf   : > { %3245 = vst.msk [vmem:[%s5170_s29 + $0xd8] sm:$0xff] %vm622_vm0, %v3213_v21 }
 0x4c5   : > { %v2901_v33 = vpop.f32.mrf.mxu2 }
 0x4c6   : > { %v2945_v48 = vmul.f32 %v5615_v2, %v2901_v33 }
 0x4c8   : > { %v2981_v29 = vadd.f32 %v5630_v44, %v2945_v48 }
 0x4ca   : > { %v3182_v3 = vadd.f32 %v3150_v41, %v2981_v29 }
 0x4cc   : > { %v3214_v18 = vmax.f32 %v3182_v3, 0.0 }
 0x4ce   : > { %3246 = vst.msk [vmem:[%s5170_s29 + $0xe0] sm:$0xff] %vm622_vm0, %v3214_v18 }
 0x4d5   : > { %v2904_v34 = vpop.f32.mrf.mxu2 }
 0x4d6   : > { %v2946_v38 = vmul.f32 %v5615_v2, %v2904_v34 }
 0x4d8   : > { %v2982_v61 = vadd.f32 %v5630_v44, %v2946_v38 }
 0x4da   : > { %v3183_v11 = vadd.f32 %v3151_v28, %v2982_v61 }
 0x4dc   : > { %v3215_v50 = vmax.f32 %v3183_v11, 0.0 }
 0x4de   : > { %3247 = vst.msk [vmem:[%s5170_s29 + $0xe8] sm:$0xff] %vm622_vm0, %v3215_v50 }
 0x4e5   : > { %v2907_v1 = vpop.f32.mrf.mxu2 }
 0x4e6   : > { %v2947_v5 = vmul.f32 %v5615_v2, %v2907_v1 }
 0x4e8   : > { %v2983_v31 = vadd.f32 %v5630_v44, %v2947_v5 }
 0x4ea   : > { %v3184_v13 = vadd.f32 %v3152_v19, %v2983_v31 }
 0x4ec   : > { %v3216_v23 = vmax.f32 %v3184_v13, 0.0 }
 0x4ee   : > { %3248 = vst.msk [vmem:[%s5170_s29 + $0xf0] sm:$0xff] %vm622_vm0, %v3216_v23 }
 0x4f5   : > { %v2910_v40 = vpop.f32.mrf.mxu2 }
 0x4f6   : > { %v2948_v55 = vmul.f32 %v5615_v2, %v2910_v40 }
 0x4f8   : > { %v2984_v7 = vadd.f32 %v5630_v44, %v2948_v55 }
 0x4fa   : > { %v3185_v27 = vadd.f32 %v3153_v0, %v2984_v7 }
 0x4fc   : > { %v3217_v35 = vmax.f32 %v3185_v27, 0.0 }
 0x4fe   : > { %3249 = vst.msk [vmem:[%s5170_s29 + $0xf8] sm:$0xff] %vm622_vm0, %v3217_v35 }
 0x4ff   : > { %3736 = shalt.err (!%p3733_p7)
}
 0x500   : > { %s3788_s18 = smov 128  }
 0x501   : > { %3590 = dma.vmem_to_hbm [thread:$0]  (%p3914_p11), %s3269_s25, 4096, %s3271_s26, %s3251_s17, %s3788_s18, %s3788_s18, %s3781_s15  }
 0x502 PF: > { %s5928_s29 = sld [smem:[#allocation10_spill]]  ;;  %p5930_p5 = scmp.ge.s32.totalorder %s3775_s16, 2 }
 0x504   : > { %p3597_p8 = pnand %p5930_p5, %p3918_p12 }
 0x506   : > { %p3598_p10 = pneg %p3597_p8 }
 0x508   : > { %s3288_s1 = sand.u32 1, %s5928_s29  }
 0x509   : > { %s3289_s24 = scalar_lea.sflag [#allocation6], %s3288_s1 }
 0x50a   : > { %3758 = dma.done.wait (%p3598_p10), %s3289_s24, 4096  }
 0x50b   : > { %3760 = vsyncadd (%p3598_p10), %s3289_s24, 4294963200  ;;  %s5931_s16 = sld [smem:[#allocation12_spill]]  ;;  %s5934_s29 = smov %s3767_s30 }
 0x50c   : > { %s5932_s9 = sld [smem:[#allocation11_spill]] }
 0x50d   : > { %s5933_s15 = sld [smem:[#allocation13_spill]] }
 0x511   : > { %p28_p2 = scmp.ge.s32.totalorder %s5931_s16, 4  }
 0x512   : > { %s5935_s30 = smov %s5932_s9 }
 0x513   :  { %30 = sbr.rel (!%p28_p2) target bundleno = 10 (0xa), region = 130 }
 0x518   :  { %3303 = vsyncpa [#allocation5], 1 }
 0x519   :  { %3305 = vsyncpa [#allocation5 + $0x1], 1 }
 0x51a   :  { %3306 = vsyncpa [#allocation6], 1 }
 0x51b   :  { %3308 = vsyncpa [#allocation6 + $0x1], 1 }

</bundles_post_ra>
